<compile_context>
chip_gen: v7x
topology: tpu7x:2x2x1
jax: 0.10.0
libtpu: 0.0.40
codegen_flags: <defaults>
</compile_context>

<pallas_src>
import jax
import jax.numpy as jnp
import numpy as np
from jax.experimental import pallas as pl
from jax.experimental.pallas import tpu as pltpu

NULL_ATTENTION = -2.0 ** 10  # -1024.0


def hist_att_kernel(x_item_ref, hist_ref, mask_ref,
                    w1i_ref, w1h_ref, w1p_ref, b1_ref,
                    w2_ref, b2_ref, w3_ref, b3_ref,
                    rep_ref, score_ref):
    Bt, L, D = hist_ref.shape
    rows = Bt * L
    H1P = b1_ref.shape[-1]
    H2P = b2_ref.shape[-1]

    item = x_item_ref[...]                                   # (Bt, D)
    hist = hist_ref[...]                                     # (Bt, L, D)
    hist2d = hist.reshape(rows, D)                           # minor dim kept -> free

    # --- Layer 1 with folded weights (no in-kernel lane concat) ---------------------
    # feats @ W1 == item@(W1a+W1d) + hist@(W1b-W1d) + (item*hist)@W1c
    item_h1 = jnp.dot(item, w1i_ref[...],
                      preferred_element_type=jnp.float32)    # (Bt, H1P), once per row
    hist_h1 = jnp.dot(hist2d, w1h_ref[...],
                      preferred_element_type=jnp.float32)    # (rows, H1P)
    prod2d = (hist * item[:, None, :]).reshape(rows, D)      # (rows, D)
    prod_h1 = jnp.dot(prod2d, w1p_ref[...],
                      preferred_element_type=jnp.float32)    # (rows, H1P)

    h1 = (hist_h1 + prod_h1).reshape(Bt, L, H1P) \
        + item_h1[:, None, :] + b1_ref[...]                  # (Bt, L, H1P)
    h1 = jnp.maximum(h1, 0.0)

    # --- Layer 2 ---------------------------------------------------------------------
    h2 = jnp.dot(h1.reshape(rows, H1P), w2_ref[...],
                 preferred_element_type=jnp.float32) + b2_ref[...]
    h2 = jnp.maximum(h2, 0.0)                                # (rows, H2P)

    # --- Layer 3 (output dim 1): lane reduction against the w3 row + SMEM bias --------
    h2_3 = h2.reshape(Bt, L, H2P)
    b3 = b3_ref[0, 0]
    score = jnp.sum(h2_3 * w3_ref[...], axis=-1, keepdims=True) + b3   # (Bt, L, 1)

    # Mask positions >= hist_len: masked slots must equal NULL_ATTENTION *exactly*
    # (the reference assigns, it does not add), so keep a select rather than a bias.
    score_m = jnp.where(mask_ref[...] > 0.0, score, NULL_ATTENTION)    # (Bt, L, 1)

    # Per-batch softmax over the history (L) axis.
    m = jnp.max(score_m, axis=1, keepdims=True)              # (Bt, 1, 1)
    e = jnp.exp(score_m - m)
    denom = jnp.sum(e, axis=1, keepdims=True)                # (Bt, 1, 1)
    atten = e / denom                                        # (Bt, L, 1)

    # Weighted sum of the history.
    rep_ref[...] = jnp.sum(hist * atten, axis=1)             # (Bt, D)
    score_ref[...] = score_m                                 # (Bt, L, 1)


def hist_att_forward(x_item, user_hist, hist_len, params, bt=None):
    """params: dict with padded & folded weights (see make_params)."""
    B, L, D = user_hist.shape
    H1P = params["b1"].shape[-1]
    H2P = params["b2"].shape[-1]
    assert params["w1_item"].shape == (D, H1P)
    assert params["w2"].shape == (H1P, H2P)

    if bt is None:
        # VMEM-derived row cap (~rows * (H1P + H2P + D) * 4B of activations per step).
        # 2048 rows ≈ 3.2 MiB activations + <1 MiB double-buffered inputs: safe under
        # v5e's 16 MiB scoped-VMEM default and v7x's 32 MiB, no vmem_limit_bytes needed.
        ROW_CAP = 2048
        bt = 1
        for cand in range(1, B + 1):
            if B % cand == 0 and cand * L <= ROW_CAP:
                bt = cand
    assert B % bt == 0, "batch must be divisible by the batch tile"
    nblk = B // bt

    # Validity mask (same formula as the PyTorch module), precomputed as f32 0/1.
    mask = (jnp.arange(L, dtype=jnp.int32)[None, :]
            < hist_len.astype(jnp.int32)[:, None])
    mask_f = mask.astype(jnp.float32)[:, :, None]             # (B, L, 1)

    grid_spec = pltpu.PrefetchScalarGridSpec(
        num_scalar_prefetch=0,
        grid=(nblk,),
        in_specs=[
            pl.BlockSpec((bt, D),    lambda i: (i, 0)),       # x_item
            pl.BlockSpec((bt, L, D), lambda i: (i, 0, 0)),    # user_hist
            pl.BlockSpec((bt, L, 1), lambda i: (i, 0, 0)),    # f32 validity mask
            pl.BlockSpec((D, H1P),   lambda i: (0, 0)),       # w1_item = W1a + W1d (resident)
            pl.BlockSpec((D, H1P),   lambda i: (0, 0)),       # w1_hist = W1b - W1d
            pl.BlockSpec((D, H1P),   lambda i: (0, 0)),       # w1_prod = W1c
            pl.BlockSpec((1, H1P),   lambda i: (0, 0)),       # b1
            pl.BlockSpec((H1P, H2P), lambda i: (0, 0)),       # w2
            pl.BlockSpec((1, H2P),   lambda i: (0, 0)),       # b2
            pl.BlockSpec((1, H2P),   lambda i: (0, 0)),       # w3 (row form)
            pl.BlockSpec(memory_space=pltpu.MemorySpace.SMEM),  # b3 scalar
        ],
        out_specs=[
            pl.BlockSpec((bt, D),    lambda i: (i, 0)),       # user_hist_rep
            pl.BlockSpec((bt, L, 1), lambda i: (i, 0, 0)),    # score
        ],
    )

    # Only ask for megacore sharding when there are multiple sizeable blocks.
    semantics = ("arbitrary",) if nblk == 1 else ("parallel",)

    rep, score = pl.pallas_call(
        hist_att_kernel,
        grid_spec=grid_spec,
        out_shape=(
            jax.ShapeDtypeStruct((B, D), jnp.float32),
            jax.ShapeDtypeStruct((B, L, 1), jnp.float32),
        ),
        compiler_params=pltpu.CompilerParams(dimension_semantics=semantics),
    )(x_item, user_hist, mask_f,
      params["w1_item"], params["w1_hist"], params["w1_prod"], params["b1"],
      params["w2"], params["b2"], params["w3"], params["b3"])

    # Matches PyTorch's score.squeeze() for B > 1 (for B == 1 PyTorch also drops batch).
    return rep, jnp.squeeze(score, axis=-1)


def make_params(key, q_dim, h1=200, h2=80, h1_pad=256, h2_pad=128):
    """Deterministic synthetic weights, folded (layer 1) and zero-padded."""
    D = q_dim
    k1, k2, k3, k4, k5, k6 = jax.random.split(key, 6)
    W1 = jax.random.normal(k1, (4 * D, h1), jnp.float32) * 0.05
    b1 = jax.random.normal(k2, (h1,), jnp.float32) * 0.05
    W2 = jax.random.normal(k3, (h1, h2), jnp.float32) * 0.05
    b2 = jax.random.normal(k4, (h2,), jnp.float32) * 0.05
    W3 = jax.random.normal(k5, (h2, 1), jnp.float32) * 0.05
    b3 = jax.random.normal(k6, (1,), jnp.float32) * 0.05

    # Fold the 4-way concat into three D-wide weight blocks (done once, outside kernel).
    W1a, W1b, W1c, W1d = W1[:D], W1[D:2 * D], W1[2 * D:3 * D], W1[3 * D:]
    W1_item = W1a + W1d          # multiplies x_item (tiled over L)
    W1_hist = W1b - W1d          # multiplies user_hist
    W1_prod = W1c                # multiplies x_item * user_hist

    def pad_cols(w, cols):
        out = jnp.zeros((w.shape[0], cols), jnp.float32)
        return out.at[:, :w.shape[1]].set(w)

    W1ip = pad_cols(W1_item, h1_pad)
    W1hp = pad_cols(W1_hist, h1_pad)
    W1pp = pad_cols(W1_prod, h1_pad)
    b1p = jnp.zeros((1, h1_pad), jnp.float32).at[0, :h1].set(b1)
    W2p = jnp.zeros((h1_pad, h2_pad), jnp.float32).at[:h1, :h2].set(W2)
    b2p = jnp.zeros((1, h2_pad), jnp.float32).at[0, :h2].set(b2)
    W3p = jnp.zeros((1, h2_pad), jnp.float32).at[0, :h2].set(W3[:, 0])
    b3p = jnp.reshape(b3, (1, 1))

    params = dict(w1_item=W1ip, w1_hist=W1hp, w1_prod=W1pp, b1=b1p,
                  w2=W2p, b2=b2p, w3=W3p, b3=b3p)
    unpadded = dict(W1=W1, b1=b1, W2=W2, b2=b2, W3=W3, b3=b3)
    return params, unpadded


def ref_forward(x_item, user_hist, hist_len, p):
    """Pure-JAX reference mirroring the PyTorch forward (dropout = identity)."""
    B, L, D = user_hist.shape
    tile = jnp.broadcast_to(x_item[:, None, :], (B, L, D))
    inp = jnp.concatenate([tile, user_hist, tile * user_hist, tile - user_hist], axis=-1)
    h = jax.nn.relu(inp @ p["W1"] + p["b1"])
    h = jax.nn.relu(h @ p["W2"] + p["b2"])
    s = h @ p["W3"] + p["b3"]                                   # [B, L, 1]
    mask = jnp.arange(L)[None, :] < hist_len[:, None]
    s = jnp.where(mask[..., None], s, NULL_ATTENTION)
    a = jax.nn.softmax(s, axis=1)
    rep = jnp.sum(user_hist * a, axis=1)
    return rep, s[..., 0]


if __name__ == "__main__":
    B, L, D = 32, 8, 32          # batch, history length, q_dim

    key = jax.random.PRNGKey(0)
    k_item, k_hist, k_len, k_w = jax.random.split(key, 4)
    x_item = jax.random.normal(k_item, (B, D), jnp.float32)
    user_hist = jax.random.normal(k_hist, (B, L, D), jnp.float32)
    hist_len = jax.random.randint(k_len, (B,), 1, L + 1).astype(jnp.int32)

    params, unpadded = make_params(k_w, D)

    # Default heuristic -> bt = 32, grid = (1,), 256 rows per matmul, single grid step.
    rep, score = hist_att_forward(x_item, user_hist, hist_len, params)
    rep = jax.block_until_ready(rep)
    score = jax.block_until_ready(score)

    rep_ref, score_ref = ref_forward(x_item, user_hist, hist_len, unpadded)
    np.testing.assert_allclose(np.asarray(rep), np.asarray(rep_ref), rtol=1e-5, atol=1e-5)
    np.testing.assert_allclose(np.asarray(score), np.asarray(score_ref), rtol=1e-5, atol=1e-5)

    print("KERNEL_OK")
</pallas_src>

<mosaic_0001>
module attributes {stable_mosaic.version = 11 : i64} {
  func.func @hist_att_kernel(%arg0: i32, %arg1: memref<32x32xf32, #tpu.memory_space<vmem>>, %arg2: memref<32x8x32xf32, #tpu.memory_space<vmem>>, %arg3: memref<32x8x1xf32, #tpu.memory_space<vmem>>, %arg4: memref<32x256xf32, #tpu.memory_space<vmem>>, %arg5: memref<32x256xf32, #tpu.memory_space<vmem>>, %arg6: memref<32x256xf32, #tpu.memory_space<vmem>>, %arg7: memref<1x256xf32, #tpu.memory_space<vmem>>, %arg8: memref<256x128xf32, #tpu.memory_space<vmem>>, %arg9: memref<1x128xf32, #tpu.memory_space<vmem>>, %arg10: memref<1x128xf32, #tpu.memory_space<vmem>>, %arg11: memref<1x1xf32, #tpu.memory_space<smem>>, %arg12: memref<32x32xf32, #tpu.memory_space<vmem>>, %arg13: memref<32x8x1xf32, #tpu.memory_space<vmem>>) attributes {dimension_semantics = [#tpu.dimension_semantics<arbitrary>], iteration_bounds = array<i64: 1>, scalar_prefetch = 0 : i64, scratch_operands = 0 : i64, tpu.core_type = #tpu.core_type<tc>, window_params = [{transform_indices = @transform_0, window_bounds = array<i64: 32, 32>}, {transform_indices = @transform_1, window_bounds = array<i64: 32, 8, 32>}, {transform_indices = @transform_2, window_bounds = array<i64: 32, 8, 1>}, {pipeline_mode = #tpu.pipeline_mode<synchronous>, transform_indices = @transform_3, window_bounds = array<i64: 32, 256>}, {pipeline_mode = #tpu.pipeline_mode<synchronous>, transform_indices = @transform_4, window_bounds = array<i64: 32, 256>}, {pipeline_mode = #tpu.pipeline_mode<synchronous>, transform_indices = @transform_5, window_bounds = array<i64: 32, 256>}, {pipeline_mode = #tpu.pipeline_mode<synchronous>, transform_indices = @transform_6, window_bounds = array<i64: 1, 256>}, {pipeline_mode = #tpu.pipeline_mode<synchronous>, transform_indices = @transform_7, window_bounds = array<i64: 256, 128>}, {pipeline_mode = #tpu.pipeline_mode<synchronous>, transform_indices = @transform_8, window_bounds = array<i64: 1, 128>}, {pipeline_mode = #tpu.pipeline_mode<synchronous>, transform_indices = @transform_9, window_bounds = array<i64: 1, 128>}, {transform_indices = @transform_10, window_bounds = array<i64: 1, 1>}, {transform_indices = @transform_11, window_bounds = array<i64: 32, 32>}, {transform_indices = @transform_12, window_bounds = array<i64: 32, 8, 1>}]} {
    %c0 = arith.constant 0 : index
    %c0_0 = arith.constant 0 : index
    %0 = vector.load %arg1[%c0, %c0_0] : memref<32x32xf32, #tpu.memory_space<vmem>>, vector<32x32xf32>
    %c0_1 = arith.constant 0 : index
    %c0_2 = arith.constant 0 : index
    %c0_3 = arith.constant 0 : index
    %1 = vector.load %arg2[%c0_1, %c0_2, %c0_3] : memref<32x8x32xf32, #tpu.memory_space<vmem>>, vector<32x8x32xf32>
    %2 = vector.shape_cast %1 : vector<32x8x32xf32> to vector<256x32xf32>
    %c0_4 = arith.constant 0 : index
    %c0_5 = arith.constant 0 : index
    %3 = vector.load %arg4[%c0_4, %c0_5] : memref<32x256xf32, #tpu.memory_space<vmem>>, vector<32x256xf32>
    %cst = arith.constant dense<0.000000e+00> : vector<32x256xf32>
    %4 = tpu.matmul %0, %3, %cst {dimension_numbers = #tpu.dot_dimension_numbers<[1], [0], [0], [1], [0, 0, 1, 1], [], []>} : vector<32x32xf32>, vector<32x256xf32>, vector<32x256xf32> -> vector<32x256xf32>
    %c0_6 = arith.constant 0 : index
    %c0_7 = arith.constant 0 : index
    %5 = vector.load %arg5[%c0_6, %c0_7] : memref<32x256xf32, #tpu.memory_space<vmem>>, vector<32x256xf32>
    %cst_8 = arith.constant dense<0.000000e+00> : vector<256x256xf32>
    %6 = tpu.matmul %2, %5, %cst_8 {dimension_numbers = #tpu.dot_dimension_numbers<[1], [0], [0], [1], [0, 0, 1, 1], [], []>} : vector<256x32xf32>, vector<32x256xf32>, vector<256x256xf32> -> vector<256x256xf32>
    %7 = vector.shape_cast %0 : vector<32x32xf32> to vector<32x1x32xf32>
    %8 = vector.broadcast %7 : vector<32x1x32xf32> to vector<32x8x32xf32>
    %9 = arith.mulf %1, %8 : vector<32x8x32xf32>
    %10 = vector.shape_cast %9 : vector<32x8x32xf32> to vector<256x32xf32>
    %c0_9 = arith.constant 0 : index
    %c0_10 = arith.constant 0 : index
    %11 = vector.load %arg6[%c0_9, %c0_10] : memref<32x256xf32, #tpu.memory_space<vmem>>, vector<32x256xf32>
    %cst_11 = arith.constant dense<0.000000e+00> : vector<256x256xf32>
    %12 = tpu.matmul %10, %11, %cst_11 {dimension_numbers = #tpu.dot_dimension_numbers<[1], [0], [0], [1], [0, 0, 1, 1], [], []>} : vector<256x32xf32>, vector<32x256xf32>, vector<256x256xf32> -> vector<256x256xf32>
    %13 = arith.addf %6, %12 : vector<256x256xf32>
    %14 = vector.shape_cast %13 : vector<256x256xf32> to vector<32x8x256xf32>
    %15 = vector.shape_cast %4 : vector<32x256xf32> to vector<32x1x256xf32>
    %16 = vector.broadcast %15 : vector<32x1x256xf32> to vector<32x8x256xf32>
    %17 = arith.addf %14, %16 : vector<32x8x256xf32>
    %c0_12 = arith.constant 0 : index
    %c0_13 = arith.constant 0 : index
    %18 = vector.load %arg7[%c0_12, %c0_13] : memref<1x256xf32, #tpu.memory_space<vmem>>, vector<1x256xf32>
    %19 = vector.shape_cast %18 : vector<1x256xf32> to vector<1x1x256xf32>
    %20 = vector.broadcast %19 : vector<1x1x256xf32> to vector<32x8x256xf32>
    %21 = arith.addf %17, %20 : vector<32x8x256xf32>
    %cst_14 = arith.constant 0.000000e+00 : f32
    %22 = vector.broadcast %cst_14 : f32 to vector<32x8x256xf32>
    %23 = arith.maximumf %21, %22 : vector<32x8x256xf32>
    %24 = vector.shape_cast %23 : vector<32x8x256xf32> to vector<256x256xf32>
    %c0_15 = arith.constant 0 : index
    %c0_16 = arith.constant 0 : index
    %25 = vector.load %arg8[%c0_15, %c0_16] : memref<256x128xf32, #tpu.memory_space<vmem>>, vector<256x128xf32>
    %cst_17 = arith.constant dense<0.000000e+00> : vector<256x128xf32>
    %26 = tpu.matmul %24, %25, %cst_17 {dimension_numbers = #tpu.dot_dimension_numbers<[1], [0], [0], [1], [0, 0, 1, 1], [], []>} : vector<256x256xf32>, vector<256x128xf32>, vector<256x128xf32> -> vector<256x128xf32>
    %c0_18 = arith.constant 0 : index
    %c0_19 = arith.constant 0 : index
    %27 = vector.load %arg9[%c0_18, %c0_19] : memref<1x128xf32, #tpu.memory_space<vmem>>, vector<1x128xf32>
    %28 = vector.broadcast %27 : vector<1x128xf32> to vector<256x128xf32>
    %29 = arith.addf %26, %28 : vector<256x128xf32>
    %cst_20 = arith.constant 0.000000e+00 : f32
    %30 = vector.broadcast %cst_20 : f32 to vector<256x128xf32>
    %31 = arith.maximumf %29, %30 : vector<256x128xf32>
    %32 = vector.shape_cast %31 : vector<256x128xf32> to vector<32x8x128xf32>
    %c0_21 = arith.constant 0 : index
    %c0_22 = arith.constant 0 : index
    %33 = memref.load %arg11[%c0_21, %c0_22] : memref<1x1xf32, #tpu.memory_space<smem>>
    %c0_23 = arith.constant 0 : index
    %c0_24 = arith.constant 0 : index
    %34 = vector.load %arg10[%c0_23, %c0_24] : memref<1x128xf32, #tpu.memory_space<vmem>>, vector<1x128xf32>
    %35 = vector.shape_cast %34 : vector<1x128xf32> to vector<1x1x128xf32>
    %36 = vector.broadcast %35 : vector<1x1x128xf32> to vector<32x8x128xf32>
    %37 = arith.mulf %32, %36 : vector<32x8x128xf32>
    %cst_25 = arith.constant dense<0.000000e+00> : vector<32x8xf32>
    %38 = vector.multi_reduction <add>, %37, %cst_25 [2] : vector<32x8x128xf32> to vector<32x8xf32>
    %39 = vector.shape_cast %38 : vector<32x8xf32> to vector<32x8x1xf32>
    %40 = vector.broadcast %33 : f32 to vector<32x8x1xf32>
    %41 = arith.addf %39, %40 : vector<32x8x1xf32>
    %c0_26 = arith.constant 0 : index
    %c0_27 = arith.constant 0 : index
    %c0_28 = arith.constant 0 : index
    %42 = vector.load %arg3[%c0_26, %c0_27, %c0_28] : memref<32x8x1xf32, #tpu.memory_space<vmem>>, vector<32x8x1xf32>
    %cst_29 = arith.constant 0.000000e+00 : f32
    %43 = vector.broadcast %cst_29 : f32 to vector<32x8x1xf32>
    %44 = arith.cmpf ogt, %42, %43 : vector<32x8x1xf32>
    %cst_30 = arith.constant -1.024000e+03 : f32
    %45 = vector.broadcast %cst_30 : f32 to vector<32x8x1xf32>
    %46 = arith.select %44, %41, %45 : vector<32x8x1xi1>, vector<32x8x1xf32>
    %cst_31 = arith.constant dense<0xFF800000> : vector<32x1xf32>
    %47 = vector.multi_reduction <maximumf>, %46, %cst_31 [1] : vector<32x8x1xf32> to vector<32x1xf32>
    %48 = vector.shape_cast %47 : vector<32x1xf32> to vector<32x1x1xf32>
    %49 = vector.broadcast %48 : vector<32x1x1xf32> to vector<32x8x1xf32>
    %50 = arith.subf %46, %49 : vector<32x8x1xf32>
    %51 = math.exp %50 : vector<32x8x1xf32>
    %cst_32 = arith.constant dense<0.000000e+00> : vector<32x1xf32>
    %52 = vector.multi_reduction <add>, %51, %cst_32 [1] : vector<32x8x1xf32> to vector<32x1xf32>
    %53 = vector.shape_cast %52 : vector<32x1xf32> to vector<32x1x1xf32>
    %54 = vector.broadcast %53 : vector<32x1x1xf32> to vector<32x8x1xf32>
    %55 = arith.divf %51, %54 : vector<32x8x1xf32>
    %56 = vector.broadcast %55 : vector<32x8x1xf32> to vector<32x8x32xf32>
    %57 = arith.mulf %1, %56 : vector<32x8x32xf32>
    %cst_33 = arith.constant dense<0.000000e+00> : vector<32x32xf32>
    %58 = vector.multi_reduction <add>, %57, %cst_33 [1] : vector<32x8x32xf32> to vector<32x32xf32>
    %c0_34 = arith.constant 0 : index
    %c0_35 = arith.constant 0 : index
    %59 = vector.load %arg12[%c0_34, %c0_35] : memref<32x32xf32, #tpu.memory_space<vmem>>, vector<32x32xf32>
    tpu.vector_store %arg12[%c0_34, %c0_35], %58 {strides = array<i32>} : memref<32x32xf32, #tpu.memory_space<vmem>>, vector<32x32xf32>,
    %c0_36 = arith.constant 0 : index
    %c0_37 = arith.constant 0 : index
    %c0_38 = arith.constant 0 : index
    %60 = vector.load %arg13[%c0_36, %c0_37, %c0_38] : memref<32x8x1xf32, #tpu.memory_space<vmem>>, vector<32x8x1xf32>
    tpu.vector_store %arg13[%c0_36, %c0_37, %c0_38], %46 {strides = array<i32>} : memref<32x8x1xf32, #tpu.memory_space<vmem>>, vector<32x8x1xf32>,
    return
  }
  func.func @transform_0(%arg0: i32) -> (i32, i32) {
    %c0_i32 = arith.constant 0 : i32
    %c0_i32_0 = arith.constant 0 : i32
    return %arg0, %c0_i32 : i32, i32
  }
  func.func @transform_1(%arg0: i32) -> (i32, i32, i32) {
    %c0_i32 = arith.constant 0 : i32
    %c0_i32_0 = arith.constant 0 : i32
    %c0_i32_1 = arith.constant 0 : i32
    return %arg0, %c0_i32, %c0_i32_0 : i32, i32, i32
  }
  func.func @transform_2(%arg0: i32) -> (i32, i32, i32) {
    %c0_i32 = arith.constant 0 : i32
    %c0_i32_0 = arith.constant 0 : i32
    %c0_i32_1 = arith.constant 0 : i32
    return %arg0, %c0_i32, %c0_i32_0 : i32, i32, i32
  }
  func.func @transform_3(%arg0: i32) -> (i32, i32) {
    %c0_i32 = arith.constant 0 : i32
    %c0_i32_0 = arith.constant 0 : i32
    %c0_i32_1 = arith.constant 0 : i32
    return %c0_i32, %c0_i32_0 : i32, i32
  }
  func.func @transform_4(%arg0: i32) -> (i32, i32) {
    %c0_i32 = arith.constant 0 : i32
    %c0_i32_0 = arith.constant 0 : i32
    %c0_i32_1 = arith.constant 0 : i32
    return %c0_i32, %c0_i32_0 : i32, i32
  }
  func.func @transform_5(%arg0: i32) -> (i32, i32) {
    %c0_i32 = arith.constant 0 : i32
    %c0_i32_0 = arith.constant 0 : i32
    %c0_i32_1 = arith.constant 0 : i32
    return %c0_i32, %c0_i32_0 : i32, i32
  }
  func.func @transform_6(%arg0: i32) -> (i32, i32) {
    %c0_i32 = arith.constant 0 : i32
    %c0_i32_0 = arith.constant 0 : i32
    %c0_i32_1 = arith.constant 0 : i32
    return %c0_i32, %c0_i32_0 : i32, i32
  }
  func.func @transform_7(%arg0: i32) -> (i32, i32) {
    %c0_i32 = arith.constant 0 : i32
    %c0_i32_0 = arith.constant 0 : i32
    %c0_i32_1 = arith.constant 0 : i32
    return %c0_i32, %c0_i32_0 : i32, i32
  }
  func.func @transform_8(%arg0: i32) -> (i32, i32) {
    %c0_i32 = arith.constant 0 : i32
    %c0_i32_0 = arith.constant 0 : i32
    %c0_i32_1 = arith.constant 0 : i32
    return %c0_i32, %c0_i32_0 : i32, i32
  }
  func.func @transform_9(%arg0: i32) -> (i32, i32) {
    %c0_i32 = arith.constant 0 : i32
    %c0_i32_0 = arith.constant 0 : i32
    %c0_i32_1 = arith.constant 0 : i32
    return %c0_i32, %c0_i32_0 : i32, i32
  }
  func.func @transform_10(%arg0: i32) -> (i32, i32) {
    %c0_i32 = arith.constant 0 : i32
    %c0_i32_0 = arith.constant 0 : i32
    %c0_i32_1 = arith.constant 0 : i32
    return %c0_i32, %c0_i32_0 : i32, i32
  }
  func.func @transform_11(%arg0: i32) -> (i32, i32) {
    %c0_i32 = arith.constant 0 : i32
    %c0_i32_0 = arith.constant 0 : i32
    return %arg0, %c0_i32 : i32, i32
  }
  func.func @transform_12(%arg0: i32) -> (i32, i32, i32) {
    %c0_i32 = arith.constant 0 : i32
    %c0_i32_0 = arith.constant 0 : i32
    %c0_i32_1 = arith.constant 0 : i32
    return %arg0, %c0_i32, %c0_i32_0 : i32, i32, i32
  }
}

</mosaic_0001>

<bundles_post_ra>
// kernel: tpu_custom_call.1
= control target key start
LH: loop header
LB: loop body
LE: loop exit
PB: predicated region body
PF: predicated region fallthrough
CT: control target
= control target key end

     0   :  { %19 = vsyncpa [#allocation4], 0  ;;  %s6145_s0 = inlined_call_operand.hbm [shape: f32[32,32], index: 0, kind: input, shape index: {}]   ;;  %s6146_s1 = inlined_call_operand.vmem [shape: f32[32,8,32], index: 1, kind: input, shape index: {}]   ;;  %s6147_s2 = inlined_call_operand.vmem [shape: f32[32,8,1], index: 2, kind: input, shape index: {}]   ;;  %s6148_s3 = inlined_call_operand.hbm [shape: f32[32,256], index: 3, kind: input, shape index: {}]   ;;  %s6149_s4 = inlined_call_operand.hbm [shape: f32[32,256], index: 4, kind: input, shape index: {}]   ;;  %s6150_s5 = inlined_call_operand.hbm [shape: f32[32,256], index: 5, kind: input, shape index: {}]   ;;  %s6151_s6 = inlined_call_operand.vmem [shape: f32[1,256], index: 6, kind: input, shape index: {}]   ;;  %s6152_s7 = inlined_call_operand.hbm [shape: f32[256,128], index: 7, kind: input, shape index: {}]   ;;  %s6153_s8 = inlined_call_operand.vmem [shape: f32[1,128], index: 8, kind: input, shape index: {}]   ;;  %s6154_s9 = inlined_call_operand.vmem [shape: f32[1,128], index: 9, kind: input, shape index: {}]   ;;  %s6155_s10 = inlined_call_operand.<no memory space> [shape: f32[1,1], index: 10, kind: input, shape index: {}]   ;;  %s6156_s11 = inlined_call_operand.hbm [shape: f32[32,32], index: 11, kind: output, shape index: {0}]   ;;  %s6157_s12 = inlined_call_operand.vmem [shape: f32[32,8,1], index: 12, kind: output, shape index: {1}]  }
   0x1   :  { %20 = vsyncpa [#allocation7], 0 }
   0x2   :  { %21 = vsyncpa [#allocation10], 0 }
   0x3   :  { %22 = vsyncpa [#allocation5], 0  ;;  %s4308_s21 = smov [#allocation6]   ;;  %s4168_s25 = scalar_lea.hbm %s6148_s3, 1024 }
   0x4   :  { %s44_s22 = sshll.u32 %s4308_s21, 4  ;;  %p4169_p0 = scmp.ne.s32.totalorder %s6148_s3, %s4168_s25  ;;  %s45_s22 = int_to_ptr.vmem [resolvable:$true] %s44_s22 }
   0x5   :  { %p4172_p1 = scmp.lt.u32.totalorder %s4168_s25, %s6148_s3 }
   0x7   :  { %p4174_p2 = pnand %p4172_p1, %p4169_p0 }
   0x9   :  { %4177 = shalt.err (!%p4174_p2)
}
   0xa   :  { %s4178_s30 = scalar_lea.vmem %s45_s22, 1024  ;;  %p4183_p4 = scmp.lt.s32.totalorder %s45_s22, %s45_s22 }
   0xb   :  { %p4179_p3 = scmp.ne.s32.totalorder %s45_s22, %s4178_s30  ;;  %p4184_p5 = scmp.lt.s32.totalorder %s4178_s30, %s4178_s30 }
   0xd   :  { %p4185_p6 = por %p4184_p5, %p4183_p4 }
   0xf   :  { %p4186_p7 = pnand %p4185_p6, %p4179_p3 }
  0x11   :  { %4189 = shalt.err (!%p4186_p7)
}
  0x12   :  { %s4309_s13 = smov 256   ;;  %s4310_s14 = smov 16  }
  0x13   :  { %50 = dma.hbm_to_vmem [thread:$0]  %s6148_s3, 1024, %s45_s22, [#allocation7], %s4309_s13, %s4309_s13, %s4310_s14  }
  0x14   :  { %s4311_s17 = smov [#allocation9]   ;;  %s4312_s19 = smov [#allocation3]  }
  0x15   :  { %s68_s18 = sshll.u32 %s4311_s17, 4  ;;  %s28_s20 = sshll.u32 %s4312_s19, 4  ;;  %s69_s18 = int_to_ptr.vmem [resolvable:$true] %s68_s18  ;;  %s29_s20 = int_to_ptr.vmem [resolvable:$true] %s28_s20 }
  0x16   :  { %s4190_s24 = scalar_lea.hbm %s6150_s5, 1024 }
  0x17   :  { %p4191_p8 = scmp.ne.s32.totalorder %s6150_s5, %s4190_s24  ;;  %p4194_p9 = scmp.lt.u32.totalorder %s4190_s24, %s6150_s5 }
  0x19   :  { %p4196_p10 = pnand %p4194_p9, %p4191_p8 }
  0x1b   :  { %4199 = shalt.err (!%p4196_p10)
}
  0x1c   :  { %s4200_s3 = scalar_lea.vmem %s69_s18, 1024  ;;  %p4205_p12 = scmp.lt.s32.totalorder %s69_s18, %s69_s18 }
  0x1d   :  { %p4201_p11 = scmp.ne.s32.totalorder %s69_s18, %s4200_s3  ;;  %p4206_p13 = scmp.lt.s32.totalorder %s4200_s3, %s4200_s3 }
  0x1f   :  { %p4207_p0 = por %p4206_p13, %p4205_p12 }
  0x21   :  { %p4208_p1 = pnand %p4207_p0, %p4201_p11 }
  0x23   :  { %4211 = shalt.err (!%p4208_p1)
}
  0x24   :  { %74 = dma.hbm_to_vmem [thread:$0]  %s6150_s5, 1024, %s69_s18, [#allocation10], %s4309_s13, %s4309_s13, %s4310_s14  }
  0x25   :  { %s4212_s16 = scalar_lea.hbm %s6145_s0, 512 }
  0x26   :  { %p4213_p2 = scmp.ne.s32.totalorder %s6145_s0, %s4212_s16  ;;  %p4216_p3 = scmp.lt.u32.totalorder %s4212_s16, %s6145_s0 }
  0x28   :  { %p4218_p4 = pnand %p4216_p3, %p4213_p2 }
  0x2a   :  { %4221 = shalt.err (!%p4218_p4)
}
  0x2b   :  { %s4222_s24 = scalar_lea.vmem %s29_s20, 512  ;;  %p4227_p6 = scmp.lt.s32.totalorder %s29_s20, %s29_s20 }
  0x2c   :  { %p4223_p5 = scmp.ne.s32.totalorder %s29_s20, %s4222_s24  ;;  %p4228_p7 = scmp.lt.s32.totalorder %s4222_s24, %s4222_s24 }
  0x2e   :  { %p4229_p8 = por %p4228_p7, %p4227_p6 }
  0x30   :  { %p4230_p9 = pnand %p4229_p8, %p4223_p5 }
  0x32   :  { %4233 = shalt.err (!%p4230_p9)
}
  0x33   :  { %s4313_s5 = smov 128   ;;  %s4314_s18 = smov 8  }
  0x34   :  { %34 = dma.hbm_to_vmem [thread:$0]  %s6145_s0, 512, %s29_s20, [#allocation4], %s4313_s5, %s4313_s5, %s4314_s18  }
  0x35   :  { %s4315_s27 = smov [#allocation8]   ;;  %s4316_s3 = smov [#allocation11]  }
  0x36   :  { %s56_s28 = sshll.u32 %s4315_s27, 4  ;;  %s82_s22 = sshll.u32 %s4316_s3, 4  ;;  %s57_s28 = int_to_ptr.vmem [resolvable:$true] %s56_s28  ;;  %s83_s22 = int_to_ptr.vmem [resolvable:$true] %s82_s22 }
  0x37   :  { %s4234_s15 = scalar_lea.hbm %s6149_s4, 1024 }
  0x38   :  { %p4235_p10 = scmp.ne.s32.totalorder %s6149_s4, %s4234_s15  ;;  %p4238_p11 = scmp.lt.u32.totalorder %s4234_s15, %s6149_s4 }
  0x3a   :  { %p4240_p12 = pnand %p4238_p11, %p4235_p10 }
  0x3c   :  { %4243 = shalt.err (!%p4240_p12)
}
  0x3d   :  { %s4244_s0 = scalar_lea.vmem %s57_s28, 1024  ;;  %p4249_p0 = scmp.lt.s32.totalorder %s57_s28, %s57_s28 }
  0x3e   :  { %p4245_p13 = scmp.ne.s32.totalorder %s57_s28, %s4244_s0  ;;  %p4250_p1 = scmp.lt.s32.totalorder %s4244_s0, %s4244_s0 }
  0x40   :  { %p4251_p2 = por %p4250_p1, %p4249_p0 }
  0x42   :  { %p4252_p3 = pnand %p4251_p2, %p4245_p13 }
  0x44   :  { %4255 = shalt.err (!%p4252_p3)
}
  0x45   :  { %62 = dma.hbm_to_vmem [thread:$0]  %s6149_s4, 1024, %s57_s28, [#allocation7], %s4309_s13, %s4309_s13, %s4310_s14  }
  0x46   :  { %s4256_s26 = scalar_lea.hbm %s6152_s7, 4096 }
  0x47   :  { %p4257_p4 = scmp.ne.s32.totalorder %s6152_s7, %s4256_s26  ;;  %p4260_p5 = scmp.lt.u32.totalorder %s4256_s26, %s6152_s7 }
  0x49   :  { %p4262_p6 = pnand %p4260_p5, %p4257_p4 }
  0x4b   :  { %4265 = shalt.err (!%p4262_p6)
}
  0x4c   :  { %s4266_s15 = scalar_lea.vmem %s83_s22, 4096  ;;  %p4271_p8 = scmp.lt.s32.totalorder %s83_s22, %s83_s22 }
  0x4d   :  { %p4267_p7 = scmp.ne.s32.totalorder %s83_s22, %s4266_s15  ;;  %p4272_p9 = scmp.lt.s32.totalorder %s4266_s15, %s4266_s15 }
  0x4f   :  { %p4273_p10 = por %p4272_p9, %p4271_p8 }
  0x51   :  { %p4274_p11 = pnand %p4273_p10, %p4267_p7 }
  0x53   :  { %4277 = shalt.err (!%p4274_p11)
}
  0x54   :  { %88 = dma.hbm_to_vmem [thread:$0]  %s6152_s7, 4096, %s83_s22, [#allocation10], %s4313_s5, %s4313_s5, %s4314_s18  }
  0x55   :  { %4300 = dma.done.wait [#allocation4], 512  }
  0x56   :  { %4301 = vsyncadd [#allocation4], 4294966784 }
  0x57   :  { %4302 = dma.done.wait [#allocation7], 2048  }
  0x58   :  { %4303 = vsyncadd [#allocation7], 4294965248 }
  0x59   :  { %4304 = dma.done.wait [#allocation10], 5120  }
  0x5a   :  { %4305 = vsyncadd [#allocation10], 4294962176  ;;  %v268_v0 = vlaneseq  ;;  %v4317_v1 = vmov 0.0   ;;  %v4318_v2 = vmov 1966171168   ;;  %v653_v7 = vld [vmem:[#allocation9 + $0x8] sm:$0xff] }
  0x5b   :  { %820 = vmatprep.mubr.f32.mxu1 %v4317_v1  ;;  %v266_v3 = vunpack.c.l.s4 %v4318_v2  ;;  %231 = vmatprep.mubr.f32.mxu0 %v4317_v1  ;;  %v655_v8 = vld [vmem:[#allocation9 + $0x18] sm:$0xff]  ;;  %v652_v9 = vld [vmem:[#allocation9] sm:$0xff]  ;;  %v654_v11 = vld [vmem:[#allocation9 + $0x10] sm:$0xff]  ;;  %vm154_vm0 = vcmask 261120   ;;  %vm2627_vm2 = vcmask 7168  }
  0x5c   :  { %v4464_v4 = vshrl.u32 %v268_v0, 7  ;;  %v3860_v10 = vpack.c.bf16 %v655_v8, %v653_v7  ;;  %v657_v12 = vld [vmem:[#allocation9 + $0x28] sm:$0xff]  ;;  %v659_v13 = vld [vmem:[#allocation9 + $0x38] sm:$0xff]  ;;  %v3862_v14 = vpack.c.bf16 %v654_v11, %v652_v9  ;;  %v656_v16 = vld [vmem:[#allocation9 + $0x20] sm:$0xff] }
  0x5d   :  { %v267_v5 = vunpack.c.0.s8 %v266_v3  ;;  %v3864_v15 = vpack.c.bf16 %v659_v13, %v657_v12  ;;  %v658_v17 = vld [vmem:[#allocation9 + $0x30] sm:$0xff]  ;;  %v4469_v18 = vld [vmem:[#allocation3] sm:$0xff]  ;;  %v257_v21 = vld [vmem:[#allocation8 + $0x8] sm:$0xff] }
  0x5e   :  { %3861 = vmatprep.subr.bf16.mxu1 %v3860_v10  ;;  %v4474_v20 = vsub.s32 0, %v4464_v4  ;;  %v259_v22 = vld [vmem:[#allocation8 + $0x18] sm:$0xff]  ;;  %v3866_v23 = vpack.c.bf16 %v658_v17, %v656_v16  ;;  %v256_v26 = vld [vmem:[#allocation8] sm:$0xff]  ;;  %v258_v27 = vld [vmem:[#allocation8 + $0x10] sm:$0xff]  ;;  %v264_v30 = vcombine.high %v4469_v18, %v4469_v18 }
  0x5f   :  { %v4467_v6 = vsub.s32 %v267_v5, %v4464_v4  ;;  %3863 = vmatpush1.bf16.msra.mxu1 %v3862_v14  ;;  %v3868_v25 = vpack.c.bf16 %v259_v22, %v257_v21  ;;  %v4480_v29 = vld [vmem:[%s6146_s1] sm:$0xff]  ;;  %v3870_v34 = vpack.c.bf16 %v258_v27, %v256_v26  ;;  %v4489_v35 = vld [vmem:[%s6146_s1 + $0x8] sm:$0xff]  ;;  %v4501_v42 = vld [vmem:[%s6146_s1 + $0x10] sm:$0xff] }
  0x60   :  { %3865 = vmatprep.subr.bf16.mxu1 %v3864_v15  ;;  %v261_v44 = vld [vmem:[#allocation8 + $0x28] sm:$0xff]  ;;  %v263_v45 = vld [vmem:[#allocation8 + $0x38] sm:$0xff]  ;;  %v260_v50 = vld [vmem:[#allocation8 + $0x20] sm:$0xff] }
  0x61   :  { %v271_v19 = vrot.slane %v4469_v18, %v4467_v6  ;;  %v278_v38 = vrot.slane %v264_v30, %v4467_v6  ;;  %v4511_v49 = vld [vmem:[%s6146_s1 + $0x18] sm:$0xff]  ;;  %v262_v51 = vld [vmem:[#allocation8 + $0x30] sm:$0xff]  ;;  %v3872_v52 = vpack.c.bf16 %v263_v45, %v261_v44  ;;  %v4521_v57 = vld [vmem:[%s6146_s1 + $0x20] sm:$0xff] }
  0x62   :  { %v3874_v56 = vpack.c.bf16 %v262_v51, %v260_v50  ;;  %v147_v58 = vld [vmem:[#allocation6 + $0x8] sm:$0xff]  ;;  %v149_v59 = vld [vmem:[#allocation6 + $0x18] sm:$0xff]  ;;  %v4540_v9 = vld [vmem:[%s6146_s1 + $0x30] sm:$0xff] }
  0x63   :  { %v287_v24 = vrot.slane %v271_v19, %v4467_v6  ;;  %v279_v28 = vcombine.high %v271_v19, %v271_v19  ;;  %3867 = vmatpush1.bf16.msra.mxu1 %v3866_v23  ;;  %v294_v43 = vrot.slane %v278_v38, %v4467_v6  ;;  %v280_v48 = vcombine.high %v278_v38, %v278_v38  ;;  %v111_v63 = vld [vmem:[#allocation3 + $0x8] sm:$0xff]  ;;  %v146_v10 = vld [vmem:[#allocation6] sm:$0xff]  ;;  %v148_v11 = vld [vmem:[#allocation6 + $0x10] sm:$0xff] }
  0x64   :  { %3869 = vmatprep.subr.bf16.mxu1 %v3868_v25  ;;  %v4530_v0 = vld [vmem:[%s6146_s1 + $0x28] sm:$0xff]  ;;  %v3852_v2 = vpack.c.bf16 %v149_v59, %v147_v58  ;;  %v320_v3 = vrot.slane %v111_v63, %v4467_v6  ;;  %v153_v13 = vld [vmem:[#allocation6 + $0x38] sm:$0xff]  ;;  %v150_v15 = vld [vmem:[#allocation6 + $0x20] sm:$0xff]  ;;  %v3854_v22 = vpack.c.bf16 %v148_v11, %v146_v10 }
  0x65   :  { %v463_v31 = vrot.slane %v287_v24, %v4474_v20  ;;  %v301_v32 = vrot.slane %v279_v28, %v4467_v6  ;;  %v309_v33 = vcombine.high %v287_v24, %v287_v24  ;;  %v479_v53 = vrot.slane %v294_v43, %v4474_v20  ;;  %v151_v12 = vld [vmem:[#allocation6 + $0x28] sm:$0xff]  ;;  %v152_v16 = vld [vmem:[#allocation6 + $0x30] sm:$0xff]  ;;  %v4550_v23 = vld [vmem:[%s6146_s1 + $0x38] sm:$0xff] }
  0x66   :  { %v308_v55 = vrot.slane %v280_v48, %v4467_v6  ;;  %v310_v62 = vcombine.high %v294_v43, %v294_v43  ;;  %3853 = vmatprep.subr.bf16.mxu0 %v3852_v2  ;;  %v336_v14 = vrot.slane %v320_v3, %v4467_v6  ;;  %v328_v21 = vcombine.high %v320_v3, %v320_v3  ;;  %v4560_v30 = vld [vmem:[%s6146_s1 + $0x40] sm:$0xff]  ;;  %v4619_v58 = vld [vmem:[%s6146_s1 + $0x68] sm:$0xff] }
  0x67   :  { %v620_v36 = vmul.f32 %v463_v31, %v4480_v29  ;;  %v467_v37 = vrot.slane %v301_v32, %v4474_v20  ;;  %v471_v40 = vrot.slane %v309_v33, %v4474_v20  ;;  %v311_v41 = vcombine.high %v301_v32, %v301_v32  ;;  %3855 = vmatpush1.bf16.msra.mxu0 %v3854_v22 }
  0x68   :  { %v624_v60 = vmul.f32 %v479_v53, %v4521_v57  ;;  %v483_v61 = vrot.slane %v308_v55, %v4474_v20  ;;  %v487_v7 = vrot.slane %v310_v62, %v4474_v20  ;;  %v312_v8 = vcombine.high %v308_v55, %v308_v55  ;;  %v4608_v53 = vld [vmem:[%s6146_s1 + $0x60] sm:$0xff] }
  0x69   :  { %3786 = vmatmul.mubr.msk.f32.vlgmr.msra.gmra.mrb[0].mxu1 %vm154_vm0, %v620_v36  ;;  %v621_v39 = vmul.f32 %v467_v37, %v4489_v35  ;;  %v622_v46 = vmul.f32 %v471_v40, %v4501_v42  ;;  %v475_v47 = vrot.slane %v311_v41, %v4474_v20  ;;  %v3856_v24 = vpack.c.bf16 %v153_v13, %v151_v12  ;;  %v4569_v36 = vld [vmem:[%s6146_s1 + $0x48] sm:$0xff]  ;;  %v4582_v41 = vld [vmem:[%s6146_s1 + $0x50] sm:$0xff]  ;;  %v4649_v13 = vld [vmem:[%s6146_s1 + $0x80] sm:$0xff] }
  0x6a   :  { %3871 = vmatpush1.bf16.msra.mxu1 %v3870_v34  ;;  %826 = vmatprep.mubr.f32.mxu1 %v4317_v1  ;;  %v625_v5 = vmul.f32 %v483_v61, %v4530_v0  ;;  %v626_v17 = vmul.f32 %v487_v7, %v4540_v9  ;;  %v491_v19 = vrot.slane %v312_v8, %v4474_v20  ;;  %v4639_v8 = vld [vmem:[%s6146_s1 + $0x78] sm:$0xff] }
  0x6b   :  { %v623_v54 = vmul.f32 %v475_v47, %v4511_v49  ;;  %3873 = vmatprep.subr.bf16.mxu1 %v3872_v52  ;;  %v3858_v25 = vpack.c.bf16 %v152_v16, %v150_v15  ;;  %3857 = vmatprep.subr.bf16.mxu0 %v3856_v24  ;;  %v495_v27 = vrot.slane %v336_v14, %v4474_v20  ;;  %v4594_v47 = vld [vmem:[%s6146_s1 + $0x58] sm:$0xff] }
  0x6c   :  { %v627_v26 = vmul.f32 %v491_v19, %v4550_v23  ;;  %v350_v28 = vrot.slane %v328_v21, %v4467_v6  ;;  %v358_v33 = vcombine.high %v336_v14, %v336_v14  ;;  %v313_v34 = vcombine.high %v111_v63, %v111_v63  ;;  %v4602_v52 = vld [vmem:[#allocation3 + $0x18] sm:$0xff]  ;;  %v4658_v19 = vld [vmem:[%s6146_s1 + $0x88] sm:$0xff] }
  0x6d   :  { %3787 = vmatmul.mubr.msk.f32.gmra.mrb[2].mxu1 %vm154_vm0, %v621_v39  ;;  %3859 = vmatpush1.bf16.msra.mxu0 %v3858_v25  ;;  %v628_v31 = vmul.f32 %v495_v27, %v4560_v30 }
  0x6e   :  { %832 = vmatprep.mubr.f32.mxu1 %v4317_v1  ;;  %3875 = vmatpush1.bf16.msra.mxu1 %v3874_v56  ;;  %v499_v32 = vrot.slane %v350_v28, %v4474_v20  ;;  %v503_v38 = vrot.slane %v358_v33, %v4474_v20  ;;  %v360_v39 = vcombine.high %v350_v28, %v350_v28  ;;  %v4678_v33 = vld [vmem:[%s6146_s1 + $0x98] sm:$0xff] }
  0x6f   :  { %v327_v40 = vrot.slane %v313_v34, %v4467_v6 }
  0x70   :  { %3782 = vmatmul.mubr.msk.f32.vlgmr.msra.gmra.mrb[0].mxu0 %vm154_vm0, %v4469_v18  ;;  %v629_v37 = vmul.f32 %v499_v32, %v4569_v36  ;;  %v630_v18 = vmul.f32 %v503_v38, %v4582_v41  ;;  %v507_v43 = vrot.slane %v360_v39, %v4474_v20  ;;  %v4688_v39 = vld [vmem:[%s6146_s1 + $0xa0] sm:$0xff] }
  0x71   :  { %3788 = vmatmul.mubr.msk.f32.gmra.mrb[4].mxu1 %vm154_vm0, %v622_v46  ;;  %237 = vmatprep.mubr.f32.mxu0 %v4317_v1  ;;  %v343_v44 = vrot.slane %v327_v40, %v4467_v6  ;;  %v329_v45 = vcombine.high %v327_v40, %v327_v40  ;;  %v112_v46 = vld [vmem:[#allocation3 + $0x10] sm:$0xff] }
  0x72   :  { %838 = vmatprep.mubr.f32.mxu1 %v4317_v1  ;;  %v631_v48 = vmul.f32 %v507_v43, %v4594_v47  ;;  %v369_v62 = vrot.slane %v112_v46, %v4467_v6 }
  0x73   :  { %v511_v50 = vrot.slane %v343_v44, %v4474_v20  ;;  %v357_v51 = vrot.slane %v329_v45, %v4467_v6  ;;  %v359_v56 = vcombine.high %v343_v44, %v343_v44  ;;  %v4697_v44 = vld [vmem:[%s6146_s1 + $0xa8] sm:$0xff] }
  0x74   :  { %3783 = vmatmul.mubr.msk.f32.gmra.mrb[2].mxu0 %vm154_vm0, %v111_v63  ;;  %v4629_v63 = vld [vmem:[%s6146_s1 + $0x70] sm:$0xff]  ;;  %v377_v7 = vcombine.high %v369_v62, %v369_v62 }
  0x75   :  { %3789 = vmatmul.mubr.msk.f32.gmra.mrb[6].mxu1 %vm154_vm0, %v623_v54  ;;  %243 = vmatprep.mubr.f32.mxu0 %v4317_v1  ;;  %v632_v54 = vmul.f32 %v511_v50, %v4608_v53  ;;  %v515_v55 = vrot.slane %v357_v51, %v4474_v20  ;;  %v361_v61 = vcombine.high %v357_v51, %v357_v51  ;;  %v4708_v51 = vld [vmem:[%s6146_s1 + $0xb0] sm:$0xff] }
  0x76   :  { %844 = vmatprep.mubr.f32.mxu1 %v4317_v1  ;;  %v399_v12 = vrot.slane %v377_v7, %v4467_v6  ;;  %v418_v50 = vrot.slane %v4602_v52, %v4467_v6 }
  0x77   :  { %v633_v59 = vmul.f32 %v515_v55, %v4619_v58  ;;  %v523_v3 = vrot.slane %v361_v61, %v4474_v20 }
  0x78   :  { %3784 = vmatmul.mubr.msk.f32.gmra.mrb[4].mxu0 %vm154_vm0, %v112_v46  ;;  %v531_v15 = vrot.slane %v399_v12, %v4474_v20  ;;  %v409_v24 = vcombine.high %v399_v12, %v399_v12  ;;  %v4739_v12 = vld [vmem:[%s6146_s1 + $0xc8] sm:$0xff] }
  0x79   :  { %3790 = vmatmul.mubr.msk.f32.gmra.mrb[8].mxu1 %vm154_vm0, %v624_v60  ;;  %249 = vmatprep.mubr.f32.mxu0 %v4317_v1  ;;  %v519_v60 = vrot.slane %v359_v56, %v4474_v20  ;;  %v635_v10 = vmul.f32 %v523_v3, %v4639_v8  ;;  %v434_v56 = vrot.slane %v418_v50, %v4467_v6  ;;  %v4728_v3 = vld [vmem:[%s6146_s1 + $0xc0] sm:$0xff] }
  0x7a   :  { %850 = vmatprep.mubr.f32.mxu1 %v4317_v1  ;;  %v637_v21 = vmul.f32 %v531_v15, %v4658_v19  ;;  %v539_v28 = vrot.slane %v409_v24, %v4474_v20 }
  0x7b   :  { %v634_v2 = vmul.f32 %v519_v60, %v4629_v63  ;;  %v4718_v60 = vld [vmem:[%s6146_s1 + $0xb8] sm:$0xff] }
  0x7c   :  { %3785 = vmatmul.mubr.msk.f32.gmra.mrb[6].mxu0 %vm154_vm0, %v4602_v52  ;;  %v639_v34 = vmul.f32 %v539_v28, %v4678_v33 }
  0x7d   :  { %3791 = vmatmul.mubr.msk.f32.gmra.mrb[10].mxu1 %vm154_vm0, %v625_v5  ;;  %v385_v5 = vrot.slane %v369_v62, %v4467_v6  ;;  %v559_v62 = vrot.slane %v434_v56, %v4474_v20 }
  0x7e   :  { %856 = vmatprep.mubr.f32.mxu1 %v4317_v1 }
  0x7f   :  { %v527_v11 = vrot.slane %v385_v5, %v4474_v20  ;;  %v407_v16 = vcombine.high %v385_v5, %v385_v5  ;;  %v644_v5 = vmul.f32 %v559_v62, %v4728_v3  ;;  %v2100_v62 = vld [vmem:[#allocation11 + $0x10] sm:$0xff] }
  0x81   :  { %3792 = vmatmul.mubr.msk.f32.gmra.mrb[12].mxu1 %vm154_vm0, %v626_v17  ;;  %v636_v14 = vmul.f32 %v527_v11, %v4649_v13  ;;  %v362_v17 = vcombine.high %v112_v46, %v112_v46  ;;  %v535_v22 = vrot.slane %v407_v16, %v4474_v20  ;;  %v411_v11 = vcombine.high %v4602_v52, %v4602_v52  ;;  %v4749_v52 = vld [vmem:[%s6146_s1 + $0xd0] sm:$0xff] }
  0x82   :  { %862 = vmatprep.mubr.f32.mxu1 %v4317_v1 }
  0x83   :  { %v376_v25 = vrot.slane %v362_v17, %v4467_v6  ;;  %v425_v17 = vrot.slane %v411_v11, %v4467_v6  ;;  %v2102_v11 = vld [vmem:[#allocation11 + $0x20] sm:$0xff] }
  0x85   :  { %3793 = vmatmul.mubr.msk.f32.gmra.mrb[14].mxu1 %vm154_vm0, %v627_v26  ;;  %v4668_v26 = vld [vmem:[%s6146_s1 + $0x90] sm:$0xff]  ;;  %v378_v32 = vcombine.high %v376_v25, %v376_v25  ;;  %v441_v24 = vrot.slane %v425_v17, %v4467_v6 }
  0x86   :  { %868 = vmatprep.mubr.f32.mxu1 %v4317_v1  ;;  %v638_v27 = vmul.f32 %v535_v22, %v4668_v26 }
  0x87   :  { %v406_v38 = vrot.slane %v378_v32, %v4467_v6 }
  0x89   :  { %3794 = vmatmul.mubr.msk.f32.gmra.mrb[16].mxu1 %vm154_vm0, %v628_v31  ;;  %v392_v31 = vrot.slane %v376_v25, %v4467_v6  ;;  %v427_v25 = vcombine.high %v425_v17, %v425_v17  ;;  %v2105_v17 = vld [vmem:[#allocation11 + $0x38] sm:$0xff] }
  0x8a   :  { %874 = vmatprep.mubr.f32.mxu1 %v4317_v1 }
  0x8b   :  { %v408_v43 = vcombine.high %v392_v31, %v392_v31  ;;  %v455_v32 = vrot.slane %v427_v25, %v4467_v6  ;;  %v2109_v25 = vld [vmem:[#allocation11 + $0x58] sm:$0xff] }
  0x8d   :  { %3795 = vmatmul.mubr.msk.f32.gmra.mrb[18].mxu1 %vm154_vm0, %v629_v37  ;;  %v543_v37 = vrot.slane %v392_v31, %v4474_v20  ;;  %v551_v46 = vrot.slane %v408_v43, %v4474_v20  ;;  %v575_v31 = vrot.slane %v441_v24, %v4474_v20 }
  0x8e   :  { %880 = vmatprep.mubr.f32.mxu1 %v4317_v1 }
  0x8f   :  { %v640_v40 = vmul.f32 %v543_v37, %v4688_v39 }
  0x91   :  { %3796 = vmatmul.mubr.msk.f32.gmra.mrb[20].mxu1 %vm154_vm0, %v630_v18  ;;  %v547_v18 = vrot.slane %v406_v38, %v4474_v20 }
  0x92   :  { %886 = vmatprep.mubr.f32.mxu1 %v4317_v1 }
  0x93   :  { %v641_v45 = vmul.f32 %v547_v18, %v4697_v44  ;;  %v4778_v18 = vld [vmem:[%s6146_s1 + $0xe8] sm:$0xff] }
  0x95   :  { %3797 = vmatmul.mubr.msk.f32.gmra.mrb[22].mxu1 %vm154_vm0, %v631_v48  ;;  %v410_v48 = vcombine.high %v406_v38, %v406_v38  ;;  %v579_v38 = vrot.slane %v455_v32, %v4474_v20 }
  0x96   :  { %892 = vmatprep.mubr.f32.mxu1 %v4317_v1 }
  0x97   :  { %v555_v55 = vrot.slane %v410_v48, %v4474_v20  ;;  %v649_v43 = vmul.f32 %v579_v38, %v4778_v18  ;;  %v4787_v48 = vld [vmem:[%s6146_s1 + $0xf0] sm:$0xff] }
  0x99   :  { %3798 = vmatmul.mubr.msk.f32.gmra.mrb[24].mxu1 %vm154_vm0, %v632_v54  ;;  %v642_v54 = vmul.f32 %v551_v46, %v4708_v51  ;;  %v643_v61 = vmul.f32 %v555_v55, %v4718_v60  ;;  %v459_v46 = vcombine.high %v455_v32, %v455_v32  ;;  %v4796_v55 = vld [vmem:[%s6146_s1 + $0xf8] sm:$0xff] }
  0x9a   :  { %898 = vmatprep.mubr.f32.mxu1 %v4317_v1 }
  0x9d   :  { %3799 = vmatmul.mubr.msk.f32.gmra.mrb[26].mxu1 %vm154_vm0, %v633_v59  ;;  %v426_v59 = vcombine.high %v418_v50, %v418_v50 }
  0x9e   :  { %904 = vmatprep.mubr.f32.mxu1 %v4317_v1 }
  0xa1   :  { %3800 = vmatmul.mubr.msk.f32.gmra.mrb[28].mxu1 %vm154_vm0, %v634_v2  ;;  %v448_v2 = vrot.slane %v426_v59, %v4467_v6  ;;  %v2098_v59 = vld [vmem:[#allocation11] sm:$0xff] }
  0xa2   :  { %910 = vmatprep.mubr.f32.mxu1 %v4317_v1 }
  0xa3   :  { %v563_v7 = vrot.slane %v448_v2, %v4474_v20  ;;  %v458_v16 = vcombine.high %v448_v2, %v448_v2  ;;  %v4319_v2 = vmov 0.0|0.0  }
  0xa4   :  { %3876 = vmatprep.subr.bf16.mxu0 %v4319_v2 }
  0xa5   :  { %3801 = vmatmul.mubr.msk.f32.gmra.mrb[30].mxu1 %vm154_vm0, %v635_v10  ;;  %v456_v10 = vcombine.high %v434_v56, %v434_v56  ;;  %v571_v22 = vrot.slane %v458_v16, %v4474_v20  ;;  %v2104_v16 = vld [vmem:[#allocation11 + $0x30] sm:$0xff] }
  0xa6   :  { %916 = vmatprep.mubr.f32.mxu1 %v4317_v1 }
  0xa7   :  { %v567_v15 = vrot.slane %v456_v10, %v4474_v20 }
  0xa9   :  { %3802 = vmatmul.mubr.msk.f32.gmra.mrb[32].mxu1 %vm154_vm0, %v636_v14  ;;  %v645_v14 = vmul.f32 %v563_v7, %v4739_v12  ;;  %v2101_v7 = vld [vmem:[#allocation11 + $0x18] sm:$0xff] }
  0xaa   :  { %922 = vmatprep.mubr.f32.mxu1 %v4317_v1  ;;  %v3880_v10 = vpack.c.bf16 %v2101_v7, %v2100_v62 }
  0xad   :  { %3803 = vmatmul.mubr.msk.f32.gmra.mrb[34].mxu1 %vm154_vm0, %v637_v21  ;;  %v646_v21 = vmul.f32 %v567_v15, %v4749_v52 }
  0xae   :  { %928 = vmatprep.mubr.f32.mxu1 %v4317_v1 }
  0xb1   :  { %3804 = vmatmul.mubr.msk.f32.gmra.mrb[36].mxu1 %vm154_vm0, %v638_v27  ;;  %v4759_v27 = vld [vmem:[%s6146_s1 + $0xd8] sm:$0xff] }
  0xb2   :  { %934 = vmatprep.mubr.f32.mxu1 %v4317_v1  ;;  %v647_v28 = vmul.f32 %v571_v22, %v4759_v27  ;;  %v2107_v22 = vld [vmem:[#allocation11 + $0x48] sm:$0xff] }
  0xb5   :  { %3805 = vmatmul.mubr.msk.f32.gmra.mrb[38].mxu1 %vm154_vm0, %v639_v34  ;;  %v4769_v34 = vld [vmem:[%s6146_s1 + $0xe0] sm:$0xff] }
  0xb6   :  { %940 = vmatprep.mubr.f32.mxu1 %v4317_v1  ;;  %v648_v37 = vmul.f32 %v575_v31, %v4769_v34  ;;  %v2111_v31 = vld [vmem:[#allocation11 + $0x68] sm:$0xff] }
  0xb9   :  { %3806 = vmatmul.mubr.msk.f32.gmra.mrb[40].mxu1 %vm154_vm0, %v640_v40  ;;  %v457_v40 = vcombine.high %v441_v24, %v441_v24 }
  0xba   :  { %946 = vmatprep.mubr.f32.mxu1 %v4317_v1 }
  0xbd   :  { %3807 = vmatmul.mubr.msk.f32.gmra.mrb[42].mxu1 %vm154_vm0, %v641_v45  ;;  %v583_v45 = vrot.slane %v457_v40, %v4474_v20  ;;  %v2115_v40 = vld [vmem:[#allocation11 + $0x88] sm:$0xff] }
  0xbe   :  { %952 = vmatprep.mubr.f32.mxu1 %v4317_v1 }
  0xbf   :  { %v650_v50 = vmul.f32 %v583_v45, %v4787_v48  ;;  %v2117_v45 = vld [vmem:[#allocation11 + $0x98] sm:$0xff] }
  0xc1   :  { %3808 = vmatmul.mubr.msk.f32.gmra.mrb[44].mxu1 %vm154_vm0, %v642_v54  ;;  %v587_v54 = vrot.slane %v459_v46, %v4474_v20 }
  0xc2   :  { %958 = vmatprep.mubr.f32.mxu1 %v4317_v1 }
  0xc3   :  { %v651_v56 = vmul.f32 %v587_v54, %v4796_v55 }
  0xc5   :  { %3809 = vmatmul.mubr.msk.f32.gmra.mrb[46].mxu1 %vm154_vm0, %v643_v61  ;;  %v2099_v61 = vld [vmem:[#allocation11 + $0x8] sm:$0xff] }
  0xc6   :  { %964 = vmatprep.mubr.f32.mxu1 %v4317_v1 }
  0xc9   :  { %3810 = vmatmul.mubr.msk.f32.gmra.mrb[48].mxu1 %vm154_vm0, %v644_v5  ;;  %v3877_v5 = vpack.c.bf16 %v2099_v61, %v2098_v59  ;;  %v2123_v61 = vld [vmem:[#allocation11 + $0xc8] sm:$0xff] }
  0xca   :  { %970 = vmatprep.mubr.f32.mxu1 %v4317_v1 }
  0xcb   :  { %3878 = vmatpush1.bf16.msra.mxu0 %v3877_v5  ;;  %v2125_v5 = vld [vmem:[#allocation11 + $0xd8] sm:$0xff] }
  0xcc   :  { %3879 = vmatprep.subr.bf16.mxu0 %v4319_v2 }
  0xcd   :  { %3811 = vmatmul.mubr.msk.f32.gmra.mrb[50].mxu1 %vm154_vm0, %v645_v14  ;;  %v2103_v14 = vld [vmem:[#allocation11 + $0x28] sm:$0xff] }
  0xce   :  { %976 = vmatprep.mubr.f32.mxu1 %v4317_v1  ;;  %v3883_v15 = vpack.c.bf16 %v2103_v14, %v2102_v11  ;;  %v1958_v14 = vld [vmem:[%s6151_s6] sm:$0x3] }
  0xcf   :  { %3881 = vmatpush1.bf16.msra.mxu0 %v3880_v10  ;;  %v4941_v10 = vsub.s32 1, %v4464_v4 }
  0xd0   :  { %3882 = vmatprep.subr.bf16.mxu0 %v4319_v2 }
  0xd1   :  { %3812 = vmatmul.mubr.msk.f32.gmra.mrb[52].mxu1 %vm154_vm0, %v646_v21  ;;  %v3886_v21 = vpack.c.bf16 %v2105_v17, %v2104_v16  ;;  %v4949_v17 = vrot.slane %v1958_v14, %v4474_v20 }
  0xd2   :  { %982 = vmatprep.mubr.f32.mxu1 %v4317_v1 }
  0xd3   :  { %3884 = vmatpush1.bf16.msra.mxu0 %v3883_v15 }
  0xd4   :  { %3885 = vmatprep.subr.bf16.mxu0 %v4319_v2 }
  0xd5   :  { %3813 = vmatmul.mubr.msk.f32.gmra.mrb[54].mxu1 %vm154_vm0, %v647_v28 }
  0xd6   :  { %988 = vmatprep.mubr.f32.mxu1 %v4317_v1 }
  0xd7   :  { %3887 = vmatpush1.bf16.msra.mxu0 %v3886_v21 }
  0xd8   :  { %3888 = vmatprep.subr.bf16.mxu0 %v4319_v2 }
  0xd9   :  { %3814 = vmatmul.mubr.msk.f32.gmra.mrb[56].mxu1 %vm154_vm0, %v648_v37  ;;  %v2113_v37 = vld [vmem:[#allocation11 + $0x78] sm:$0xff] }
  0xda   :  { %994 = vmatprep.mubr.f32.mxu1 %v4317_v1 }
  0xdd   :  { %3815 = vmatmul.mubr.msk.f32.gmra.mrb[58].mxu1 %vm154_vm0, %v649_v43 }
  0xde   :  { %1000 = vmatprep.mubr.f32.mxu1 %v4317_v1 }
  0xe1   :  { %3816 = vmatmul.mubr.msk.f32.gmra.mrb[60].mxu1 %vm154_vm0, %v650_v50  ;;  %v2119_v50 = vld [vmem:[#allocation11 + $0xa8] sm:$0xff] }
  0xe2   :  { %1006 = vmatprep.mubr.f32.mxu1 %v4317_v1 }
  0xe5   :  { %3817 = vmatmul.mubr.msk.f32.gmra.mrb[62].mxu1 %vm154_vm0, %v651_v56  ;;  %v2121_v56 = vld [vmem:[#allocation11 + $0xb8] sm:$0xff] }
  0xe6   :  { %1173 = vmatprep.mubr.f32.mxu1 %v4317_v1 }
  0xe9   :  { %3818 = vmatmul.mubr.msk.f32.vlgmr.msra.gmra.mrb[0].mxu1 %vm154_vm0, %v4480_v29  ;;  %v2106_v29 = vld [vmem:[#allocation11 + $0x40] sm:$0xff] }
  0xea   :  { %1179 = vmatprep.mubr.f32.mxu1 %v4317_v1  ;;  %v3889_v24 = vpack.c.bf16 %v2107_v22, %v2106_v29  ;;  %v4953_v22 = vrot.slane %v1958_v14, %v4941_v10 }
  0xec   :  { %3890 = vmatpush1.bf16.msra.mxu0 %v3889_v24 }
  0xed   :  { %3819 = vmatmul.mubr.msk.f32.gmra.mrb[2].mxu1 %vm154_vm0, %v4489_v35  ;;  %v2108_v35 = vld [vmem:[#allocation11 + $0x50] sm:$0xff]  ;;  %3891 = vmatprep.subr.bf16.mxu0 %v4319_v2 }
  0xee   :  { %1185 = vmatprep.mubr.f32.mxu1 %v4317_v1  ;;  %v3892_v28 = vpack.c.bf16 %v2109_v25, %v2108_v35 }
  0xf0   :  { %3893 = vmatpush1.bf16.msra.mxu0 %v3892_v28 }
  0xf1   :  { %3820 = vmatmul.mubr.msk.f32.gmra.mrb[4].mxu1 %vm154_vm0, %v4501_v42  ;;  %v2110_v42 = vld [vmem:[#allocation11 + $0x60] sm:$0xff]  ;;  %3894 = vmatprep.subr.bf16.mxu0 %v4319_v2 }
  0xf2   :  { %1191 = vmatprep.mubr.f32.mxu1 %v4317_v1  ;;  %v3895_v32 = vpack.c.bf16 %v2111_v31, %v2110_v42 }
  0xf4   :  { %3896 = vmatpush1.bf16.msra.mxu0 %v3895_v32 }
  0xf5   :  { %3821 = vmatmul.mubr.msk.f32.gmra.mrb[6].mxu1 %vm154_vm0, %v4511_v49  ;;  %v2112_v49 = vld [vmem:[#allocation11 + $0x70] sm:$0xff]  ;;  %3897 = vmatprep.subr.bf16.mxu0 %v4319_v2 }
  0xf6   :  { %1197 = vmatprep.mubr.f32.mxu1 %v4317_v1  ;;  %v3898_v38 = vpack.c.bf16 %v2113_v37, %v2112_v49 }
  0xf8   :  { %3899 = vmatpush1.bf16.msra.mxu0 %v3898_v38 }
  0xf9   :  { %3822 = vmatmul.mubr.msk.f32.gmra.mrb[8].mxu1 %vm154_vm0, %v4521_v57  ;;  %v2114_v57 = vld [vmem:[#allocation11 + $0x80] sm:$0xff]  ;;  %3900 = vmatprep.subr.bf16.mxu0 %v4319_v2 }
  0xfa   :  { %1203 = vmatprep.mubr.f32.mxu1 %v4317_v1  ;;  %v3901_v43 = vpack.c.bf16 %v2115_v40, %v2114_v57 }
  0xfc   :  { %3902 = vmatpush1.bf16.msra.mxu0 %v3901_v43 }
  0xfd   :  { %3823 = vmatmul.mubr.msk.f32.gmra.mrb[10].mxu1 %vm154_vm0, %v4530_v0  ;;  %v2116_v0 = vld [vmem:[#allocation11 + $0x90] sm:$0xff]  ;;  %3903 = vmatprep.subr.bf16.mxu0 %v4319_v2 }
  0xfe   :  { %1209 = vmatprep.mubr.f32.mxu1 %v4317_v1  ;;  %v3904_v46 = vpack.c.bf16 %v2117_v45, %v2116_v0 }
 0x100   :  { %3905 = vmatpush1.bf16.msra.mxu0 %v3904_v46 }
 0x101   :  { %3824 = vmatmul.mubr.msk.f32.gmra.mrb[12].mxu1 %vm154_vm0, %v4540_v9  ;;  %v2118_v9 = vld [vmem:[#allocation11 + $0xa0] sm:$0xff]  ;;  %3906 = vmatprep.subr.bf16.mxu0 %v4319_v2 }
 0x102   :  { %1215 = vmatprep.mubr.f32.mxu1 %v4317_v1  ;;  %v3907_v54 = vpack.c.bf16 %v2119_v50, %v2118_v9 }
 0x104   :  { %3908 = vmatpush1.bf16.msra.mxu0 %v3907_v54 }
 0x105   :  { %3825 = vmatmul.mubr.msk.f32.gmra.mrb[14].mxu1 %vm154_vm0, %v4550_v23  ;;  %v2120_v23 = vld [vmem:[#allocation11 + $0xb0] sm:$0xff]  ;;  %3909 = vmatprep.subr.bf16.mxu0 %v4319_v2 }
 0x106   :  { %1221 = vmatprep.mubr.f32.mxu1 %v4317_v1  ;;  %v3910_v59 = vpack.c.bf16 %v2121_v56, %v2120_v23 }
 0x108   :  { %3911 = vmatpush1.bf16.msra.mxu0 %v3910_v59 }
 0x109   :  { %3826 = vmatmul.mubr.msk.f32.gmra.mrb[16].mxu1 %vm154_vm0, %v4560_v30  ;;  %v2122_v30 = vld [vmem:[#allocation11 + $0xc0] sm:$0xff]  ;;  %3912 = vmatprep.subr.bf16.mxu0 %v4319_v2 }
 0x10a   :  { %1227 = vmatprep.mubr.f32.mxu1 %v4317_v1  ;;  %v3913_v62 = vpack.c.bf16 %v2123_v61, %v2122_v30 }
 0x10c   :  { %3914 = vmatpush1.bf16.msra.mxu0 %v3913_v62 }
 0x10d   :  { %3827 = vmatmul.mubr.msk.f32.gmra.mrb[18].mxu1 %vm154_vm0, %v4569_v36  ;;  %v2124_v36 = vld [vmem:[#allocation11 + $0xd0] sm:$0xff]  ;;  %3915 = vmatprep.subr.bf16.mxu0 %v4319_v2 }
 0x10e   :  { %1233 = vmatprep.mubr.f32.mxu1 %v4317_v1  ;;  %v3916_v7 = vpack.c.bf16 %v2125_v5, %v2124_v36 }
 0x110   :  { %3917 = vmatpush1.bf16.msra.mxu0 %v3916_v7 }
 0x111   :  { %3828 = vmatmul.mubr.msk.f32.gmra.mrb[20].mxu1 %vm154_vm0, %v4582_v41  ;;  %3918 = vmatprep.subr.bf16.mxu0 %v4319_v2  ;;  %v2126_v41 = vld [vmem:[#allocation11 + $0xe0] sm:$0xff] }
 0x112   :  { %1239 = vmatprep.mubr.f32.mxu1 %v4317_v1 }
 0x115   :  { %3829 = vmatmul.mubr.msk.f32.gmra.mrb[22].mxu1 %vm154_vm0, %v4594_v47  ;;  %v2127_v47 = vld [vmem:[#allocation11 + $0xe8] sm:$0xff] }
 0x116   :  { %1245 = vmatprep.mubr.f32.mxu1 %v4317_v1 }
 0x119   :  { %3830 = vmatmul.mubr.msk.f32.gmra.mrb[24].mxu1 %vm154_vm0, %v4608_v53  ;;  %v3919_v53 = vpack.c.bf16 %v2127_v47, %v2126_v41 }
 0x11a   :  { %1251 = vmatprep.mubr.f32.mxu1 %v4317_v1 }
 0x11b   :  { %3920 = vmatpush1.bf16.msra.mxu0 %v3919_v53 }
 0x11c   :  { %3921 = vmatprep.subr.bf16.mxu0 %v4319_v2 }
 0x11d   :  { %3831 = vmatmul.mubr.msk.f32.gmra.mrb[26].mxu1 %vm154_vm0, %v4619_v58  ;;  %v2128_v58 = vld [vmem:[#allocation11 + $0xf0] sm:$0xff] }
 0x11e   :  { %1257 = vmatprep.mubr.f32.mxu1 %v4317_v1 }
 0x121   :  { %3832 = vmatmul.mubr.msk.f32.gmra.mrb[28].mxu1 %vm154_vm0, %v4629_v63  ;;  %v2129_v63 = vld [vmem:[#allocation11 + $0xf8] sm:$0xff] }
 0x122   :  { %1263 = vmatprep.mubr.f32.mxu1 %v4317_v1 }
 0x125   :  { %3833 = vmatmul.mubr.msk.f32.gmra.mrb[30].mxu1 %vm154_vm0, %v4639_v8  ;;  %v3922_v8 = vpack.c.bf16 %v2129_v63, %v2128_v58 }
 0x126   :  { %1269 = vmatprep.mubr.f32.mxu1 %v4317_v1 }
 0x127   :  { %3923 = vmatpush1.bf16.msra.mxu0 %v3922_v8 }
 0x129   :  { %3834 = vmatmul.mubr.msk.f32.gmra.mrb[32].mxu1 %vm154_vm0, %v4649_v13 }
 0x12a   :  { %1275 = vmatprep.mubr.f32.mxu1 %v4317_v1 }
 0x12d   :  { %3835 = vmatmul.mubr.msk.f32.gmra.mrb[34].mxu1 %vm154_vm0, %v4658_v19 }
 0x12e   :  { %1281 = vmatprep.mubr.f32.mxu1 %v4317_v1 }
 0x131   :  { %3836 = vmatmul.mubr.msk.f32.gmra.mrb[36].mxu1 %vm154_vm0, %v4668_v26 }
 0x132   :  { %1287 = vmatprep.mubr.f32.mxu1 %v4317_v1 }
 0x135   :  { %3837 = vmatmul.mubr.msk.f32.gmra.mrb[38].mxu1 %vm154_vm0, %v4678_v33 }
 0x136   :  { %1293 = vmatprep.mubr.f32.mxu1 %v4317_v1 }
 0x139   :  { %3838 = vmatmul.mubr.msk.f32.gmra.mrb[40].mxu1 %vm154_vm0, %v4688_v39 }
 0x13a   :  { %1299 = vmatprep.mubr.f32.mxu1 %v4317_v1 }
 0x13d   :  { %3839 = vmatmul.mubr.msk.f32.gmra.mrb[42].mxu1 %vm154_vm0, %v4697_v44 }
 0x13e   :  { %1305 = vmatprep.mubr.f32.mxu1 %v4317_v1 }
 0x141   :  { %3840 = vmatmul.mubr.msk.f32.gmra.mrb[44].mxu1 %vm154_vm0, %v4708_v51 }
 0x142   :  { %1311 = vmatprep.mubr.f32.mxu1 %v4317_v1 }
 0x143   :  { %v233_v13 = vpop.f32.mrb[0].mxu0 }
 0x144   :  { %v235_v19 = vpop.f32.mrb[1].mxu0 }
 0x145   :  { %3841 = vmatmul.mubr.msk.f32.gmra.mrb[46].mxu1 %vm154_vm0, %v4718_v60  ;;  %v1374_v26 = vcombine.low %v233_v13, %v235_v19  ;;  %v1375_v33 = vcombine.high %v233_v13, %v235_v19 }
 0x146   :  { %1317 = vmatprep.mubr.f32.mxu1 %v4317_v1 }
 0x147   :  { %v4908_v39 = vpop.f32.mrb[2].mxu0  ;;  %v1389_v57 = vrot.slane %v1375_v33, %v4467_v6 }
 0x148   :  { %v4911_v44 = vpop.f32.mrb[3].mxu0 }
 0x149   :  { %3842 = vmatmul.mubr.msk.f32.gmra.mrb[48].mxu1 %vm154_vm0, %v4728_v3  ;;  %v1424_v51 = vcombine.low %v4908_v39, %v4911_v44  ;;  %v1425_v60 = vcombine.high %v4908_v39, %v4911_v44  ;;  %v1391_v30 = vcombine.high %v1389_v57, %v1389_v57  ;;  %v1405_v36 = vrot.slane %v1389_v57, %v4467_v6 }
 0x14a   :  { %1323 = vmatprep.mubr.f32.mxu1 %v4317_v1 }
 0x14b   :  { %v4922_v3 = vpop.f32.mrb[4].mxu0 }
 0x14d   :  { %3843 = vmatmul.mubr.msk.f32.gmra.mrb[50].mxu1 %vm154_vm0, %v4739_v12  ;;  %v4924_v12 = vpop.f32.mrb[5].mxu0 }
 0x14e   :  { %1329 = vmatprep.mubr.f32.mxu1 %v4317_v1 }
 0x151   :  { %3844 = vmatmul.mubr.msk.f32.gmra.mrb[52].mxu1 %vm154_vm0, %v4749_v52  ;;  %v1474_v52 = vcombine.low %v4922_v3, %v4924_v12 }
 0x152   :  { %1335 = vmatprep.mubr.f32.mxu1 %v4317_v1 }
 0x155   :  { %3845 = vmatmul.mubr.msk.f32.gmra.mrb[54].mxu1 %vm154_vm0, %v4759_v27  ;;  %v1475_v27 = vcombine.high %v4922_v3, %v4924_v12 }
 0x156   :  { %1341 = vmatprep.mubr.f32.mxu1 %v4317_v1 }
 0x159   :  { %3846 = vmatmul.mubr.msk.f32.gmra.mrb[56].mxu1 %vm154_vm0, %v4769_v34  ;;  %v4930_v34 = vpop.f32.mrb[6].mxu0 }
 0x15a   :  { %1347 = vmatprep.mubr.f32.mxu1 %v4317_v1 }
 0x15d   :  { %3847 = vmatmul.mubr.msk.f32.gmra.mrb[58].mxu1 %vm154_vm0, %v4778_v18  ;;  %v4932_v18 = vpop.f32.mrb[7].mxu0 }
 0x15e   :  { %1353 = vmatprep.mubr.f32.mxu1 %v4317_v1 }
 0x161   :  { %3848 = vmatmul.mubr.msk.f32.gmra.mrb[60].mxu1 %vm154_vm0, %v4787_v48  ;;  %v1525_v48 = vcombine.high %v4930_v34, %v4932_v18 }
 0x162   :  { %1359 = vmatprep.mubr.f32.mxu1 %v4317_v1  ;;  %v1524_v1 = vcombine.low %v4930_v34, %v4932_v18 }
 0x165   :  { %3849 = vmatmul.mubr.msk.f32.gmra.mrb[62].mxu1 %vm154_vm0, %v4796_v55  ;;  %v1382_v55 = vrot.slane %v1374_v26, %v4467_v6 }
 0x167   :  { %v1398_v2 = vrot.slane %v1382_v55, %v4467_v6  ;;  %v1390_v11 = vcombine.high %v1382_v55, %v1382_v55  ;;  %v1609_v55 = vrot.slane %v1405_v36, %v4474_v20 }
 0x169   :  { %v1577_v15 = vrot.slane %v1398_v2, %v4474_v20  ;;  %v1581_v16 = vrot.slane %v1398_v2, %v4941_v10  ;;  %v1412_v21 = vrot.slane %v1390_v11, %v4467_v6  ;;  %v1420_v42 = vcombine.high %v1398_v2, %v1398_v2 }
 0x16a   :  { %v1419_v2 = vrot.slane %v1391_v30, %v4467_v6 }
 0x16b   :  { %v1585_v28 = vrot.slane %v1412_v21, %v4474_v20  ;;  %v1589_v49 = vrot.slane %v1412_v21, %v4941_v10  ;;  %v1593_v46 = vrot.slane %v1420_v42, %v4474_v20  ;;  %v1422_v9 = vcombine.high %v1412_v21, %v1412_v21 }
 0x16c   :  { %v1597_v23 = vrot.slane %v1420_v42, %v4941_v10 }
 0x16d   :  { %v1601_v41 = vrot.slane %v1422_v9, %v4474_v20  ;;  %v1605_v58 = vrot.slane %v1422_v9, %v4941_v10 }
 0x1bc   :  { %v1175_v29 = vpop.f32.mrb[0].mxu1 }
 0x1bd   :  { %v1894_v4 = vadd.f32 %v1577_v15, %v1175_v29  ;;  %v1177_v24 = vpop.f32.mrb[1].mxu1  ;;  %v1613_v15 = vrot.slane %v1405_v36, %v4941_v10 }
 0x1be   :  { %v1895_v35 = vadd.f32 %v1581_v16, %v1177_v24 }
 0x1bf   :  { %v1970_v25 = vadd.f32 %v4949_v17, %v1894_v4 }
 0x1c0   :  { %v1971_v31 = vadd.f32 %v4953_v22, %v1895_v35  ;;  %v1181_v32 = vpop.f32.mrb[2].mxu1 }
 0x1c1   :  { %v1896_v37 = vadd.f32 %v1585_v28, %v1181_v32  ;;  %v1183_v38 = vpop.f32.mrb[3].mxu1  ;;  %v2034_v0 = vmax.f32 %v1970_v25, 0.0  ;;  %v1617_v25 = vrot.slane %v1419_v2, %v4474_v20  ;;  %v1421_v28 = vcombine.high %v1405_v36, %v1405_v36 }
 0x1c2   :  { %v2035_v40 = vmax.f32 %v1971_v31, 0.0  ;;  %v1897_v43 = vadd.f32 %v1589_v49, %v1183_v38  ;;  %v1621_v32 = vrot.slane %v1419_v2, %v4941_v10  ;;  %v1432_v38 = vrot.slane %v1424_v51, %v4467_v6 }
 0x1c3   :  { %v1972_v45 = vadd.f32 %v4949_v17, %v1896_v37 }
 0x1c4   :  { %v1973_v50 = vadd.f32 %v4953_v22, %v1897_v43  ;;  %v1187_v54 = vpop.f32.mrb[4].mxu1  ;;  %2201 = vmatprep.mubr.f32.mxu0 %v2035_v40 }
 0x1c5   :  { %v1898_v56 = vadd.f32 %v1593_v46, %v1187_v54  ;;  %v1189_v59 = vpop.f32.mrb[5].mxu1  ;;  %2202 = vmatmul.mubr.f32.vlgmr.msra.gmra.mrb[8].mxu0 %v2034_v0  ;;  %v2036_v5 = vmax.f32 %v1972_v45, 0.0  ;;  %v1625_v45 = vrot.slane %v1421_v28, %v4474_v20  ;;  %v1423_v46 = vcombine.high %v1419_v2, %v1419_v2 }
 0x1c6   :  { %v2037_v61 = vmax.f32 %v1973_v50, 0.0  ;;  %v1899_v62 = vadd.f32 %v1597_v23, %v1189_v59  ;;  %v1629_v54 = vrot.slane %v1421_v28, %v4941_v10  ;;  %v1448_v23 = vrot.slane %v1432_v38, %v4467_v6 }
 0x1c7   :  { %v1974_v7 = vadd.f32 %v4949_v17, %v1898_v56 }
 0x1c8   :  { %v1975_v47 = vadd.f32 %v4953_v22, %v1899_v62  ;;  %v1193_v53 = vpop.f32.mrb[6].mxu1  ;;  %2206 = vmatprep.mubr.f32.mxu0 %v2037_v61  ;;  %v1440_v62 = vcombine.high %v1432_v38, %v1432_v38 }
 0x1c9   :  { %v1900_v63 = vadd.f32 %v1601_v41, %v1193_v53  ;;  %v1195_v8 = vpop.f32.mrb[7].mxu1  ;;  %2207 = vmatmul.mubr.f32.gmra.mrb[10].mxu0 %v2036_v5  ;;  %v2038_v26 = vmax.f32 %v1974_v7, 0.0  ;;  %v1633_v5 = vrot.slane %v1423_v46, %v4474_v20 }
 0x1ca   :  { %v2039_v13 = vmax.f32 %v1975_v47, 0.0  ;;  %v1901_v19 = vadd.f32 %v1605_v58, %v1195_v8  ;;  %v1637_v47 = vrot.slane %v1423_v46, %v4941_v10 }
 0x1cb   :  { %v1976_v33 = vadd.f32 %v4949_v17, %v1900_v63  ;;  %v1641_v63 = vrot.slane %v1448_v23, %v4474_v20 }
 0x1cc   :  { %v1977_v11 = vadd.f32 %v4953_v22, %v1901_v19  ;;  %v1199_v14 = vpop.f32.mrb[8].mxu1  ;;  %2211 = vmatprep.mubr.f32.mxu0 %v2039_v13  ;;  %v1645_v19 = vrot.slane %v1448_v23, %v4941_v10 }
 0x1cd   :  { %v1902_v16 = vadd.f32 %v1609_v55, %v1199_v14  ;;  %v1201_v21 = vpop.f32.mrb[9].mxu1  ;;  %2212 = vmatmul.mubr.f32.gmra.mrb[12].mxu0 %v2038_v26  ;;  %v2040_v24 = vmax.f32 %v1976_v33, 0.0  ;;  %v1462_v55 = vrot.slane %v1440_v62, %v4467_v6 }
 0x1ce   :  { %v2041_v29 = vmax.f32 %v1977_v11, 0.0  ;;  %v1903_v4 = vadd.f32 %v1613_v15, %v1201_v21 }
 0x1cf   :  { %v1978_v35 = vadd.f32 %v4949_v17, %v1902_v16 }
 0x1d0   :  { %v1979_v42 = vadd.f32 %v4953_v22, %v1903_v4  ;;  %v1205_v31 = vpop.f32.mrb[10].mxu1  ;;  %2216 = vmatprep.mubr.f32.mxu0 %v2041_v29 }
 0x1d1   :  { %v1904_v49 = vadd.f32 %v1617_v25, %v1205_v31  ;;  %v1207_v37 = vpop.f32.mrb[11].mxu1  ;;  %2217 = vmatmul.mubr.f32.gmra.mrb[14].mxu0 %v2040_v24  ;;  %v2042_v43 = vmax.f32 %v1978_v35, 0.0  ;;  %v1649_v24 = vrot.slane %v1462_v55, %v4474_v20  ;;  %v1470_v35 = vcombine.high %v1448_v23, %v1448_v23 }
 0x1d2   :  { %v2043_v57 = vmax.f32 %v1979_v42, 0.0  ;;  %v1905_v40 = vadd.f32 %v1621_v32, %v1207_v37  ;;  %v1653_v42 = vrot.slane %v1462_v55, %v4941_v10 }
 0x1d3   :  { %v1980_v0 = vadd.f32 %v4949_v17, %v1904_v49  ;;  %v1439_v49 = vrot.slane %v1425_v60, %v4467_v6 }
 0x1d4   :  { %v1981_v9 = vadd.f32 %v4953_v22, %v1905_v40  ;;  %v1211_v50 = vpop.f32.mrb[12].mxu1  ;;  %2221 = vmatprep.mubr.f32.mxu0 %v2043_v57 }
 0x1d5   :  { %v1906_v56 = vadd.f32 %v1625_v45, %v1211_v50  ;;  %v1213_v59 = vpop.f32.mrb[13].mxu1  ;;  %2222 = vmatmul.mubr.f32.gmra.mrb[16].mxu0 %v2042_v43  ;;  %v2044_v61 = vmax.f32 %v1980_v0, 0.0  ;;  %v1657_v43 = vrot.slane %v1470_v35, %v4474_v20  ;;  %v1472_v0 = vcombine.high %v1462_v55, %v1462_v55 }
 0x1d6   :  { %v2045_v51 = vmax.f32 %v1981_v9, 0.0  ;;  %v1907_v30 = vadd.f32 %v1629_v54, %v1213_v59  ;;  %v1661_v9 = vrot.slane %v1470_v35, %v4941_v10  ;;  %v1441_v23 = vcombine.high %v1439_v49, %v1439_v49 }
 0x1d7   :  { %v1982_v36 = vadd.f32 %v4949_v17, %v1906_v56  ;;  %v1455_v60 = vrot.slane %v1439_v49, %v4467_v6  ;;  %v1669_v62 = vrot.slane %v1472_v0, %v4941_v10 }
 0x1d8   :  { %v1983_v7 = vadd.f32 %v4953_v22, %v1907_v30  ;;  %v1217_v41 = vpop.f32.mrb[14].mxu1  ;;  %2226 = vmatprep.mubr.f32.mxu0 %v2045_v51  ;;  %v1665_v51 = vrot.slane %v1472_v0, %v4474_v20 }
 0x1d9   :  { %v1908_v53 = vadd.f32 %v1633_v5, %v1217_v41  ;;  %v1219_v58 = vpop.f32.mrb[15].mxu1  ;;  %2227 = vmatmul.mubr.f32.gmra.mrb[18].mxu0 %v2044_v61  ;;  %v2046_v26 = vmax.f32 %v1982_v36, 0.0 }
 0x1da   :  { %v2047_v8 = vmax.f32 %v1983_v7, 0.0  ;;  %v1909_v13 = vadd.f32 %v1637_v47, %v1219_v58  ;;  %v1673_v58 = vrot.slane %v1455_v60, %v4474_v20 }
 0x1db   :  { %v1984_v33 = vadd.f32 %v4949_v17, %v1908_v53 }
 0x1dc   :  { %v1985_v2 = vadd.f32 %v4953_v22, %v1909_v13  ;;  %v1223_v11 = vpop.f32.mrb[16].mxu1  ;;  %2231 = vmatprep.mubr.f32.mxu0 %v2047_v8 }
 0x1dd   :  { %v1910_v14 = vadd.f32 %v1641_v63, %v1223_v11  ;;  %v1225_v15 = vpop.f32.mrb[17].mxu1  ;;  %2232 = vmatmul.mubr.f32.gmra.mrb[20].mxu0 %v2046_v26  ;;  %v2048_v29 = vmax.f32 %v1984_v33, 0.0  ;;  %v1469_v63 = vrot.slane %v1441_v23, %v4467_v6 }
 0x1de   :  { %v2049_v16 = vmax.f32 %v1985_v2, 0.0  ;;  %v1911_v21 = vadd.f32 %v1645_v19, %v1225_v15  ;;  %v1677_v19 = vrot.slane %v1455_v60, %v4941_v10 }
 0x1df   :  { %v1986_v4 = vadd.f32 %v4949_v17, %v1910_v14  ;;  %v1681_v15 = vrot.slane %v1469_v63, %v4474_v20 }
 0x1e0   :  { %v1987_v25 = vadd.f32 %v4953_v22, %v1911_v21  ;;  %v1229_v28 = vpop.f32.mrb[18].mxu1  ;;  %2236 = vmatprep.mubr.f32.mxu0 %v2049_v16  ;;  %v1471_v16 = vcombine.high %v1455_v60, %v1455_v60 }
 0x1e1   :  { %v1912_v31 = vadd.f32 %v1649_v24, %v1229_v28  ;;  %v1231_v32 = vpop.f32.mrb[19].mxu1  ;;  %2237 = vmatmul.mubr.f32.gmra.mrb[22].mxu0 %v2048_v29  ;;  %v2050_v57 = vmax.f32 %v1986_v4, 0.0  ;;  %v1685_v4 = vrot.slane %v1469_v63, %v4941_v10 }
 0x1e2   :  { %v2051_v37 = vmax.f32 %v1987_v25, 0.0  ;;  %v1913_v38 = vadd.f32 %v1653_v42, %v1231_v32  ;;  %v1482_v25 = vrot.slane %v1474_v52, %v4467_v6  ;;  %v1689_v49 = vrot.slane %v1471_v16, %v4474_v20 }
 0x1e3   :  { %v1988_v40 = vadd.f32 %v4949_v17, %v1912_v31 }
 0x1e4   :  { %v1989_v45 = vadd.f32 %v4953_v22, %v1913_v38  ;;  %v1235_v46 = vpop.f32.mrb[20].mxu1  ;;  %2241 = vmatprep.mubr.f32.mxu0 %v2051_v37  ;;  %v1473_v37 = vcombine.high %v1469_v63, %v1469_v63 }
 0x1e5   :  { %v1914_v50 = vadd.f32 %v1657_v43, %v1235_v46  ;;  %v1237_v54 = vpop.f32.mrb[21].mxu1  ;;  %2242 = vmatmul.mubr.f32.gmra.mrb[24].mxu0 %v2050_v57  ;;  %v2052_v56 = vmax.f32 %v1988_v40, 0.0  ;;  %v1693_v40 = vrot.slane %v1471_v16, %v4941_v10  ;;  %v1498_v43 = vrot.slane %v1482_v25, %v4467_v6 }
 0x1e6   :  { %v2053_v39 = vmax.f32 %v1989_v45, 0.0  ;;  %v1915_v44 = vadd.f32 %v1661_v9, %v1237_v54  ;;  %v1697_v23 = vrot.slane %v1473_v37, %v4474_v20  ;;  %v1701_v60 = vrot.slane %v1473_v37, %v4941_v10 }
 0x1e7   :  { %v1990_v59 = vadd.f32 %v4949_v17, %v1914_v50  ;;  %v1490_v50 = vcombine.high %v1482_v25, %v1482_v25  ;;  %v1489_v16 = vrot.slane %v1475_v27, %v4467_v6 }
 0x1e8   :  { %v1991_v30 = vadd.f32 %v4953_v22, %v1915_v44  ;;  %v1241_v61 = vpop.f32.mrb[22].mxu1  ;;  %2246 = vmatprep.mubr.f32.mxu0 %v2053_v39 }
 0x1e9   :  { %v1916_v36 = vadd.f32 %v1665_v51, %v1241_v61  ;;  %v1243_v5 = vpop.f32.mrb[23].mxu1  ;;  %2247 = vmatmul.mubr.f32.gmra.mrb[26].mxu0 %v2052_v56  ;;  %v2054_v47 = vmax.f32 %v1990_v59, 0.0  ;;  %v1705_v51 = vrot.slane %v1498_v43, %v4474_v20  ;;  %v1491_v37 = vcombine.high %v1489_v16, %v1489_v16 }
 0x1ea   :  { %v2055_v7 = vmax.f32 %v1991_v30, 0.0  ;;  %v1917_v41 = vadd.f32 %v1669_v62, %v1243_v5  ;;  %v1709_v62 = vrot.slane %v1498_v43, %v4941_v10  ;;  %v1505_v27 = vrot.slane %v1489_v16, %v4467_v6 }
 0x1eb   :  { %v1992_v53 = vadd.f32 %v4949_v17, %v1916_v36 }
 0x1ec   :  { %v1993_v8 = vadd.f32 %v4953_v22, %v1917_v41  ;;  %v1247_v13 = vpop.f32.mrb[24].mxu1  ;;  %2251 = vmatprep.mubr.f32.mxu0 %v2055_v7  ;;  %v1512_v7 = vrot.slane %v1490_v50, %v4467_v6 }
 0x1ed   :  { %v1918_v26 = vadd.f32 %v1673_v58, %v1247_v13  ;;  %v1249_v33 = vpop.f32.mrb[25].mxu1  ;;  %2252 = vmatmul.mubr.f32.gmra.mrb[28].mxu0 %v2054_v47  ;;  %v2056_v11 = vmax.f32 %v1992_v53, 0.0 }
 0x1ee   :  { %v2057_v55 = vmax.f32 %v1993_v8, 0.0  ;;  %v1919_v2 = vadd.f32 %v1677_v19, %v1249_v33  ;;  %v1520_v33 = vcombine.high %v1498_v43, %v1498_v43  ;;  %v1522_v25 = vcombine.high %v1512_v7, %v1512_v7 }
 0x1ef   :  { %v1994_v14 = vadd.f32 %v4949_v17, %v1918_v26  ;;  %v1713_v26 = vrot.slane %v1512_v7, %v4474_v20 }
 0x1f0   :  { %v1995_v21 = vadd.f32 %v4953_v22, %v1919_v2  ;;  %v1253_v29 = vpop.f32.mrb[26].mxu1  ;;  %2256 = vmatprep.mubr.f32.mxu0 %v2057_v55 }
 0x1f1   :  { %v1920_v24 = vadd.f32 %v1681_v15, %v1253_v29  ;;  %v1255_v35 = vpop.f32.mrb[27].mxu1  ;;  %2257 = vmatmul.mubr.f32.gmra.mrb[30].mxu0 %v2056_v11  ;;  %v2058_v31 = vmax.f32 %v1994_v14, 0.0  ;;  %v1717_v11 = vrot.slane %v1512_v7, %v4941_v10 }
 0x1f2   :  { %v2059_v28 = vmax.f32 %v1995_v21, 0.0  ;;  %v1921_v42 = vadd.f32 %v1685_v4, %v1255_v35  ;;  %v1721_v35 = vrot.slane %v1520_v33, %v4474_v20 }
 0x1f3   :  { %v1996_v32 = vadd.f32 %v4949_v17, %v1920_v24 }
 0x1f4   :  { %v1997_v38 = vadd.f32 %v4953_v22, %v1921_v42  ;;  %v1259_v57 = vpop.f32.mrb[28].mxu1  ;;  %2261 = vmatprep.mubr.f32.mxu0 %v2059_v28 }
 0x1f5   :  { %v1922_v0 = vadd.f32 %v1689_v49, %v1259_v57  ;;  %v1261_v45 = vpop.f32.mrb[29].mxu1  ;;  %2262 = vmatmul.mubr.f32.gmra.mrb[32].mxu0 %v2058_v31  ;;  %v2060_v9 = vmax.f32 %v1996_v32, 0.0  ;;  %v1725_v31 = vrot.slane %v1520_v33, %v4941_v10 }
 0x1f6   :  { %v2061_v52 = vmax.f32 %v1997_v38, 0.0  ;;  %v1923_v46 = vadd.f32 %v1693_v40, %v1261_v45  ;;  %v1729_v40 = vrot.slane %v1522_v25, %v4474_v20  ;;  %v1733_v45 = vrot.slane %v1522_v25, %v4941_v10 }
 0x1f7   :  { %v1998_v54 = vadd.f32 %v4949_v17, %v1922_v0 }
 0x1f8   :  { %v1999_v39 = vadd.f32 %v4953_v22, %v1923_v46  ;;  %v1265_v44 = vpop.f32.mrb[30].mxu1  ;;  %2266 = vmatprep.mubr.f32.mxu0 %v2061_v52 }
 0x1f9   :  { %v1924_v56 = vadd.f32 %v1697_v23, %v1265_v44  ;;  %v1267_v59 = vpop.f32.mrb[31].mxu1  ;;  %2267 = vmatmul.mubr.f32.gmra.mrb[34].mxu0 %v2060_v9  ;;  %v2062_v36 = vmax.f32 %v1998_v54, 0.0  ;;  %v1519_v44 = vrot.slane %v1491_v37, %v4467_v6 }
 0x1fa   :  { %v2063_v30 = vmax.f32 %v1999_v39, 0.0  ;;  %v1925_v61 = vadd.f32 %v1701_v60, %v1267_v59  ;;  %v1737_v39 = vrot.slane %v1505_v27, %v4474_v20  ;;  %v1741_v59 = vrot.slane %v1505_v27, %v4941_v10 }
 0x1fb   :  { %v2000_v5 = vadd.f32 %v4949_v17, %v1924_v56  ;;  %v1745_v7 = vrot.slane %v1519_v44, %v4474_v20 }
 0x1fc   :  { %v2001_v41 = vadd.f32 %v4953_v22, %v1925_v61  ;;  %v1271_v47 = vpop.f32.mrb[32].mxu1  ;;  %2271 = vmatprep.mubr.f32.mxu0 %v2063_v30 }
 0x1fd   :  { %v1926_v53 = vadd.f32 %v1705_v51, %v1271_v47  ;;  %v1273_v58 = vpop.f32.mrb[33].mxu1  ;;  %2272 = vmatmul.mubr.f32.gmra.mrb[36].mxu0 %v2062_v36  ;;  %v2064_v13 = vmax.f32 %v2000_v5, 0.0 }
 0x1fe   :  { %v2065_v63 = vmax.f32 %v2001_v41, 0.0  ;;  %v1927_v8 = vadd.f32 %v1709_v62, %v1273_v58  ;;  %v1521_v41 = vcombine.high %v1505_v27, %v1505_v27  ;;  %v1749_v58 = vrot.slane %v1519_v44, %v4941_v10 }
 0x1ff   :  { %v2002_v19 = vadd.f32 %v4949_v17, %v1926_v53 }
 0x200   :  { %v2003_v55 = vadd.f32 %v4953_v22, %v1927_v8  ;;  %v1277_v2 = vpop.f32.mrb[34].mxu1  ;;  %2276 = vmatprep.mubr.f32.mxu0 %v2065_v63  ;;  %v1757_v16 = vrot.slane %v1521_v41, %v4941_v10 }
 0x201   :  { %v1928_v14 = vadd.f32 %v1713_v26, %v1277_v2  ;;  %v1279_v15 = vpop.f32.mrb[35].mxu1  ;;  %2277 = vmatmul.mubr.f32.gmra.mrb[38].mxu0 %v2064_v13  ;;  %v2066_v4 = vmax.f32 %v2002_v19, 0.0  ;;  %v1532_v13 = vrot.slane %v1524_v1, %v4467_v6  ;;  %v1753_v2 = vrot.slane %v1521_v41, %v4474_v20 }
 0x202   :  { %v2067_v21 = vmax.f32 %v2003_v55, 0.0  ;;  %v1929_v29 = vadd.f32 %v1717_v11, %v1279_v15  ;;  %v1523_v11 = vcombine.high %v1519_v44, %v1519_v44 }
 0x203   :  { %v2004_v24 = vadd.f32 %v4949_v17, %v1928_v14  ;;  %v1540_v25 = vcombine.high %v1532_v13, %v1532_v13 }
 0x204   :  { %v2005_v28 = vadd.f32 %v4953_v22, %v1929_v29  ;;  %v1283_v42 = vpop.f32.mrb[36].mxu1  ;;  %2281 = vmatprep.mubr.f32.mxu0 %v2067_v21  ;;  %v1548_v21 = vrot.slane %v1532_v13, %v4467_v6 }
 0x205   :  { %v1930_v32 = vadd.f32 %v1721_v35, %v1283_v42  ;;  %v1285_v49 = vpop.f32.mrb[37].mxu1  ;;  %2282 = vmatmul.mubr.f32.gmra.mrb[40].mxu0 %v2066_v4  ;;  %v2068_v38 = vmax.f32 %v2004_v24, 0.0  ;;  %v1761_v42 = vrot.slane %v1523_v11, %v4474_v20 }
 0x206   :  { %v2069_v3 = vmax.f32 %v2005_v28, 0.0  ;;  %v1931_v12 = vadd.f32 %v1725_v31, %v1285_v49  ;;  %v1765_v49 = vrot.slane %v1523_v11, %v4941_v10 }
 0x207   :  { %v2006_v57 = vadd.f32 %v4949_v17, %v1930_v32 }
 0x208   :  { %v2007_v43 = vadd.f32 %v4953_v22, %v1931_v12  ;;  %v1289_v0 = vpop.f32.mrb[38].mxu1  ;;  %2286 = vmatprep.mubr.f32.mxu0 %v2069_v3  ;;  %v1769_v12 = vrot.slane %v1548_v21, %v4474_v20 }
 0x209   :  { %v1932_v52 = vadd.f32 %v1729_v40, %v1289_v0  ;;  %v1291_v46 = vpop.f32.mrb[39].mxu1  ;;  %2287 = vmatmul.mubr.f32.gmra.mrb[42].mxu0 %v2068_v38  ;;  %v2070_v54 = vmax.f32 %v2006_v57, 0.0  ;;  %v1773_v57 = vrot.slane %v1548_v21, %v4941_v10  ;;  %v1562_v0 = vrot.slane %v1540_v25, %v4467_v6 }
 0x20a   :  { %v2071_v9 = vmax.f32 %v2007_v43, 0.0  ;;  %v1933_v50 = vadd.f32 %v1733_v45, %v1291_v46 }
 0x20b   :  { %v2008_v23 = vadd.f32 %v4949_v17, %v1932_v52  ;;  %v1777_v44 = vrot.slane %v1562_v0, %v4474_v20 }
 0x20c   :  { %v2009_v60 = vadd.f32 %v4953_v22, %v1933_v50  ;;  %v1295_v56 = vpop.f32.mrb[40].mxu1  ;;  %2291 = vmatprep.mubr.f32.mxu0 %v2071_v9 }
 0x20d   :  { %v1934_v51 = vadd.f32 %v1737_v39, %v1295_v56  ;;  %v1297_v30 = vpop.f32.mrb[41].mxu1  ;;  %2292 = vmatmul.mubr.f32.gmra.mrb[44].mxu0 %v2070_v54  ;;  %v2072_v36 = vmax.f32 %v2008_v23, 0.0 }
 0x20e   :  { %v2073_v61 = vmax.f32 %v2009_v60, 0.0  ;;  %v1935_v62 = vadd.f32 %v1741_v59, %v1297_v30  ;;  %v1570_v60 = vcombine.high %v1548_v21, %v1548_v21 }
 0x20f   :  { %v2010_v5 = vadd.f32 %v4949_v17, %v1934_v51  ;;  %v1781_v51 = vrot.slane %v1562_v0, %v4941_v10 }
 0x210   :  { %v2011_v47 = vadd.f32 %v4953_v22, %v1935_v62  ;;  %v1301_v53 = vpop.f32.mrb[42].mxu1  ;;  %2296 = vmatprep.mubr.f32.mxu0 %v2073_v61  ;;  %v1539_v62 = vrot.slane %v1525_v48, %v4467_v6 }
 0x211   :  { %v1936_v63 = vadd.f32 %v1745_v7, %v1301_v53  ;;  %v1303_v8 = vpop.f32.mrb[43].mxu1  ;;  %2297 = vmatmul.mubr.f32.gmra.mrb[46].mxu0 %v2072_v36  ;;  %v2074_v33 = vmax.f32 %v2010_v5, 0.0  ;;  %v1572_v53 = vcombine.high %v1562_v0, %v1562_v0 }
 0x212   :  { %v2075_v19 = vmax.f32 %v2011_v47, 0.0  ;;  %v1937_v26 = vadd.f32 %v1749_v58, %v1303_v8  ;;  %v1785_v47 = vrot.slane %v1570_v60, %v4474_v20  ;;  %v1789_v8 = vrot.slane %v1570_v60, %v4941_v10 }
 0x213   :  { %v2012_v55 = vadd.f32 %v4949_v17, %v1936_v63  ;;  %v1555_v48 = vrot.slane %v1539_v62, %v4467_v6 }
 0x214   :  { %v2013_v14 = vadd.f32 %v4953_v22, %v1937_v26  ;;  %v1307_v15 = vpop.f32.mrb[44].mxu1  ;;  %2301 = vmatprep.mubr.f32.mxu0 %v2075_v19  ;;  %v1541_v26 = vcombine.high %v1539_v62, %v1539_v62 }
 0x215   :  { %v1938_v29 = vadd.f32 %v1753_v2, %v1307_v15  ;;  %v1309_v4 = vpop.f32.mrb[45].mxu1  ;;  %2302 = vmatmul.mubr.f32.gmra.mrb[48].mxu0 %v2074_v33  ;;  %v2076_v35 = vmax.f32 %v2012_v55, 0.0  ;;  %v1793_v2 = vrot.slane %v1572_v53, %v4474_v20  ;;  %v1797_v15 = vrot.slane %v1572_v53, %v4941_v10 }
 0x216   :  { %v2077_v1 = vmax.f32 %v2013_v14, 0.0  ;;  %v1939_v24 = vadd.f32 %v1757_v16, %v1309_v4  ;;  %v1569_v25 = vrot.slane %v1541_v26, %v4467_v6 }
 0x217   :  { %v2014_v28 = vadd.f32 %v4949_v17, %v1938_v29 }
 0x218   :  { %v2015_v31 = vadd.f32 %v4953_v22, %v1939_v24  ;;  %v1313_v32 = vpop.f32.mrb[46].mxu1  ;;  %2306 = vmatprep.mubr.f32.mxu0 %v2077_v1 }
 0x219   :  { %v1940_v37 = vadd.f32 %v1761_v42, %v1313_v32  ;;  %v1315_v3 = vpop.f32.mrb[47].mxu1  ;;  %2307 = vmatmul.mubr.f32.gmra.mrb[50].mxu0 %v2076_v35  ;;  %v2078_v40 = vmax.f32 %v2014_v28, 0.0  ;;  %v1801_v35 = vrot.slane %v1555_v48, %v4474_v20 }
 0x21a   :  { %v2079_v27 = vmax.f32 %v2015_v31, 0.0  ;;  %v1941_v38 = vadd.f32 %v1765_v49, %v1315_v3  ;;  %v1805_v31 = vrot.slane %v1555_v48, %v4941_v10 }
 0x21b   :  { %v2016_v43 = vadd.f32 %v4949_v17, %v1940_v37 }
 0x21c   :  { %v2017_v45 = vadd.f32 %v4953_v22, %v1941_v38  ;;  %v1319_v52 = vpop.f32.mrb[48].mxu1  ;;  %2311 = vmatprep.mubr.f32.mxu0 %v2079_v27  ;;  %v1809_v38 = vrot.slane %v1569_v25, %v4474_v20 }
 0x21d   :  { %v1942_v46 = vadd.f32 %v1769_v12, %v1319_v52  ;;  %v1321_v9 = vpop.f32.mrb[49].mxu1  ;;  %2312 = vmatmul.mubr.f32.gmra.mrb[52].mxu0 %v2078_v40  ;;  %v2080_v23 = vmax.f32 %v2016_v43, 0.0  ;;  %v1813_v43 = vrot.slane %v1569_v25, %v4941_v10 }
 0x21e   :  { %v2081_v50 = vmax.f32 %v2017_v45, 0.0  ;;  %v1943_v54 = vadd.f32 %v1773_v57, %v1321_v9  ;;  %v1571_v57 = vcombine.high %v1555_v48, %v1555_v48 }
 0x21f   :  { %v2018_v39 = vadd.f32 %v4949_v17, %v1942_v46 }
 0x220   :  { %v2019_v56 = vadd.f32 %v4953_v22, %v1943_v54  ;;  %v1325_v59 = vpop.f32.mrb[50].mxu1  ;;  %2316 = vmatprep.mubr.f32.mxu0 %v2081_v50  ;;  %v1817_v54 = vrot.slane %v1571_v57, %v4474_v20  ;;  %v1821_v60 = vrot.slane %v1571_v57, %v4941_v10 }
 0x221   :  { %v1944_v30 = vadd.f32 %v1777_v44, %v1325_v59  ;;  %v1327_v61 = vpop.f32.mrb[51].mxu1  ;;  %2317 = vmatmul.mubr.f32.gmra.mrb[54].mxu0 %v2080_v23  ;;  %v2082_v7 = vmax.f32 %v2018_v39, 0.0  ;;  %v1573_v23 = vcombine.high %v1569_v25, %v1569_v25 }
 0x222   :  { %v2083_v36 = vmax.f32 %v2019_v56, 0.0  ;;  %v1945_v5 = vadd.f32 %v1781_v51, %v1327_v61 }
 0x223   :  { %v2020_v41 = vadd.f32 %v4949_v17, %v1944_v30 }
 0x224   :  { %v2021_v58 = vadd.f32 %v4953_v22, %v1945_v5  ;;  %v1331_v63 = vpop.f32.mrb[52].mxu1  ;;  %2321 = vmatprep.mubr.f32.mxu0 %v2083_v36  ;;  %v1825_v36 = vrot.slane %v1573_v23, %v4474_v20 }
 0x225   :  { %v1946_v13 = vadd.f32 %v1785_v47, %v1331_v63  ;;  %v1333_v19 = vpop.f32.mrb[53].mxu1  ;;  %2322 = vmatmul.mubr.f32.gmra.mrb[56].mxu0 %v2082_v7  ;;  %v2084_v33 = vmax.f32 %v2020_v41, 0.0  ;;  %v1829_v41 = vrot.slane %v1573_v23, %v4941_v10  ;;  %v5123_v10 = vld [vmem:[%s6153_s8] ss:$0 sm:$0xff] }
 0x226   :  { %v2085_v34 = vmax.f32 %v2021_v58, 0.0  ;;  %v1947_v18 = vadd.f32 %v1789_v8, %v1333_v19 }
 0x227   :  { %v2022_v55 = vadd.f32 %v4949_v17, %v1946_v13 }
 0x228   :  { %v2023_v11 = vadd.f32 %v4953_v22, %v1947_v18  ;;  %v1337_v14 = vpop.f32.mrb[54].mxu1  ;;  %2326 = vmatprep.mubr.f32.mxu0 %v2085_v34 }
 0x229   :  { %v1948_v16 = vadd.f32 %v1793_v2, %v1337_v14  ;;  %v1339_v21 = vpop.f32.mrb[55].mxu1  ;;  %2327 = vmatmul.mubr.f32.gmra.mrb[58].mxu0 %v2084_v33  ;;  %v2086_v1 = vmax.f32 %v2022_v55, 0.0 }
 0x22a   :  { %v2087_v29 = vmax.f32 %v2023_v11, 0.0  ;;  %v1949_v4 = vadd.f32 %v1797_v15, %v1339_v21 }
 0x22b   :  { %v2024_v24 = vadd.f32 %v4949_v17, %v1948_v16 }
 0x22c   :  { %v2025_v28 = vadd.f32 %v4953_v22, %v1949_v4  ;;  %v1343_v42 = vpop.f32.mrb[56].mxu1  ;;  %2331 = vmatprep.mubr.f32.mxu0 %v2087_v29 }
 0x22d   :  { %v1950_v32 = vadd.f32 %v1801_v35, %v1343_v42  ;;  %v1345_v49 = vpop.f32.mrb[57].mxu1  ;;  %2332 = vmatmul.mubr.f32.gmra.mrb[60].mxu0 %v2086_v1  ;;  %v2088_v12 = vmax.f32 %v2024_v24, 0.0 }
 0x22e   :  { %v2089_v37 = vmax.f32 %v2025_v28, 0.0  ;;  %v1951_v3 = vadd.f32 %v1805_v31, %v1345_v49 }
 0x22f   :  { %v2026_v27 = vadd.f32 %v4949_v17, %v1950_v32 }
 0x230   :  { %v2027_v40 = vadd.f32 %v4953_v22, %v1951_v3  ;;  %v1349_v6 = vpop.f32.mrb[58].mxu1  ;;  %2336 = vmatprep.mubr.f32.mxu0 %v2089_v37 }
 0x231   :  { %v1952_v0 = vadd.f32 %v1809_v38, %v1349_v6  ;;  %v1351_v45 = vpop.f32.mrb[59].mxu1  ;;  %2337 = vmatmul.mubr.f32.gmra.mrb[62].mxu0 %v2088_v12  ;;  %v2090_v9 = vmax.f32 %v2026_v27, 0.0 }
 0x232   :  { %v2091_v52 = vmax.f32 %v2027_v40, 0.0  ;;  %v1953_v46 = vadd.f32 %v1813_v43, %v1351_v45 }
 0x233   :  { %v2028_v50 = vadd.f32 %v4949_v17, %v1952_v0 }
 0x234   :  { %v2029_v39 = vadd.f32 %v4953_v22, %v1953_v46  ;;  %v1355_v44 = vpop.f32.mrb[60].mxu1  ;;  %2341 = vmatprep.mubr.f32.mxu0 %v2091_v52 }
 0x235   :  { %v1954_v56 = vadd.f32 %v1817_v54, %v1355_v44  ;;  %v1357_v59 = vpop.f32.mrb[61].mxu1  ;;  %2342 = vmatmul.mubr.f32.gmra.mrb[64].mxu0 %v2090_v9  ;;  %v2092_v61 = vmax.f32 %v2028_v50, 0.0 }
 0x236   :  { %v2093_v51 = vmax.f32 %v2029_v39, 0.0  ;;  %v1955_v30 = vadd.f32 %v1821_v60, %v1357_v59 }
 0x237   :  { %v2030_v62 = vadd.f32 %v4949_v17, %v1954_v56 }
 0x238   :  { %v2031_v5 = vadd.f32 %v4953_v22, %v1955_v30  ;;  %v1361_v7 = vpop.f32.mrb[62].mxu1  ;;  %2346 = vmatprep.mubr.f32.mxu0 %v2093_v51 }
 0x239   :  { %v1956_v47 = vadd.f32 %v1825_v36, %v1361_v7  ;;  %v1363_v53 = vpop.f32.mrb[63].mxu1  ;;  %2347 = vmatmul.mubr.f32.gmra.mrb[66].mxu0 %v2092_v61  ;;  %v2094_v8 = vmax.f32 %v2030_v62, 0.0 }
 0x23a   :  { %v2095_v58 = vmax.f32 %v2031_v5, 0.0  ;;  %v1957_v63 = vadd.f32 %v1829_v41, %v1363_v53 }
 0x23b   :  { %v2032_v13 = vadd.f32 %v4949_v17, %v1956_v47  ;;  %v5129_v17 = vld [vmem:[%s6154_s9] ss:$0 sm:$0xff] }
 0x23c   :  { %v2033_v19 = vadd.f32 %v4953_v22, %v1957_v63  ;;  %2351 = vmatprep.mubr.f32.mxu0 %v2095_v58 }
 0x23d   :  { %2352 = vmatmul.mubr.f32.gmra.mrb[68].mxu0 %v2094_v8  ;;  %v2096_v20 = vmax.f32 %v2032_v13, 0.0 }
 0x23e   :  { %v2097_v26 = vmax.f32 %v2033_v19, 0.0 }
 0x240   :  { %2356 = vmatprep.mubr.f32.mxu0 %v2097_v26 }
 0x241   :  { %2357 = vmatmul.mubr.f32.gmra.mrb[70].mxu0 %v2096_v20 }
 0x298   :  { %v2203_v34 = vpop.f32.mrb[8].mxu0 }
 0x299   :  { %v2204_v18 = vadd.f32 %v5123_v10, %v2203_v34  ;;  %v2205_v48 = vpop.f32.mrb[9].mxu0 }
 0x29b   :  { %v2362_v22 = vmax.f32 %v2204_v18, 0.0 }
 0x29c   :  { %v2208_v33 = vpop.f32.mrb[10].mxu0 }
 0x29d   :  { %v2209_v55 = vadd.f32 %v5123_v10, %v2208_v33  ;;  %v2210_v2 = vpop.f32.mrb[11].mxu0  ;;  %v2402_v11 = vmul.f32 %v5129_v17, %v2362_v22 }
 0x29f   :  { %v2363_v14 = vmax.f32 %v2209_v55, 0.0  ;;  %2434 = vadd.xlane.f32.xlu0 %v2402_v11 }
 0x2a0   :  { %v2213_v15 = vpop.f32.mrb[12].mxu0 }
 0x2a1   :  { %v2214_v16 = vadd.f32 %v5123_v10, %v2213_v15  ;;  %v2215_v21 = vpop.f32.mrb[13].mxu0  ;;  %v2403_v29 = vmul.f32 %v5129_v17, %v2363_v14 }
 0x2a3   :  { %v2364_v4 = vmax.f32 %v2214_v16, 0.0  ;;  %2436 = vadd.xlane.f32.xlu0 %v2403_v29 }
 0x2a4   :  { %v2218_v1 = vpop.f32.mrb[14].mxu0 }
 0x2a5   :  { %v2219_v24 = vadd.f32 %v5123_v10, %v2218_v1  ;;  %v2220_v35 = vpop.f32.mrb[15].mxu0  ;;  %v2404_v25 = vmul.f32 %v5129_v17, %v2364_v4 }
 0x2a7   :  { %v2365_v28 = vmax.f32 %v2219_v24, 0.0  ;;  %2438 = vadd.xlane.f32.xlu0 %v2404_v25 }
 0x2a8   :  { %v2223_v42 = vpop.f32.mrb[16].mxu0 }
 0x2a9   :  { %v2224_v31 = vadd.f32 %v5123_v10, %v2223_v42  ;;  %v2225_v32 = vpop.f32.mrb[17].mxu0  ;;  %v2405_v49 = vmul.f32 %v5129_v17, %v2365_v28 }
 0x2ab   :  { %v2366_v37 = vmax.f32 %v2224_v31, 0.0  ;;  %2440 = vadd.xlane.f32.xlu0 %v2405_v49 }
 0x2ac   :  { %v2228_v3 = vpop.f32.mrb[18].mxu0 }
 0x2ad   :  { %v2229_v12 = vadd.f32 %v5123_v10, %v2228_v3  ;;  %v2230_v27 = vpop.f32.mrb[19].mxu0  ;;  %v2406_v38 = vmul.f32 %v5129_v17, %v2366_v37 }
 0x2af   :  { %v2367_v57 = vmax.f32 %v2229_v12, 0.0  ;;  %2442 = vadd.xlane.f32.xlu0 %v2406_v38 }
 0x2b0   :  { %v2233_v40 = vpop.f32.mrb[20].mxu0 }
 0x2b1   :  { %v2234_v6 = vadd.f32 %v5123_v10, %v2233_v40  ;;  %v2235_v43 = vpop.f32.mrb[21].mxu0  ;;  %v2407_v0 = vmul.f32 %v5129_v17, %v2367_v57 }
 0x2b3   :  { %v2368_v45 = vmax.f32 %v2234_v6, 0.0  ;;  %2444 = vadd.xlane.f32.xlu0 %v2407_v0 }
 0x2b4   :  { %v5143_v52 = vpop.f32.mrb[22].mxu0 }
 0x2b5   :  { %v2240_v46 = vpop.f32.mrb[23].mxu0  ;;  %v2408_v9 = vmul.f32 %v5129_v17, %v2368_v45 }
 0x2b7   :  { %2446 = vadd.xlane.f32.xlu0 %v2408_v9  ;;  %v4320_v9 = vmov 0  }
 0x2b8   :  { %v2243_v50 = vpop.f32.mrb[24].mxu0  ;;  %4002 = vset.pattern.permute.xlu0 %v4320_v9  ;;  %4003 = vset.pattern.permute.xlu1 %v4320_v9 }
 0x2b9   :  { %v2244_v54 = vadd.f32 %v5123_v10, %v2243_v50  ;;  %v2245_v23 = vpop.f32.mrb[25].mxu0 }
 0x2bb   :  { %v2370_v39 = vmax.f32 %v2244_v54, 0.0 }
 0x2bc   :  { %v2248_v44 = vpop.f32.mrb[26].mxu0 }
 0x2bd   :  { %v2249_v60 = vadd.f32 %v5123_v10, %v2248_v44  ;;  %v2250_v56 = vpop.f32.mrb[27].mxu0  ;;  %v2410_v59 = vmul.f32 %v5129_v17, %v2370_v39 }
 0x2bf   :  { %v2371_v51 = vmax.f32 %v2249_v60, 0.0  ;;  %2450 = vadd.xlane.f32.xlu1 %v2410_v59 }
 0x2c0   :  { %v2253_v30 = vpop.f32.mrb[28].mxu0 }
 0x2c1   :  { %v2254_v61 = vadd.f32 %v5123_v10, %v2253_v30  ;;  %v2255_v62 = vpop.f32.mrb[29].mxu0  ;;  %v2411_v36 = vmul.f32 %v5129_v17, %v2371_v51 }
 0x2c3   :  { %v2372_v5 = vmax.f32 %v2254_v61, 0.0  ;;  %2452 = vadd.xlane.f32.xlu1 %v2411_v36 }
 0x2c4   :  { %v2258_v7 = vpop.f32.mrb[30].mxu0 }
 0x2c5   :  { %v2259_v41 = vadd.f32 %v5123_v10, %v2258_v7  ;;  %v2260_v47 = vpop.f32.mrb[31].mxu0  ;;  %v2412_v53 = vmul.f32 %v5129_v17, %v2372_v5 }
 0x2c7   :  { %v2373_v58 = vmax.f32 %v2259_v41, 0.0  ;;  %2454 = vadd.xlane.f32.xlu1 %v2412_v53 }
 0x2c8   :  { %v2263_v63 = vpop.f32.mrb[32].mxu0 }
 0x2c9   :  { %v2264_v8 = vadd.f32 %v5123_v10, %v2263_v63  ;;  %v2265_v13 = vpop.f32.mrb[33].mxu0  ;;  %v2413_v19 = vmul.f32 %v5129_v17, %v2373_v58  ;;  %v2239_v58 = vadd.f32 %v5123_v10, %v5143_v52 }
 0x2cb   :  { %v2374_v26 = vmax.f32 %v2264_v8, 0.0  ;;  %2456 = vadd.xlane.f32.xlu1 %v2413_v19 }
 0x2cc   :  { %v2268_v20 = vpop.f32.mrb[34].mxu0 }
 0x2cd   :  { %v2269_v34 = vadd.f32 %v5123_v10, %v2268_v20  ;;  %v2270_v18 = vpop.f32.mrb[35].mxu0  ;;  %v2414_v48 = vmul.f32 %v5129_v17, %v2374_v26  ;;  %v2369_v26 = vmax.f32 %v2239_v58, 0.0 }
 0x2cf   :  { %v2375_v22 = vmax.f32 %v2269_v34, 0.0  ;;  %2458 = vadd.xlane.f32.xlu1 %v2414_v48 }
 0x2d0   :  { %v2273_v33 = vpop.f32.mrb[36].mxu0 }
 0x2d1   :  { %v2274_v55 = vadd.f32 %v5123_v10, %v2273_v33  ;;  %v2275_v2 = vpop.f32.mrb[37].mxu0  ;;  %v2415_v11 = vmul.f32 %v5129_v17, %v2375_v22 }
 0x2d3   :  { %v2376_v14 = vmax.f32 %v2274_v55, 0.0  ;;  %2460 = vadd.xlane.f32.xlu1 %v2415_v11  ;;  %v2409_v11 = vmul.f32 %v5129_v17, %v2369_v26 }
 0x2d4   :  { %v2278_v15 = vpop.f32.mrb[38].mxu0 }
 0x2d5   :  { %v2280_v16 = vpop.f32.mrb[39].mxu0  ;;  %v2416_v21 = vmul.f32 %v5129_v17, %v2376_v14  ;;  %v2279_v25 = vadd.f32 %v5123_v10, %v2278_v15 }
 0x2d7   :  { %2462 = vadd.xlane.f32.xlu1 %v2416_v21  ;;  %v2377_v37 = vmax.f32 %v2279_v25, 0.0 }
 0x2d8   :  { %v2283_v29 = vpop.f32.mrb[40].mxu0 }
 0x2d9   :  { %v2284_v4 = vadd.f32 %v5123_v10, %v2283_v29  ;;  %v2285_v1 = vpop.f32.mrb[41].mxu0  ;;  %v2417_v43 = vmul.f32 %v5129_v17, %v2377_v37 }
 0x2db   :  { %v2378_v24 = vmax.f32 %v2284_v4, 0.0 }
 0x2dc   :  { %v2288_v35 = vpop.f32.mrb[42].mxu0 }
 0x2dd   :  { %v2289_v28 = vadd.f32 %v5123_v10, %v2288_v35  ;;  %v2290_v42 = vpop.f32.mrb[43].mxu0  ;;  %v2418_v31 = vmul.f32 %v5129_v17, %v2378_v24 }
 0x2df   :  { %v2379_v32 = vmax.f32 %v2289_v28, 0.0  ;;  %2466 = vadd.xlane.f32.xlu0 %v2418_v31 }
 0x2e0   :  { %v2293_v49 = vpop.f32.mrb[44].mxu0 }
 0x2e1   :  { %v2294_v3 = vadd.f32 %v5123_v10, %v2293_v49  ;;  %v2295_v12 = vpop.f32.mrb[45].mxu0  ;;  %v2419_v27 = vmul.f32 %v5129_v17, %v2379_v32 }
 0x2e3   :  { %v2380_v38 = vmax.f32 %v2294_v3, 0.0  ;;  %2468 = vadd.xlane.f32.xlu1 %v2419_v27 }
 0x2e4   :  { %v2298_v57 = vpop.f32.mrb[46].mxu0 }
 0x2e5   :  { %v2299_v40 = vadd.f32 %v5123_v10, %v2298_v57  ;;  %v2300_v6 = vpop.f32.mrb[47].mxu0  ;;  %v2420_v0 = vmul.f32 %v5129_v17, %v2380_v38 }
 0x2e7   :  { %v2381_v45 = vmax.f32 %v2299_v40, 0.0  ;;  %2464 = vadd.xlane.f32.xlu1 %v2417_v43  ;;  %2470 = vadd.xlane.f32.xlu0 %v2420_v0 }
 0x2e8   :  { %v2303_v46 = vpop.f32.mrb[48].mxu0 }
 0x2e9   :  { %v2304_v50 = vadd.f32 %v5123_v10, %v2303_v46  ;;  %v2305_v54 = vpop.f32.mrb[49].mxu0  ;;  %v2421_v23 = vmul.f32 %v5129_v17, %v2381_v45 }
 0x2ea   :  { %v2531_v54 = vld [vmem:[%s6147_s2] sm:$0xff] }
 0x2eb   :  { %v2382_v39 = vmax.f32 %v2304_v50, 0.0  ;;  %2472 = vadd.xlane.f32.xlu0 %v2421_v23  ;;  %v5203_v23 = vstv %s6155_s10  ;;  %vm2563_vm1 = vcmp.gt.f32.partialorder %v2531_v54, 0.0 }
 0x2ec   :  { %v2308_v44 = vpop.f32.mrb[50].mxu0 }
 0x2ed   :  { %v2309_v60 = vadd.f32 %v5123_v10, %v2308_v44  ;;  %v2310_v56 = vpop.f32.mrb[51].mxu0  ;;  %v2422_v59 = vmul.f32 %v5129_v17, %v2382_v39  ;;  %v2532_v44 = vld [vmem:[%s6147_s2 + $0x8] sm:$0xff] }
 0x2ee   :  { %vm2564_vm3 = vcmp.gt.f32.partialorder %v2532_v44, 0.0 }
 0x2ef   :  { %v2383_v51 = vmax.f32 %v2309_v60, 0.0  ;;  %2474 = vadd.xlane.f32.xlu0 %v2422_v59 }
 0x2f0   :  { %v2313_v30 = vpop.f32.mrb[52].mxu0 }
 0x2f1   :  { %v2314_v61 = vadd.f32 %v5123_v10, %v2313_v30  ;;  %v2315_v62 = vpop.f32.mrb[53].mxu0  ;;  %v2423_v36 = vmul.f32 %v5129_v17, %v2383_v51  ;;  %v2533_v30 = vld [vmem:[%s6147_s2 + $0x10] sm:$0xff] }
 0x2f2   :  { %vm2565_vm4 = vcmp.gt.f32.partialorder %v2533_v30, 0.0 }
 0x2f3   :  { %v2384_v5 = vmax.f32 %v2314_v61, 0.0  ;;  %2476 = vadd.xlane.f32.xlu0 %v2423_v36 }
 0x2f4   :  { %v2318_v7 = vpop.f32.mrb[54].mxu0 }
 0x2f5   :  { %v2320_v41 = vpop.f32.mrb[55].mxu0  ;;  %v2424_v47 = vmul.f32 %v5129_v17, %v2384_v5  ;;  %v2319_v20 = vadd.f32 %v5123_v10, %v2318_v7 }
 0x2f7   :  { %2478 = vadd.xlane.f32.xlu0 %v2424_v47  ;;  %v2385_v55 = vmax.f32 %v2319_v20, 0.0 }
 0x2f8   :  { %v2323_v53 = vpop.f32.mrb[56].mxu0 }
 0x2f9   :  { %v2324_v63 = vadd.f32 %v5123_v10, %v2323_v53  ;;  %v2325_v8 = vpop.f32.mrb[57].mxu0  ;;  %v2425_v4 = vmul.f32 %v5129_v17, %v2385_v55  ;;  %v2534_v53 = vld [vmem:[%s6147_s2 + $0x18] sm:$0xff] }
 0x2fa   :  { %vm2566_vm5 = vcmp.gt.f32.partialorder %v2534_v53, 0.0 }
 0x2fb   :  { %v2386_v13 = vmax.f32 %v2324_v63, 0.0 }
 0x2fc   :  { %v2328_v19 = vpop.f32.mrb[58].mxu0 }
 0x2fd   :  { %v2329_v34 = vadd.f32 %v5123_v10, %v2328_v19  ;;  %v2330_v18 = vpop.f32.mrb[59].mxu0  ;;  %v2426_v48 = vmul.f32 %v5129_v17, %v2386_v13 }
 0x2ff   :  { %v2387_v22 = vmax.f32 %v2329_v34, 0.0  ;;  %2482 = vadd.xlane.f32.xlu0 %v2426_v48  ;;  %v2535_v48 = vld [vmem:[%s6147_s2 + $0x20] sm:$0xff] }
 0x300   :  { %v2333_v33 = vpop.f32.mrb[60].mxu0  ;;  %vm2567_vm6 = vcmp.gt.f32.partialorder %v2535_v48, 0.0 }
 0x301   :  { %v2334_v2 = vadd.f32 %v5123_v10, %v2333_v33  ;;  %v2335_v52 = vpop.f32.mrb[61].mxu0  ;;  %v2427_v14 = vmul.f32 %v5129_v17, %v2387_v22 }
 0x303   :  { %v2388_v15 = vmax.f32 %v2334_v2, 0.0  ;;  %2448 = vadd.xlane.f32.xlu0 %v2409_v11  ;;  %2484 = vadd.xlane.f32.xlu1 %v2427_v14 }
 0x304   :  { %v2338_v16 = vpop.f32.mrb[62].mxu0 }
 0x305   :  { %v2339_v21 = vadd.f32 %v5123_v10, %v2338_v16  ;;  %v2340_v29 = vpop.f32.mrb[63].mxu0  ;;  %v2428_v1 = vmul.f32 %v5129_v17, %v2388_v15 }
 0x306   :  { %v2536_v29 = vld [vmem:[%s6147_s2 + $0x28] sm:$0xff] }
 0x307   :  { %v2389_v24 = vmax.f32 %v2339_v21, 0.0  ;;  %2480 = vadd.xlane.f32.xlu0 %v2425_v4  ;;  %2486 = vadd.xlane.f32.xlu1 %v2428_v1  ;;  %vm2568_vm7 = vcmp.gt.f32.partialorder %v2536_v29, 0.0 }
 0x308   :  { %v2343_v35 = vpop.f32.mrb[64].mxu0 }
 0x309   :  { %v2344_v25 = vadd.f32 %v5123_v10, %v2343_v35  ;;  %v2345_v28 = vpop.f32.mrb[65].mxu0  ;;  %v2429_v42 = vmul.f32 %v5129_v17, %v2389_v24 }
 0x30b   :  { %v2390_v31 = vmax.f32 %v2344_v25, 0.0  ;;  %2488 = vadd.xlane.f32.xlu1 %v2429_v42 }
 0x30c   :  { %v2348_v32 = vpop.f32.mrb[66].mxu0 }
 0x30d   :  { %v2349_v49 = vadd.f32 %v5123_v10, %v2348_v32  ;;  %v2350_v37 = vpop.f32.mrb[67].mxu0  ;;  %v2430_v3 = vmul.f32 %v5129_v17, %v2390_v31 }
 0x30e   :  { %v2537_v37 = vld [vmem:[%s6147_s2 + $0x30] sm:$0xff] }
 0x30f   :  { %v2391_v12 = vmax.f32 %v2349_v49, 0.0  ;;  %2490 = vadd.xlane.f32.xlu1 %v2430_v3  ;;  %vm2569_vm8 = vcmp.gt.f32.partialorder %v2537_v37, 0.0 }
 0x310   :  { %v2353_v27 = vpop.f32.mrb[68].mxu0 }
 0x311   :  { %v2354_v38 = vadd.f32 %v5123_v10, %v2353_v27  ;;  %v2355_v57 = vpop.f32.mrb[69].mxu0  ;;  %v2431_v40 = vmul.f32 %v5129_v17, %v2391_v12 }
 0x313   :  { %v2392_v6 = vmax.f32 %v2354_v38, 0.0  ;;  %2492 = vadd.xlane.f32.xlu1 %v2431_v40 }
 0x314   :  { %v2358_v43 = vpop.f32.mrb[70].mxu0 }
 0x315   :  { %v2359_v0 = vadd.f32 %v5123_v10, %v2358_v43  ;;  %v2360_v45 = vpop.f32.mrb[71].mxu0  ;;  %v2432_v46 = vmul.f32 %v5129_v17, %v2392_v6 }
 0x317   :  { %v2393_v9 = vmax.f32 %v2359_v0, 0.0  ;;  %2494 = vadd.xlane.f32.xlu1 %v2432_v46 }
 0x319   :  { %v2433_v50 = vmul.f32 %v5129_v17, %v2393_v9 }
 0x31b   :  { %2496 = vadd.xlane.f32.xlu1 %v2433_v50 }
 0x32c   :  { %v2435_v39 = vpop.xlane.xlu0 %2434 }
 0x32d   :  { %v2499_v10 = vadd.f32 %v5203_v23, %v2435_v39 }
 0x32f   :  { %v2595_v17 = vsel %vm2563_vm1, %v2499_v10, -1024.0 }
 0x330   :  { %v2628_v60 = vsel %vm2627_vm2, %v2595_v17, -inf  ;;  %3727 = vst.msk [vmem:[%s6157_s12] sm:$0xff] %vm2627_vm2, %v2595_v17  ;;  %v2437_v56 = vpop.xlane.xlu0 %2436 }
 0x331   :  { %v2629_v59 = vrot.slane %v2628_v60, 4  ;;  %v2500_v51 = vadd.f32 %v5203_v23, %v2437_v56 }
 0x333   :  { %v2630_v61 = vmax.f32 %v2628_v60, %v2629_v59  ;;  %v2596_v62 = vsel %vm2564_vm3, %v2500_v51, -1024.0  ;;  %v2539_v51 = vld [vmem:[%s6147_s2 + $0x40] sm:$0xff] }
 0x334   :  { %v2635_v36 = vsel %vm2627_vm2, %v2596_v62, -inf  ;;  %3728 = vst.msk [vmem:[%s6157_s12 + $0x8] sm:$0xff] %vm2627_vm2, %v2596_v62  ;;  %v2439_v5 = vpop.xlane.xlu0 %2438  ;;  %vm2571_vm9 = vcmp.gt.f32.partialorder %v2539_v51, 0.0 }
 0x335   :  { %v2631_v7 = vrot.slane %v2630_v61, 2  ;;  %v2636_v41 = vrot.slane %v2635_v36, 4  ;;  %v2501_v47 = vadd.f32 %v5203_v23, %v2439_v5 }
 0x337   :  { %v2632_v58 = vmax.f32 %v2630_v61, %v2631_v7  ;;  %v2637_v63 = vmax.f32 %v2635_v36, %v2636_v41  ;;  %v2597_v8 = vsel %vm2565_vm4, %v2501_v47, -1024.0  ;;  %v2540_v47 = vld [vmem:[%s6147_s2 + $0x48] sm:$0xff] }
 0x338   :  { %v2642_v13 = vsel %vm2627_vm2, %v2597_v8, -inf  ;;  %3729 = vst.msk [vmem:[%s6157_s12 + $0x10] sm:$0xff] %vm2627_vm2, %v2597_v8  ;;  %v2441_v19 = vpop.xlane.xlu0 %2440  ;;  %vm2572_vm10 = vcmp.gt.f32.partialorder %v2540_v47, 0.0 }
 0x339   :  { %v2633_v26 = vrot.slane %v2632_v58, 1  ;;  %v2638_v20 = vrot.slane %v2637_v63, 2  ;;  %v2643_v34 = vrot.slane %v2642_v13, 4  ;;  %v2502_v18 = vadd.f32 %v5203_v23, %v2441_v19 }
 0x33b   :  { %v2634_v22 = vmax.f32 %v2632_v58, %v2633_v26  ;;  %v2639_v33 = vmax.f32 %v2637_v63, %v2638_v20  ;;  %v2644_v55 = vmax.f32 %v2642_v13, %v2643_v34  ;;  %v5236_v2 = vsel %vm2566_vm5, %v2502_v18, -1024.0 }
 0x33c   :  { %v2649_v52 = vsel %vm2627_vm2, %v5236_v2, -inf  ;;  %3730 = vst.msk [vmem:[%s6157_s12 + $0x18] sm:$0xff] %vm2627_vm2, %v5236_v2  ;;  %v2443_v11 = vpop.xlane.xlu0 %2442 }
 0x33d   :  { %v2852_v14 = vsub.f32 %v2595_v17, %v2634_v22  ;;  %v2640_v15 = vrot.slane %v2639_v33, 1  ;;  %v2645_v16 = vrot.slane %v2644_v55, 2  ;;  %v2650_v21 = vrot.slane %v2649_v52, 4 }
 0x33e   :  { %v2503_v4 = vadd.f32 %v5203_v23, %v2443_v11 }
 0x33f   :  { %v2884_v1 = vmul.f32 1.442695, %v2852_v14  ;;  %v2641_v24 = vmax.f32 %v2639_v33, %v2640_v15  ;;  %v2646_v35 = vmax.f32 %v2644_v55, %v2645_v16  ;;  %v2651_v25 = vmax.f32 %v2649_v52, %v2650_v21 }
 0x340   :  { %v2599_v28 = vsel %vm2567_vm6, %v2503_v4, -1024.0  ;;  %v2445_v42 = vpop.xlane.xlu0 %2444 }
 0x341   :  { %4008 = vpow2.f32 %v2884_v1  ;;  %v2853_v31 = vsub.f32 %v2596_v62, %v2641_v24  ;;  %v2647_v32 = vrot.slane %v2646_v35, 1  ;;  %v2652_v49 = vrot.slane %v2651_v25, 2  ;;  %3731 = vst.msk [vmem:[%s6157_s12 + $0x20] sm:$0xff] %vm2627_vm2, %v2599_v28 }
 0x342   :  { %v2656_v3 = vsel %vm2627_vm2, %v2599_v28, -inf  ;;  %v2504_v12 = vadd.f32 %v5203_v23, %v2445_v42 }
 0x343   :  { %v2886_v27 = vmul.f32 1.442695, %v2853_v31  ;;  %v2648_v38 = vmax.f32 %v2646_v35, %v2647_v32  ;;  %v2653_v57 = vmax.f32 %v2651_v25, %v2652_v49  ;;  %v2657_v40 = vrot.slane %v2656_v3, 4  ;;  %v2542_v31 = vld [vmem:[%s6147_s2 + $0x58] sm:$0xff] }
 0x344   :  { %v5258_v6 = vsel %vm2568_vm7, %v2504_v12, -1024.0  ;;  %v2447_v43 = vpop.xlane.xlu0 %2446  ;;  %vm2574_vm12 = vcmp.gt.f32.partialorder %v2542_v31, 0.0 }
 0x345   :  { %4010 = vpow2.f32 %v2886_v27  ;;  %v2854_v0 = vsub.f32 %v2597_v8, %v2648_v38  ;;  %v2654_v45 = vrot.slane %v2653_v57, 1  ;;  %v2658_v46 = vmax.f32 %v2656_v3, %v2657_v40  ;;  %3732 = vst.msk [vmem:[%s6157_s12 + $0x28] sm:$0xff] %vm2627_vm2, %v5258_v6  ;;  %v2543_v3 = vld [vmem:[%s6147_s2 + $0x60] sm:$0xff] }
 0x346   :  { %v2663_v9 = vsel %vm2627_vm2, %v5258_v6, -inf  ;;  %v2505_v50 = vadd.f32 %v5203_v23, %v2447_v43  ;;  %v2544_v43 = vld [vmem:[%s6147_s2 + $0x68] sm:$0xff]  ;;  %vm2575_vm13 = vcmp.gt.f32.partialorder %v2543_v3, 0.0 }
 0x347   :  { %v2659_v54 = vrot.slane %v2658_v46, 2  ;;  %v2664_v39 = vrot.slane %v2663_v9, 4  ;;  %v2888_v10 = vmul.f32 1.442695, %v2854_v0  ;;  %v2655_v44 = vmax.f32 %v2653_v57, %v2654_v45 }
 0x348   :  { %v5268_v17 = vsel %vm2569_vm8, %v2505_v50, -1024.0  ;;  %vm2576_vm14 = vcmp.gt.f32.partialorder %v2544_v43, 0.0 }
 0x349   :  { %v2660_v60 = vmax.f32 %v2658_v46, %v2659_v54  ;;  %v2665_v56 = vmax.f32 %v2663_v9, %v2664_v39  ;;  %3733 = vst.msk [vmem:[%s6157_s12 + $0x30] sm:$0xff] %vm2627_vm2, %v5268_v17  ;;  %v2670_v59 = vsel %vm2627_vm2, %v5268_v17, -inf  ;;  %4012 = vpow2.f32 %v2888_v10 }
 0x34a   :  { %v2671_v36 = vrot.slane %v2670_v59, 4  ;;  %v2855_v7 = vsub.f32 %v5236_v2, %v2655_v44  ;;  %v2541_v2 = vld [vmem:[%s6147_s2 + $0x50] sm:$0xff] }
 0x34b   :  { %v5280_v30 = vpop.eup %4008  ;;  %v2661_v61 = vrot.slane %v2660_v60, 1  ;;  %v2666_v62 = vrot.slane %v2665_v56, 2  ;;  %vm2573_vm11 = vcmp.gt.f32.partialorder %v2541_v2, 0.0 }
 0x34c   :  { %v2948_v5 = vsel %vm2627_vm2, %v5280_v30, 0.0  ;;  %v2451_v41 = vpop.xlane.xlu1 %2450  ;;  %v2672_v8 = vmax.f32 %v2670_v59, %v2671_v36  ;;  %v2890_v48 = vmul.f32 1.442695, %v2855_v7 }
 0x34d   :  { %v2949_v53 = vrot.slane %v2948_v5, 4  ;;  %v2662_v58 = vmax.f32 %v2660_v60, %v2661_v61  ;;  %v2667_v63 = vmax.f32 %v2665_v56, %v2666_v62  ;;  %v2507_v13 = vadd.f32 %v5203_v23, %v2451_v41  ;;  %v5349_v61 = vld [vmem:[%s6147_s2 + $0x70] sm:$0xff] }
 0x34e   :  { %v2673_v22 = vrot.slane %v2672_v8, 2  ;;  %4014 = vpow2.f32 %v2890_v48  ;;  %vm2577_vm15 = vcmp.gt.f32.partialorder %v5349_v61, 0.0 }
 0x34f   :  { %v5289_v19 = vpop.eup %4010  ;;  %v2950_v26 = vadd.f32 %v2949_v53, %v2948_v5  ;;  %v2856_v20 = vsub.f32 %v2599_v28, %v2662_v58  ;;  %v2668_v34 = vrot.slane %v2667_v63, 1  ;;  %v5293_v33 = vsel %vm2571_vm9, %v2507_v13, -1024.0 }
 0x350   :  { %v2955_v18 = vsel %vm2627_vm2, %v5289_v19, 0.0  ;;  %v2453_v55 = vpop.xlane.xlu1 %2452  ;;  %v2684_v15 = vsel %vm2627_vm2, %v5293_v33, -inf  ;;  %3735 = vst.msk [vmem:[%s6157_s12 + $0x40] sm:$0xff] %vm2627_vm2, %v5293_v33  ;;  %v2674_v16 = vmax.f32 %v2672_v8, %v2673_v22 }
 0x351   :  { %v2956_v52 = vrot.slane %v2955_v18, 4  ;;  %v2892_v11 = vmul.f32 1.442695, %v2856_v20  ;;  %v2669_v14 = vmax.f32 %v2667_v63, %v2668_v34  ;;  %v2685_v21 = vrot.slane %v2684_v15, 4 }
 0x352   :  { %v2508_v29 = vadd.f32 %v5203_v23, %v2453_v55  ;;  %v2951_v4 = vrot.slane %v2950_v26, 2  ;;  %v2675_v35 = vrot.slane %v2674_v16, 1 }
 0x353   :  { %v2957_v1 = vadd.f32 %v2956_v52, %v2955_v18  ;;  %v2857_v24 = vsub.f32 %v5258_v6, %v2669_v14  ;;  %v2686_v25 = vmax.f32 %v2684_v15, %v2685_v21  ;;  %4016 = vpow2.f32 %v2892_v11  ;;  %v5324_v12 = vpop.eup %4012 }
 0x354   :  { %v5308_v28 = vsel %vm2572_vm10, %v2508_v29, -1024.0  ;;  %v2455_v42 = vpop.xlane.xlu1 %2454  ;;  %v2676_v27 = vmax.f32 %v2674_v16, %v2675_v35  ;;  %v2952_v40 = vadd.f32 %v2951_v4, %v2950_v26  ;;  %v2962_v54 = vsel %vm2627_vm2, %v5324_v12, 0.0 }
 0x355   :  { %v2894_v32 = vmul.f32 1.442695, %v2857_v24  ;;  %v2691_v49 = vsel %vm2627_vm2, %v5308_v28, -inf  ;;  %3736 = vst.msk [vmem:[%s6157_s12 + $0x48] sm:$0xff] %vm2627_vm2, %v5308_v28  ;;  %v2509_v37 = vadd.f32 %v5203_v23, %v2455_v42  ;;  %v2687_v38 = vrot.slane %v2686_v25, 2 }
 0x356   :  { %v2692_v57 = vrot.slane %v2691_v49, 4  ;;  %v2958_v0 = vrot.slane %v2957_v1, 2  ;;  %v2858_v45 = vsub.f32 %v5268_v17, %v2676_v27  ;;  %v2953_v44 = vrot.slane %v2952_v40, 1 }
 0x357   :  { %4018 = vpow2.f32 %v2894_v32  ;;  %v5327_v6 = vsel %vm2573_vm11, %v2509_v37, -1024.0  ;;  %v2688_v46 = vmax.f32 %v2686_v25, %v2687_v38  ;;  %v2963_v5 = vrot.slane %v2962_v54, 4 }
 0x358   :  { %v2693_v9 = vmax.f32 %v2691_v49, %v2692_v57  ;;  %3737 = vst.msk [vmem:[%s6157_s12 + $0x50] sm:$0xff] %vm2627_vm2, %v5327_v6  ;;  %v2457_v50 = vpop.xlane.xlu1 %2456  ;;  %v2698_v39 = vsel %vm2627_vm2, %v5327_v6, -inf  ;;  %v2896_v59 = vmul.f32 1.442695, %v2858_v45  ;;  %v2954_v62 = vadd.f32 %v2953_v44, %v2952_v40  ;;  %v5359_v13 = vpop.eup %4014 }
 0x359   :  { %v2510_v10 = vadd.f32 %v5203_v23, %v2457_v50  ;;  %v2689_v17 = vrot.slane %v2688_v46, 1  ;;  %v2699_v56 = vrot.slane %v2698_v39, 4  ;;  %v2959_v36 = vadd.f32 %v2958_v0, %v2957_v1 }
 0x35a   :  { %v2694_v60 = vrot.slane %v2693_v9, 2  ;;  %4020 = vrcp.f32 %v2954_v62  ;;  %v2964_v16 = vadd.f32 %v2963_v5, %v2962_v54  ;;  %v2969_v1 = vsel %vm2627_vm2, %v5359_v13, 0.0 }
 0x35b   :  { %v5344_v51 = vsel %vm2574_vm12, %v2510_v10, -1024.0  ;;  %v2690_v7 = vmax.f32 %v2688_v46, %v2689_v17  ;;  %v2700_v47 = vmax.f32 %v2698_v39, %v2699_v56  ;;  %v2960_v8 = vrot.slane %v2959_v36, 1 }
 0x35c   :  { %v2695_v41 = vmax.f32 %v2693_v9, %v2694_v60  ;;  %3738 = vst.msk [vmem:[%s6157_s12 + $0x58] sm:$0xff] %vm2627_vm2, %v5344_v51  ;;  %v2459_v53 = vpop.xlane.xlu1 %2458  ;;  %v2705_v58 = vsel %vm2627_vm2, %v5344_v51, -inf  ;;  %4022 = vpow2.f32 %v2896_v59  ;;  %v2970_v43 = vrot.slane %v2969_v1, 4 }
 0x35d   :  { %v2511_v63 = vadd.f32 %v5203_v23, %v2459_v53  ;;  %v2860_v26 = vsub.f32 %v5293_v33, %v2690_v7  ;;  %v2701_v34 = vrot.slane %v2700_v47, 2  ;;  %v5363_v18 = vpop.eup %4016  ;;  %v2706_v48 = vrot.slane %v2705_v58, 4  ;;  %v2548_v7 = vld [vmem:[%s6147_s2 + $0x88] sm:$0xff] }
 0x35e   :  { %v2696_v20 = vrot.slane %v2695_v41, 1  ;;  %v2961_v55 = vadd.f32 %v2960_v8, %v2959_v36  ;;  %v2976_v24 = vsel %vm2627_vm2, %v5363_v18, 0.0  ;;  %v2965_v46 = vrot.slane %v2964_v16, 2 }
 0x35f   :  { %v5366_v22 = vsel %vm2575_vm13, %v2511_v63, -1024.0  ;;  %v2900_v2 = vmul.f32 1.442695, %v2860_v26  ;;  %v2702_v11 = vmax.f32 %v2700_v47, %v2701_v34  ;;  %v2707_v21 = vmax.f32 %v2705_v58, %v2706_v48 }
 0x360   :  { %v2697_v52 = vmax.f32 %v2695_v41, %v2696_v20  ;;  %v2712_v14 = vsel %vm2627_vm2, %v5366_v22, -inf  ;;  %3739 = vst.msk [vmem:[%s6157_s12 + $0x60] sm:$0xff] %vm2627_vm2, %v5366_v22  ;;  %v2461_v33 = vpop.xlane.xlu1 %2460  ;;  %v2977_v0 = vrot.slane %v2976_v24, 4  ;;  %v2966_v5 = vadd.f32 %v2965_v46, %v2964_v16  ;;  %v2546_v16 = vld [vmem:[%s6147_s2 + $0x78] sm:$0xff] }
 0x361   :  { %v5375_v15 = vpop.eup %4018  ;;  %v2713_v29 = vrot.slane %v2712_v14, 4  ;;  %v2512_v4 = vadd.f32 %v5203_v23, %v2461_v33  ;;  %v2703_v25 = vrot.slane %v2702_v11, 1  ;;  %4024 = vpow2.f32 %v2900_v2 }
 0x362   :  { %v2861_v35 = vsub.f32 %v5308_v28, %v2697_v52  ;;  %v2708_v42 = vrot.slane %v2707_v21, 2  ;;  %v2983_v49 = vsel %vm2627_vm2, %v5375_v15, 0.0  ;;  %4026 = vrcp.f32 %v2961_v55 }
 0x363   :  { %v2714_v31 = vmax.f32 %v2712_v14, %v2713_v29  ;;  %v5384_v32 = vsel %vm2576_vm14, %v2512_v4, -1024.0  ;;  %v2704_v37 = vmax.f32 %v2702_v11, %v2703_v25  ;;  %v2984_v44 = vrot.slane %v2983_v49, 4 }
 0x364   :  { %v2719_v3 = vsel %vm2627_vm2, %v5384_v32, -inf  ;;  %3740 = vst.msk [vmem:[%s6157_s12 + $0x68] sm:$0xff] %vm2627_vm2, %v5384_v32  ;;  %v2463_v28 = vpop.xlane.xlu1 %2462  ;;  %v2902_v27 = vmul.f32 1.442695, %v2861_v35  ;;  %v2709_v38 = vmax.f32 %v2707_v21, %v2708_v42  ;;  %v4021_v9 = vpop.eup %4020  ;;  %v2971_v41 = vadd.f32 %v2970_v43, %v2969_v1  ;;  %v2549_v21 = vld [vmem:[%s6147_s2 + $0x90] sm:$0xff] }
 0x365   :  { %v2715_v57 = vrot.slane %v2714_v31, 2  ;;  %v2720_v40 = vrot.slane %v2719_v3, 4  ;;  %v2513_v45 = vadd.f32 %v5203_v23, %v2463_v28  ;;  %v2862_v50 = vsub.f32 %v5327_v6, %v2704_v37  ;;  %v2547_v6 = vld [vmem:[%s6147_s2 + $0x80] sm:$0xff] }
 0x366   :  { %v2710_v54 = vrot.slane %v2709_v38, 1  ;;  %v3173_v60 = vmul.f32 %v4021_v9, %v5280_v30  ;;  %v5402_v56 = vpop.eup %4022  ;;  %4028 = vpow2.f32 %v2902_v27  ;;  %v2978_v47 = vadd.f32 %v2977_v0, %v2976_v24 }
 0x367   :  { %v2716_v39 = vmax.f32 %v2714_v31, %v2715_v57  ;;  %v2721_v10 = vmax.f32 %v2719_v3, %v2720_v40  ;;  %v5399_v17 = vsel %vm2577_vm15, %v2513_v45, -1024.0  ;;  %v2904_v53 = vmul.f32 1.442695, %v2862_v50  ;;  %v5456_v57 = vld [vmem:[%s6147_s2 + $0x98] sm:$0xff] }
 0x368   :  { %v2711_v59 = vmax.f32 %v2709_v38, %v2710_v54  ;;  %v2726_v36 = vsel %vm2627_vm2, %v5399_v17, -inf  ;;  %3741 = vst.msk [vmem:[%s6157_s12 + $0x70] sm:$0xff] %vm2627_vm2, %v5399_v17  ;;  %3238 = vperm.xlu0 %4002, %v3173_v60   ;;  %vm2579_vm1 = vcmp.gt.f32.partialorder %v2547_v6, 0.0  ;;  %v2967_v26 = vrot.slane %v2966_v5, 1 }
 0x369   :  { %v2717_v62 = vrot.slane %v2716_v39, 1  ;;  %v2722_v61 = vrot.slane %v2721_v10, 2  ;;  %v2727_v30 = vrot.slane %v2726_v36, 4  ;;  %v5419_v34 = vadd.f32 %v2984_v44, %v2983_v49 }
 0x36a   :  { %v5423_v48 = vsel %vm2627_vm2, %v5402_v56, 0.0  ;;  %v2863_v55 = vsub.f32 %v5344_v51, %v2711_v59  ;;  %vm2580_vm3 = vcmp.gt.f32.partialorder %v2548_v7, 0.0  ;;  %v2968_v33 = vadd.f32 %v2967_v26, %v2966_v5  ;;  %v2551_v26 = vld [vmem:[%s6147_s2 + $0xa0] sm:$0xff] }
 0x36b   :  { %v2718_v58 = vmax.f32 %v2716_v39, %v2717_v62  ;;  %v2728_v63 = vmax.f32 %v2726_v36, %v2727_v30  ;;  %v5417_v20 = vpop.eup %4024  ;;  %v2723_v52 = vmax.f32 %v2721_v10, %v2722_v61  ;;  %4030 = vpow2.f32 %v2904_v53 }
 0x36c   :  { %v2467_v8 = vpop.xlane.xlu0 %2466  ;;  %v4027_v2 = vpop.eup %4026  ;;  %v2972_v4 = vrot.slane %v2971_v41, 2  ;;  %v2979_v51 = vrot.slane %v2978_v47, 2  ;;  %4032 = vrcp.f32 %v2968_v33  ;;  %v2906_v42 = vmul.f32 1.442695, %v2863_v55 }
 0x36d   :  { %v2729_v11 = vrot.slane %v2728_v63, 2  ;;  %v2515_v14 = vadd.f32 %v5203_v23, %v2467_v8  ;;  %v3175_v29 = vmul.f32 %v4027_v2, %v5289_v19  ;;  %v2864_v1 = vsub.f32 %v5366_v22, %v2718_v58 }
 0x36e   :  { %vm2578_vm4 = vcmp.gt.f32.partialorder %v2546_v16, 0.0  ;;  %vm2581_vm5 = vcmp.gt.f32.partialorder %v2549_v21, 0.0  ;;  %v5447_v19 = vsel %vm2627_vm2, %v5417_v20, 0.0  ;;  %v2724_v22 = vrot.slane %v2723_v52, 1 }
 0x36f   :  { %v2730_v24 = vmax.f32 %v2728_v63, %v2729_v11  ;;  %v5436_v35 = vsel %vm2579_vm1, %v2515_v14, -1024.0  ;;  %3243 = vperm.xlu1 %4003, %v3175_v29   ;;  %v2991_v28 = vrot.slane %v5423_v48, 4  ;;  %v2973_v27 = vadd.f32 %v2972_v4, %v2971_v41  ;;  %v5506_v29 = vld [vmem:[%s6147_s2 + $0xa8] sm:$0xff] }
 0x370   :  { %v2469_v25 = vpop.xlane.xlu1 %2468  ;;  %v2740_v31 = vsel %vm2627_vm2, %v5436_v35, -inf  ;;  %3743 = vst.msk [vmem:[%s6157_s12 + $0x80] sm:$0xff] %vm2627_vm2, %v5436_v35  ;;  %v5450_v3 = vpop.eup %4028  ;;  %v2980_v38 = vadd.f32 %v2979_v51, %v2978_v47  ;;  %v2986_v40 = vrot.slane %v5419_v34, 2  ;;  %v2908_v43 = vmul.f32 1.442695, %v2864_v1 }
 0x371   :  { %v2741_v49 = vrot.slane %v2740_v31, 4  ;;  %v2516_v37 = vadd.f32 %v5203_v23, %v2469_v25  ;;  %v2731_v0 = vrot.slane %v2730_v24, 1  ;;  %v3005_v54 = vrot.slane %v5447_v19, 4 }
 0x372   :  { %4034 = vpow2.f32 %v2906_v42  ;;  %v2974_v10 = vrot.slane %v2973_v27, 1  ;;  %v3011_v44 = vsel %vm2627_vm2, %v5450_v3, 0.0  ;;  %v2725_v60 = vmax.f32 %v2723_v52, %v2724_v22 }
 0x373   :  { %v2742_v45 = vmax.f32 %v2740_v31, %v2741_v49  ;;  %v5460_v46 = vsel %vm2580_vm3, %v2516_v37, -1024.0  ;;  %vm2582_vm6 = vcmp.gt.f32.partialorder %v5456_v57, 0.0  ;;  %v2981_v30 = vrot.slane %v2980_v38, 1  ;;  %v5522_v49 = vld [vmem:[%s6147_s2 + $0xb0] sm:$0xff] }
 0x374   :  { %v2465_v9 = vpop.xlane.xlu1 %2464  ;;  %v2471_v50 = vpop.xlane.xlu0 %2470  ;;  %v2747_v39 = vsel %vm2627_vm2, %v5460_v46, -inf  ;;  %3744 = vst.msk [vmem:[%s6157_s12 + $0x88] sm:$0xff] %vm2627_vm2, %v5460_v46  ;;  %v2975_v36 = vadd.f32 %v2974_v10, %v2973_v27  ;;  %4036 = vpow2.f32 %v2908_v43  ;;  %v2732_v5 = vmax.f32 %v2730_v24, %v2731_v0 }
 0x375   :  { %v2743_v59 = vrot.slane %v2742_v45, 2  ;;  %v2748_v62 = vrot.slane %v2747_v39, 4  ;;  %v2514_v6 = vadd.f32 %v5203_v23, %v2465_v9  ;;  %v2517_v61 = vadd.f32 %v5203_v23, %v2471_v50  ;;  %v5475_v53 = vpop.eup %4030 }
 0x376   :  { %4038 = vrcp.f32 %v2975_v36  ;;  %v2982_v8 = vadd.f32 %v2981_v30, %v2980_v38  ;;  %v4033_v55 = vpop.eup %4032  ;;  %v3012_v2 = vrot.slane %v3011_v44, 4  ;;  %v2865_v52 = vsub.f32 %v5384_v32, %v2725_v60 }
 0x377   :  { %v2744_v7 = vmax.f32 %v2742_v45, %v2743_v59  ;;  %v2749_v41 = vmax.f32 %v2747_v39, %v2748_v62  ;;  %v5478_v58 = vsel %vm2578_vm4, %v2514_v6, -1024.0  ;;  %v5481_v63 = vsel %vm2581_vm5, %v2517_v61, -1024.0 }
 0x378   :  { %v2473_v47 = vpop.xlane.xlu0 %2472  ;;  %3742 = vst.msk [vmem:[%s6157_s12 + $0x78] sm:$0xff] %vm2627_vm2, %v5478_v58  ;;  %3745 = vst.msk [vmem:[%s6157_s12 + $0x90] sm:$0xff] %vm2627_vm2, %v5481_v63  ;;  %v2987_v14 = vadd.f32 %v2986_v40, %v5419_v34  ;;  %v3177_v16 = vmul.f32 %v4033_v55, %v5324_v12  ;;  %v2733_v32 = vsel %vm2627_vm2, %v5478_v58, -inf  ;;  %v2754_v21 = vsel %vm2627_vm2, %v5481_v63, -inf }
 0x379   :  { %v2750_v11 = vrot.slane %v2749_v41, 2  ;;  %v2745_v33 = vrot.slane %v2744_v7, 1  ;;  %v5509_v4 = vadd.f32 %v2991_v28, %v5423_v48  ;;  %v2734_v1 = vrot.slane %v2733_v32, 4 }
 0x37a   :  { %vm2583_vm7 = vcmp.gt.f32.partialorder %v2551_v26, 0.0  ;;  %v3018_v12 = vsel %vm2627_vm2, %v5475_v53, 0.0  ;;  %v2866_v24 = vsub.f32 %v5399_v17, %v2732_v5  ;;  %3248 = vperm.xlu1 %4003, %v3177_v16   ;;  %v2755_v25 = vrot.slane %v2754_v21, 4 }
 0x37b   :  { %v2751_v51 = vmax.f32 %v2749_v41, %v2750_v11  ;;  %4040 = vrcp.f32 %v2982_v8  ;;  %v5515_v42 = vadd.f32 %v3005_v54, %v5447_v19  ;;  %v2910_v31 = vmul.f32 1.442695, %v2865_v52 }
 0x37c   :  { %v2475_v34 = vpop.xlane.xlu0 %2474  ;;  %v2735_v22 = vmax.f32 %v2733_v32, %v2734_v1  ;;  %v2518_v48 = vadd.f32 %v5203_v23, %v2473_v47  ;;  %vm2584_vm8 = vcmp.gt.f32.partialorder %v5506_v29, 0.0  ;;  %v5524_v37 = vpop.eup %4034  ;;  %v5526_v17 = vadd.f32 %v3012_v2, %v3011_v44 }
 0x37d   :  { %v2746_v28 = vmax.f32 %v2744_v7, %v2745_v33  ;;  %v2756_v27 = vmax.f32 %v2754_v21, %v2755_v25  ;;  %v2988_v38 = vrot.slane %v2987_v14, 1  ;;  %v3019_v19 = vrot.slane %v3018_v12, 4  ;;  %v5573_v21 = vld [vmem:[%s6147_s2 + $0x38] sm:$0xff] }
 0x37e   :  { %v2752_v40 = vrot.slane %v2751_v51, 1  ;;  %v2736_v43 = vrot.slane %v2735_v22, 2  ;;  %v2519_v0 = vadd.f32 %v5203_v23, %v2475_v34  ;;  %v2912_v45 = vmul.f32 1.442695, %v2866_v24  ;;  %v5534_v10 = vpop.eup %4036 }
 0x37f   :  { %v2757_v9 = vrot.slane %v2756_v27, 2  ;;  %v5531_v50 = vsel %vm2582_vm6, %v2518_v48, -1024.0  ;;  %v2989_v54 = vadd.f32 %v2988_v38, %v2987_v14  ;;  %vm2585_vm9 = vcmp.gt.f32.partialorder %v5522_v49, 0.0  ;;  %v5587_v48 = vld [vmem:[%s6147_s2 + $0xc8] sm:$0xff] }
 0x380   :  { %v2477_v39 = vpop.xlane.xlu0 %2476  ;;  %v3025_v44 = vsel %vm2627_vm2, %v5524_v37, 0.0  ;;  %4042 = vpow2.f32 %v2910_v31  ;;  %v2737_v60 = vmax.f32 %v2735_v22, %v2736_v43  ;;  %v2761_v59 = vsel %vm2627_vm2, %v5531_v50, -inf  ;;  %3746 = vst.msk [vmem:[%s6157_s12 + $0x98] sm:$0xff] %vm2627_vm2, %v5531_v50  ;;  %v4039_v57 = vpop.eup %4038 }
 0x381   :  { %v2868_v62 = vsub.f32 %v5436_v35, %v2746_v28  ;;  %v2758_v36 = vmax.f32 %v2756_v27, %v2757_v9  ;;  %v2762_v6 = vrot.slane %v2761_v59, 4  ;;  %4044 = vrcp.f32 %v2989_v54 }
 0x382   :  { %v2753_v61 = vmax.f32 %v2751_v51, %v2752_v40  ;;  %v3179_v30 = vmul.f32 %v4039_v57, %v5359_v13  ;;  %v2738_v5 = vrot.slane %v2737_v60, 1  ;;  %v5548_v7 = vsel %vm2583_vm7, %v2519_v0, -1024.0  ;;  %v5562_v13 = vld [vmem:[%s6147_s2 + $0xc0] sm:$0xff] }
 0x383   :  { %v5550_v41 = vadd.f32 %v3019_v19, %v3018_v12  ;;  %4046 = vpow2.f32 %v2912_v45  ;;  %v2763_v47 = vmax.f32 %v2761_v59, %v2762_v6  ;;  %v2768_v8 = vsel %vm2627_vm2, %v5548_v7, -inf  ;;  %3747 = vst.msk [vmem:[%s6157_s12 + $0xa0] sm:$0xff] %vm2627_vm2, %v5548_v7 }
 0x384   :  { %v3026_v35 = vrot.slane %v3025_v44, 4  ;;  %3253 = vperm.xlu1 %4003, %v3179_v30   ;;  %v2739_v26 = vmax.f32 %v2737_v60, %v2738_v5  ;;  %v2759_v55 = vrot.slane %v2758_v36, 1  ;;  %v2769_v2 = vrot.slane %v2768_v8, 4  ;;  %v2479_v32 = vpop.xlane.xlu0 %2478 }
 0x385   :  { %v4041_v52 = vpop.eup %4040  ;;  %v5566_v11 = vsel %vm2627_vm2, %v5534_v10, 0.0  ;;  %v2764_v14 = vrot.slane %v2763_v47, 2  ;;  %v2993_v33 = vrot.slane %v5509_v4, 2  ;;  %v2520_v16 = vadd.f32 %v5203_v23, %v2477_v39 }
 0x386   :  { %v2916_v51 = vmul.f32 1.442695, %v2868_v62  ;;  %v2869_v1 = vsub.f32 %v5460_v46, %v2753_v61  ;;  %v3181_v34 = vmul.f32 %v4041_v52, %v5363_v18  ;;  %v2770_v12 = vmax.f32 %v2768_v8, %v2769_v2 }
 0x387   :  { %vm2587_vm10 = vcmp.gt.f32.partialorder %v5562_v13, 0.0  ;;  %v2867_v24 = vsub.f32 %v5478_v58, %v2739_v26  ;;  %v2765_v25 = vmax.f32 %v2763_v47, %v2764_v14  ;;  %v2994_v31 = vadd.f32 %v2993_v33, %v5509_v4 }
 0x388   :  { %v5582_v22 = vsel %vm2584_vm8, %v2520_v16, -1024.0  ;;  %v2760_v46 = vmax.f32 %v2758_v36, %v2759_v55  ;;  %3258 = vperm.xlu1 %4003, %v3181_v34   ;;  %v2771_v18 = vrot.slane %v2770_v12, 2  ;;  %v2521_v58 = vadd.f32 %v5203_v23, %v2479_v32 }
 0x389   :  { %v2775_v28 = vsel %vm2627_vm2, %v5582_v22, -inf  ;;  %3748 = vst.msk [vmem:[%s6157_s12 + $0xa8] sm:$0xff] %vm2627_vm2, %v5582_v22  ;;  %vm2570_vm11 = vcmp.gt.f32.partialorder %v5573_v21, 0.0  ;;  %v5598_v29 = vadd.f32 %v3026_v35, %v3025_v44  ;;  %v2766_v4 = vrot.slane %v2765_v25, 1 }
 0x38a   :  { %v2995_v27 = vrot.slane %v2994_v31, 1  ;;  %v2776_v38 = vrot.slane %v2775_v28, 4  ;;  %v5600_v19 = vpop.eup %4042  ;;  %v2918_v40 = vmul.f32 1.442695, %v2869_v1  ;;  %v2772_v43 = vmax.f32 %v2770_v12, %v2771_v18 }
 0x38b   :  { %v5604_v0 = vsel %vm2585_vm9, %v2521_v58, -1024.0  ;;  %v3014_v45 = vrot.slane %v5526_v17, 2  ;;  %vm2588_vm12 = vcmp.gt.f32.partialorder %v5587_v48, 0.0  ;;  %v4045_v54 = vpop.eup %4044  ;;  %v3033_v39 = vrot.slane %v5566_v11, 4 }
 0x38c   :  { %v2483_v9 = vpop.xlane.xlu0 %2482  ;;  %4048 = vpow2.f32 %v2916_v51  ;;  %v2914_v44 = vmul.f32 1.442695, %v2867_v24  ;;  %v2996_v60 = vadd.f32 %v2995_v27, %v2994_v31  ;;  %3749 = vst.msk [vmem:[%s6157_s12 + $0xb0] sm:$0xff] %vm2627_vm2, %v5604_v0  ;;  %v2870_v49 = vsub.f32 %v5481_v63, %v2760_v46 }
 0x38d   :  { %v3183_v59 = vmul.f32 %v4045_v54, %v5375_v15  ;;  %v2773_v57 = vrot.slane %v2772_v43, 1  ;;  %v2777_v62 = vmax.f32 %v2775_v28, %v2776_v38  ;;  %v5616_v36 = vpop.eup %4046  ;;  %v2767_v6 = vmax.f32 %v2765_v25, %v2766_v4  ;;  %v5624_v15 = vld [vmem:[%s6147_s2 + $0xb8] sm:$0xff] }
 0x38e   :  { %4050 = vrcp.f32 %v2996_v60  ;;  %v2782_v61 = vsel %vm2627_vm2, %v5604_v0, -inf  ;;  %v3015_v30 = vadd.f32 %v3014_v45, %v5526_v17  ;;  %v3039_v26 = vsel %vm2627_vm2, %v5600_v19, 0.0 }
 0x38f   :  { %4052 = vpow2.f32 %v2918_v40  ;;  %3263 = vperm.xlu1 %4003, %v3183_v59   ;;  %v2774_v5 = vmax.f32 %v2772_v43, %v2773_v57  ;;  %v2778_v47 = vrot.slane %v2777_v62, 2  ;;  %v2783_v8 = vrot.slane %v2782_v61, 4  ;;  %v5672_v43 = vld [vmem:[%s6147_s2 + $0xd8] sm:$0xff] }
 0x390   :  { %v2449_v35 = vpop.xlane.xlu0 %2448  ;;  %v2485_v63 = vpop.xlane.xlu1 %2484  ;;  %4054 = vpow2.f32 %v2914_v44  ;;  %v3016_v55 = vrot.slane %v3015_v30, 1  ;;  %v2523_v2 = vadd.f32 %v5203_v23, %v2483_v9  ;;  %v3046_v17 = vsel %vm2627_vm2, %v5616_v36, 0.0 }
 0x391   :  { %v2920_v52 = vmul.f32 1.442695, %v2870_v49  ;;  %v2779_v14 = vmax.f32 %v2777_v62, %v2778_v47  ;;  %v2784_v33 = vmax.f32 %v2782_v61, %v2783_v8  ;;  %v2871_v16 = vsub.f32 %v5531_v50, %v2767_v6 }
 0x392   :  { %v3017_v32 = vadd.f32 %v3016_v55, %v3015_v30  ;;  %v5634_v51 = vsel %vm2587_vm10, %v2523_v2, -1024.0  ;;  %v2506_v1 = vadd.f32 %v5203_v23, %v2449_v35  ;;  %vm2586_vm13 = vcmp.gt.f32.partialorder %v5624_v15, 0.0 }
 0x393   :  { %v3040_v34 = vrot.slane %v3039_v26, 4  ;;  %v2872_v12 = vsub.f32 %v5548_v7, %v2774_v5  ;;  %v2780_v24 = vrot.slane %v2779_v14, 1  ;;  %v2785_v25 = vrot.slane %v2784_v33, 2  ;;  %3751 = vst.msk [vmem:[%s6157_s12 + $0xc0] sm:$0xff] %vm2627_vm2, %v5634_v51  ;;  %v5654_v7 = vld [vmem:[%s6147_s2 + $0xd0] sm:$0xff] }
 0x394   :  { %v2487_v50 = vpop.xlane.xlu1 %2486  ;;  %4056 = vrcp.f32 %v3017_v32  ;;  %v2796_v13 = vsel %vm2627_vm2, %v5634_v51, -inf  ;;  %v5648_v31 = vsel %vm2570_vm11, %v2506_v1, -1024.0  ;;  %v2524_v46 = vadd.f32 %v5203_v23, %v2485_v63 }
 0x395   :  { %v3047_v18 = vrot.slane %v3046_v17, 4  ;;  %4058 = vpow2.f32 %v2920_v52  ;;  %v2786_v28 = vmax.f32 %v2784_v33, %v2785_v25  ;;  %v2797_v58 = vrot.slane %v2796_v13, 4  ;;  %3734 = vst.msk [vmem:[%s6157_s12 + $0x38] sm:$0xff] %vm2627_vm2, %v5648_v31  ;;  %v5705_v33 = vld [vmem:[%s6147_s2 + $0xe0] sm:$0xff] }
 0x396   :  { %v5661_v21 = vpop.eup %4048  ;;  %v2922_v4 = vmul.f32 1.442695, %v2871_v16  ;;  %v2781_v27 = vmax.f32 %v2779_v14, %v2780_v24  ;;  %v2677_v38 = vsel %vm2627_vm2, %v5648_v31, -inf  ;;  %v5667_v40 = vsel %vm2588_vm12, %v2524_v46, -1024.0 }
 0x397   :  { %v5675_v45 = vadd.f32 %v3033_v39, %v5566_v11  ;;  %v2924_v9 = vmul.f32 1.442695, %v2872_v12  ;;  %v2787_v54 = vrot.slane %v2786_v28, 1  ;;  %3752 = vst.msk [vmem:[%s6157_s12 + $0xc8] sm:$0xff] %vm2627_vm2, %v5667_v40  ;;  %v3028_v48 = vrot.slane %v5598_v29, 2  ;;  %v2481_v39 = vpop.xlane.xlu0 %2480 }
 0x398   :  { %vm2589_vm14 = vcmp.gt.f32.partialorder %v5654_v7, 0.0  ;;  %v2489_v44 = vpop.xlane.xlu1 %2488  ;;  %v4051_v60 = vpop.eup %4050  ;;  %v5684_v49 = vadd.f32 %v3040_v34, %v3039_v26  ;;  %v2798_v59 = vmax.f32 %v2796_v13, %v2797_v58  ;;  %v2678_v57 = vrot.slane %v2677_v38, 4 }
 0x399   :  { %v2803_v11 = vsel %vm2627_vm2, %v5667_v40, -inf  ;;  %v5688_v62 = vpop.eup %4052  ;;  %v5690_v6 = vadd.f32 %v3047_v18, %v3046_v17  ;;  %v3060_v61 = vsel %vm2627_vm2, %v5661_v21, 0.0  ;;  %v3185_v30 = vmul.f32 %v4051_v60, %v5402_v56 }
 0x39a   :  { %v2788_v5 = vmax.f32 %v2786_v28, %v2787_v54  ;;  %vm2590_vm15 = vcmp.gt.f32.partialorder %v5672_v43, 0.0  ;;  %v5696_v47 = vpop.eup %4054  ;;  %4060 = vpow2.f32 %v2922_v4  ;;  %v2873_v8 = vsub.f32 %v5582_v22, %v2781_v27 }
 0x39b   :  { %v2679_v35 = vmax.f32 %v2677_v38, %v2678_v57  ;;  %v2804_v63 = vrot.slane %v2803_v11, 4  ;;  %4062 = vpow2.f32 %v2924_v9  ;;  %3268 = vperm.xlu1 %4003, %v3185_v30   ;;  %v2799_v26 = vrot.slane %v2798_v59, 2  ;;  %v5744_v57 = vld [vmem:[%s6147_s2 + $0xe8] sm:$0xff] }
 0x39c   :  { %v3029_v55 = vadd.f32 %v3028_v48, %v5598_v29  ;;  %v2522_v2 = vadd.f32 %v5203_v23, %v2481_v39  ;;  %v3061_v17 = vrot.slane %v3060_v61, 4  ;;  %v2874_v56 = vsub.f32 %v5604_v0, %v2788_v5  ;;  %v5707_v22 = vpop.xlane.xlu1 %2490  ;;  %v5749_v39 = vld [vmem:[%s6147_s2 + $0xf0] sm:$0xff] }
 0x39d   :  { %v2680_v52 = vrot.slane %v2679_v35, 2  ;;  %v2805_v14 = vmax.f32 %v2803_v11, %v2804_v63  ;;  %v3067_v16 = vsel %vm2627_vm2, %v5688_v62, 0.0  ;;  %v5713_v29 = vsel %vm2627_vm2, %v5696_v47, 0.0 }
 0x39e   :  { %v3030_v32 = vrot.slane %v3029_v55, 1  ;;  %v5717_v0 = vsel %vm2586_vm13, %v2522_v2, -1024.0  ;;  %v4057_v1 = vpop.eup %4056  ;;  %v2926_v34 = vmul.f32 1.442695, %v2873_v8  ;;  %v2525_v25 = vadd.f32 %v5203_v23, %v2487_v50 }
 0x39f   :  { %v2681_v12 = vmax.f32 %v2679_v35, %v2680_v52  ;;  %v2806_v24 = vrot.slane %v2805_v14, 2  ;;  %3750 = vst.msk [vmem:[%s6157_s12 + $0xb8] sm:$0xff] %vm2627_vm2, %v5717_v0  ;;  %v5725_v13 = vpop.eup %4058  ;;  %v3191_v46 = vmul.f32 %v4057_v1, %v5450_v3  ;;  %v2800_v18 = vmax.f32 %v2798_v59, %v2799_v26 }
 0x3a0   :  { %v3031_v15 = vadd.f32 %v3030_v32, %v3029_v55  ;;  %v2789_v28 = vsel %vm2627_vm2, %v5717_v0, -inf  ;;  %vm2591_vm1 = vcmp.gt.f32.partialorder %v5705_v33, 0.0  ;;  %v5731_v58 = vadd.f32 %v3061_v17, %v3060_v61  ;;  %v2493_v11 = vpop.xlane.xlu1 %2492 }
 0x3a1   :  { %v3068_v4 = vrot.slane %v3067_v16, 4  ;;  %v2928_v27 = vmul.f32 1.442695, %v2874_v56  ;;  %v2682_v38 = vrot.slane %v2681_v12, 1  ;;  %v3054_v9 = vrot.slane %v5713_v29, 4  ;;  %3283 = vperm.xlu0 %4002, %v3191_v46  }
 0x3a2   :  { %v2807_v50 = vmax.f32 %v2805_v14, %v2806_v24  ;;  %4064 = vrcp.f32 %v3031_v15  ;;  %v2790_v54 = vrot.slane %v2789_v28, 4  ;;  %v3074_v3 = vsel %vm2627_vm2, %v5725_v13, 0.0 }
 0x3a3   :  { %v2683_v48 = vmax.f32 %v2681_v12, %v2682_v38  ;;  %v5738_v60 = vsel %vm2589_vm14, %v2525_v25, -1024.0  ;;  %v2526_v59 = vadd.f32 %v5203_v23, %v2489_v44  ;;  %4066 = vpow2.f32 %v2926_v34  ;;  %v5785_v12 = vld [vmem:[%s6147_s2 + $0xf8] sm:$0xff] }
 0x3a4   :  { %v2801_v61 = vrot.slane %v2800_v18, 1  ;;  %v2808_v30 = vrot.slane %v2807_v50, 1  ;;  %v2810_v7 = vsel %vm2627_vm2, %v5738_v60, -inf  ;;  %3753 = vst.msk [vmem:[%s6157_s12 + $0xd0] sm:$0xff] %vm2627_vm2, %v5738_v60  ;;  %v5758_v44 = vpop.eup %4060  ;;  %4068 = vpow2.f32 %v2928_v27  ;;  %v2495_v15 = vpop.xlane.xlu1 %2494 }
 0x3a5   :  { %v2859_v5 = vsub.f32 %v5648_v31, %v2683_v48  ;;  %v2811_v8 = vrot.slane %v2810_v7, 4  ;;  %v5763_v35 = vsel %vm2590_vm15, %v2526_v59, -1024.0  ;;  %v5765_v63 = vpop.eup %4062  ;;  %v2791_v55 = vmax.f32 %v2789_v28, %v2790_v54 }
 0x3a6   :  { %v2809_v26 = vmax.f32 %v2807_v50, %v2808_v30  ;;  %v2817_v2 = vsel %vm2627_vm2, %v5763_v35, -inf  ;;  %3754 = vst.msk [vmem:[%s6157_s12 + $0xd8] sm:$0xff] %vm2627_vm2, %v5763_v35  ;;  %v3042_v31 = vrot.slane %v5684_v49, 2  ;;  %vm2592_vm3 = vcmp.gt.f32.partialorder %v5744_v57, 0.0 }
 0x3a7   :  { %vm2593_vm4 = vcmp.gt.f32.partialorder %v5749_v39, 0.0  ;;  %v5777_v43 = vadd.f32 %v3068_v4, %v3067_v16  ;;  %v3075_v17 = vrot.slane %v3074_v3, 4  ;;  %v2898_v56 = vmul.f32 1.442695, %v2859_v5 }
 0x3a8   :  { %v2812_v52 = vmax.f32 %v2810_v7, %v2811_v8  ;;  %v3081_v14 = vsel %vm2627_vm2, %v5758_v44, 0.0  ;;  %v2802_v32 = vmax.f32 %v2800_v18, %v2801_v61  ;;  %v2877_v1 = vsub.f32 %v5667_v40, %v2809_v26 }
 0x3a9   :  { %v2818_v34 = vrot.slane %v2817_v2, 4  ;;  %v3088_v24 = vsel %vm2627_vm2, %v5765_v63, 0.0  ;;  %v3043_v25 = vadd.f32 %v3042_v31, %v5684_v49  ;;  %v2527_v46 = vadd.f32 %v5203_v23, %v5707_v22  ;;  %v2497_v31 = vpop.xlane.xlu1 %2496 }
 0x3aa   :  { %v2813_v16 = vrot.slane %v2812_v52, 2  ;;  %v5793_v18 = vadd.f32 %v3054_v9, %v5713_v29  ;;  %v2934_v40 = vmul.f32 1.442695, %v2877_v1  ;;  %v2792_v28 = vrot.slane %v2791_v55, 2 }
 0x3ab   :  { %v2819_v4 = vmax.f32 %v2817_v2, %v2818_v34  ;;  %4070 = vpow2.f32 %v2898_v56  ;;  %v3044_v38 = vrot.slane %v3043_v25, 1  ;;  %v5797_v50 = vsel %vm2591_vm1, %v2527_v46, -1024.0 }
 0x3ac   :  { %v2814_v27 = vmax.f32 %v2812_v52, %v2813_v16  ;;  %vm2594_vm5 = vcmp.gt.f32.partialorder %v5785_v12, 0.0  ;;  %v4065_v49 = vpop.eup %4064  ;;  %v3082_v54 = vrot.slane %v3081_v14, 4  ;;  %v3089_v48 = vrot.slane %v3088_v24, 4  ;;  %3755 = vst.msk [vmem:[%s6157_s12 + $0xe0] sm:$0xff] %vm2627_vm2, %v5797_v50 }
 0x3ad   :  { %v2876_v22 = vsub.f32 %v5634_v51, %v2802_v32  ;;  %v2820_v59 = vrot.slane %v2819_v4, 2  ;;  %4072 = vpow2.f32 %v2934_v40  ;;  %v3195_v29 = vmul.f32 %v4065_v49, %v5524_v37  ;;  %v5809_v61 = vpop.eup %4066 }
 0x3ae   :  { %v3045_v33 = vadd.f32 %v3044_v38, %v3043_v25  ;;  %v2824_v9 = vsel %vm2627_vm2, %v5797_v50, -inf  ;;  %v5811_v30 = vadd.f32 %v3075_v17, %v3074_v3  ;;  %v2793_v7 = vmax.f32 %v2791_v55, %v2792_v28  ;;  %v5813_v8 = vpop.eup %4068 }
 0x3af   :  { %v2821_v51 = vmax.f32 %v2819_v4, %v2820_v59  ;;  %v2825_v5 = vrot.slane %v2824_v9, 4  ;;  %3293 = vperm.xlu0 %4002, %v3195_v29   ;;  %v2815_v26 = vrot.slane %v2814_v27, 1  ;;  %v2528_v2 = vadd.f32 %v5203_v23, %v2493_v11 }
 0x3b0   :  { %4074 = vrcp.f32 %v3045_v33  ;;  %v2529_v37 = vadd.f32 %v5203_v23, %v2495_v15  ;;  %v5817_v56 = vadd.f32 %v3082_v54, %v3081_v14  ;;  %v2932_v52 = vmul.f32 1.442695, %v2876_v22 }
 0x3b1   :  { %v2822_v32 = vrot.slane %v2821_v51, 1  ;;  %v2826_v1 = vmax.f32 %v2824_v9, %v2825_v5  ;;  %v5819_v3 = vadd.f32 %v3089_v48, %v3088_v24  ;;  %v5823_v55 = vsel %vm2627_vm2, %v5809_v61, 0.0 }
 0x3b2   :  { %v5827_v17 = vsel %vm2592_vm3, %v2528_v2, -1024.0  ;;  %v5831_v11 = vsel %vm2593_vm4, %v2529_v37, -1024.0  ;;  %v3102_v14 = vsel %vm2627_vm2, %v5813_v8, 0.0  ;;  %v2530_v57 = vadd.f32 %v5203_v23, %v2497_v31 }
 0x3b3   :  { %v2823_v34 = vmax.f32 %v2821_v51, %v2822_v32  ;;  %v2827_v16 = vrot.slane %v2826_v1, 2  ;;  %3756 = vst.msk [vmem:[%s6157_s12 + $0xe8] sm:$0xff] %vm2627_vm2, %v5827_v17  ;;  %3757 = vst.msk [vmem:[%s6157_s12 + $0xf0] sm:$0xff] %vm2627_vm2, %v5831_v11  ;;  %v2794_v39 = vrot.slane %v2793_v7, 1  ;;  %v2816_v24 = vmax.f32 %v2814_v27, %v2815_v26 }
 0x3b4   :  { %v2831_v25 = vsel %vm2627_vm2, %v5827_v17, -inf  ;;  %v2838_v46 = vsel %vm2627_vm2, %v5831_v11, -inf  ;;  %4076 = vpow2.f32 %v2932_v52  ;;  %v3096_v38 = vrot.slane %v5823_v55, 4 }
 0x3b5   :  { %v2879_v15 = vsub.f32 %v5763_v35, %v2823_v34  ;;  %v2828_v40 = vmax.f32 %v2826_v1, %v2827_v16  ;;  %v2832_v28 = vrot.slane %v2831_v25, 4  ;;  %v5851_v4 = vpop.eup %4070  ;;  %v3103_v49 = vrot.slane %v3102_v14, 4 }
 0x3b6   :  { %v2839_v54 = vrot.slane %v2838_v46, 4  ;;  %v3056_v23 = vrot.slane %v5793_v18, 2  ;;  %v5857_v59 = vsel %vm2594_vm5, %v2530_v57, -1024.0  ;;  %v5861_v35 = vmax.f32 %v2793_v7, %v2794_v39 }
 0x3b7   :  { %v2938_v27 = vmul.f32 1.442695, %v2879_v15  ;;  %v2829_v48 = vrot.slane %v2828_v40, 1  ;;  %v2833_v22 = vmax.f32 %v2831_v25, %v2832_v28  ;;  %v5859_v29 = vpop.eup %4072  ;;  %v2878_v33 = vsub.f32 %v5738_v60, %v2816_v24  ;;  %3758 = vst.msk [vmem:[%s6157_s12 + $0xf8] sm:$0xff] %vm2627_vm2, %v5857_v59 }
 0x3b8   :  { %v2840_v9 = vmax.f32 %v2838_v46, %v2839_v54  ;;  %v2845_v51 = vsel %vm2627_vm2, %v5857_v59, -inf  ;;  %v2997_v12 = vsel %vm2627_vm2, %v5851_v4, 0.0  ;;  %v3057_v60 = vadd.f32 %v3056_v23, %v5793_v18 }
 0x3b9   :  { %4078 = vpow2.f32 %v2938_v27  ;;  %v2830_v5 = vmax.f32 %v2828_v40, %v2829_v48  ;;  %v2834_v26 = vrot.slane %v2833_v22, 2  ;;  %v2846_v37 = vrot.slane %v2845_v51, 4 }
 0x3ba   :  { %v4075_v7 = vpop.eup %4074  ;;  %v2841_v2 = vrot.slane %v2840_v9, 2  ;;  %v3070_v31 = vrot.slane %v5777_v43, 2  ;;  %v3123_v52 = vsel %vm2627_vm2, %v5859_v29, 0.0  ;;  %v3058_v39 = vrot.slane %v3057_v60, 1 }
 0x3bb   :  { %v3199_v32 = vmul.f32 %v4075_v7, %v5600_v19  ;;  %v2880_v1 = vsub.f32 %v5797_v50, %v2830_v5  ;;  %v2835_v34 = vmax.f32 %v2833_v22, %v2834_v26  ;;  %v2847_v57 = vmax.f32 %v2845_v51, %v2846_v37 }
 0x3bc   :  { %v2842_v16 = vmax.f32 %v2840_v9, %v2841_v2  ;;  %v3071_v24 = vadd.f32 %v3070_v31, %v5777_v43  ;;  %v2998_v25 = vrot.slane %v2997_v12, 4  ;;  %v2936_v46 = vmul.f32 1.442695, %v2878_v33 }
 0x3bd   :  { %3303 = vperm.xlu0 %4002, %v3199_v32   ;;  %v2836_v15 = vrot.slane %v2835_v34, 1  ;;  %v3077_v18 = vrot.slane %v5811_v30, 2  ;;  %v3124_v40 = vrot.slane %v3123_v52, 4  ;;  %v2848_v54 = vrot.slane %v2847_v57, 2 }
 0x3be   :  { %v2843_v28 = vrot.slane %v2842_v16, 1  ;;  %v3059_v23 = vadd.f32 %v3058_v39, %v3057_v60  ;;  %v5881_v27 = vpop.eup %4076  ;;  %v3104_v19 = vadd.f32 %v3103_v49, %v3102_v14  ;;  %v3072_v48 = vrot.slane %v3071_v24, 1 }
 0x3bf   :  { %v2837_v50 = vmax.f32 %v2835_v34, %v2836_v15  ;;  %v3091_v22 = vrot.slane %v5819_v3, 2  ;;  %v2940_v9 = vmul.f32 1.442695, %v2880_v1  ;;  %v2849_v51 = vmax.f32 %v2847_v57, %v2848_v54 }
 0x3c0   :  { %4080 = vrcp.f32 %v3059_v23  ;;  %v3078_v43 = vadd.f32 %v3077_v18, %v5811_v30  ;;  %v2999_v33 = vadd.f32 %v2998_v25, %v2997_v12  ;;  %v3073_v26 = vadd.f32 %v3072_v48, %v3071_v24 }
 0x3c1   :  { %4082 = vpow2.f32 %v2936_v46  ;;  %v2881_v5 = vsub.f32 %v5827_v17, %v2837_v50  ;;  %v3125_v7 = vadd.f32 %v3124_v40, %v3123_v52  ;;  %v2844_v2 = vmax.f32 %v2842_v16, %v2843_v28 }
 0x3c2   :  { %v2850_v37 = vrot.slane %v2849_v51, 1  ;;  %v3079_v60 = vrot.slane %v3078_v43, 1  ;;  %4084 = vrcp.f32 %v3073_v26  ;;  %v3092_v49 = vadd.f32 %v3091_v22, %v5819_v3 }
 0x3c3   :  { %v5886_v31 = vpop.eup %4078  ;;  %v2942_v14 = vmul.f32 1.442695, %v2881_v5  ;;  %v3105_v32 = vrot.slane %v3104_v19, 2  ;;  %v2875_v1 = vsub.f32 %v5717_v0, %v5861_v35  ;;  %4086 = vpow2.f32 %v2940_v9 }
 0x3c4   :  { %v3137_v30 = vsel %vm2627_vm2, %v5886_v31, 0.0  ;;  %v2851_v17 = vmax.f32 %v2849_v51, %v2850_v37  ;;  %v3080_v52 = vadd.f32 %v3079_v60, %v3078_v43  ;;  %v3093_v34 = vrot.slane %v3092_v49, 1 }
 0x3c5   :  { %v3138_v12 = vrot.slane %v3137_v30, 4  ;;  %4088 = vpow2.f32 %v2942_v14  ;;  %v2882_v16 = vsub.f32 %v5831_v11, %v2844_v2  ;;  %v3106_v39 = vadd.f32 %v3105_v32, %v3104_v19 }
 0x3c6   :  { %v2883_v57 = vsub.f32 %v5857_v59, %v2851_v17  ;;  %v3126_v24 = vrot.slane %v3125_v7, 2  ;;  %4090 = vrcp.f32 %v3080_v52  ;;  %v3094_v25 = vadd.f32 %v3093_v34, %v3092_v49 }
 0x3c7   :  { %v3139_v3 = vadd.f32 %v3138_v12, %v3137_v30  ;;  %v3000_v46 = vrot.slane %v2999_v33, 2  ;;  %v3107_v35 = vrot.slane %v3106_v39, 1  ;;  %v3007_v18 = vrot.slane %v5515_v42, 2 }
 0x3c8   :  { %v2946_v0 = vmul.f32 1.442695, %v2883_v57  ;;  %v3127_v15 = vadd.f32 %v3126_v24, %v3125_v7  ;;  %4092 = vrcp.f32 %v3094_v25  ;;  %v3021_v28 = vrot.slane %v5550_v41, 2 }
 0x3c9   :  { %v3001_v40 = vadd.f32 %v3000_v46, %v2999_v33  ;;  %v3140_v54 = vrot.slane %v3139_v3, 2  ;;  %v2944_v11 = vmul.f32 1.442695, %v2882_v16  ;;  %v3108_v59 = vadd.f32 %v3107_v35, %v3106_v39 }
 0x3ca   :  { %v4081_v23 = vpop.eup %4080  ;;  %4094 = vpow2.f32 %v2946_v0  ;;  %v3128_v19 = vrot.slane %v3127_v15, 1  ;;  %v2930_v48 = vmul.f32 1.442695, %v2875_v1  ;;  %v3008_v51 = vadd.f32 %v3007_v18, %v5515_v42 }
 0x3cb   :  { %v5897_v50 = vpop.eup %4082  ;;  %v3203_v22 = vmul.f32 %v4081_v23, %v5696_v47  ;;  %v3002_v9 = vrot.slane %v3001_v40, 1  ;;  %4096 = vrcp.f32 %v3108_v59  ;;  %v3022_v33 = vadd.f32 %v3021_v28, %v5550_v41 }
 0x3cc   :  { %v3129_v43 = vadd.f32 %v3128_v19, %v3127_v15  ;;  %v3141_v5 = vadd.f32 %v3140_v54, %v3139_v3  ;;  %v4085_v26 = vpop.eup %4084  ;;  %v3116_v7 = vsel %vm2627_vm2, %v5881_v27, 0.0  ;;  %v3009_v37 = vrot.slane %v3008_v51, 1 }
 0x3cd   :  { %3313 = vperm.xlu0 %4002, %v3203_v22   ;;  %v3003_v2 = vadd.f32 %v3002_v9, %v3001_v40  ;;  %v3035_v60 = vrot.slane %v5675_v45, 2  ;;  %v5905_v14 = vpop.eup %4086  ;;  %4098 = vpow2.f32 %v2944_v11  ;;  %v3207_v47 = vmul.f32 %v4085_v26, %v5688_v62 }
 0x3ce   :  { %v3023_v42 = vrot.slane %v3022_v33, 1  ;;  %v3142_v49 = vrot.slane %v3141_v5, 1  ;;  %v3010_v41 = vadd.f32 %v3009_v37, %v3008_v51  ;;  %v3049_v30 = vrot.slane %v5690_v6, 2 }
 0x3cf   :  { %v5908_v32 = vpop.eup %4088  ;;  %4100 = vrcp.f32 %v3003_v2  ;;  %v3036_v1 = vadd.f32 %v3035_v60, %v5675_v45  ;;  %v3063_v52 = vrot.slane %v5731_v58, 2  ;;  %v3117_v39 = vrot.slane %v3116_v7, 4 }
 0x3d0   :  { %v3151_v17 = vsel %vm2627_vm2, %v5908_v32, 0.0  ;;  %4102 = vrcp.f32 %v3129_v43  ;;  %v3143_v12 = vadd.f32 %v3142_v49, %v3141_v5  ;;  %v4091_v34 = vpop.eup %4090  ;;  %v3024_v62 = vadd.f32 %v3023_v42, %v3022_v33 }
 0x3d1   :  { %v3152_v16 = vrot.slane %v3151_v17, 4  ;;  %3323 = vperm.xlu0 %4002, %v3207_v47   ;;  %4104 = vrcp.f32 %v3010_v41  ;;  %v3037_v57 = vrot.slane %v3036_v1, 1  ;;  %v3050_v24 = vadd.f32 %v3049_v30, %v5690_v6 }
 0x3d2   :  { %4106 = vpow2.f32 %v2930_v48  ;;  %v4093_v45 = vpop.eup %4092  ;;  %v3097_v3 = vadd.f32 %v3096_v38, %v5823_v55  ;;  %v3130_v25 = vsel %vm2627_vm2, %v5897_v50, 0.0  ;;  %v3209_v0 = vmul.f32 %v4091_v34, %v5725_v13 }
 0x3d3   :  { %v3153_v46 = vadd.f32 %v3152_v16, %v3151_v17  ;;  %4108 = vrcp.f32 %v3143_v12  ;;  %v3038_v15 = vadd.f32 %v3037_v57, %v3036_v1  ;;  %v3051_v18 = vrot.slane %v3050_v24, 1 }
 0x3d4   :  { %v5922_v35 = vpop.eup %4094  ;;  %v3064_v40 = vadd.f32 %v3063_v52, %v5731_v58  ;;  %4110 = vrcp.f32 %v3024_v62  ;;  %v3084_v55 = vrot.slane %v5817_v56, 2  ;;  %v3118_v54 = vadd.f32 %v3117_v39, %v3116_v7 }
 0x3d5   :  { %v3165_v6 = vsel %vm2627_vm2, %v5922_v35, 0.0  ;;  %3328 = vperm.xlu0 %4002, %v3209_v0   ;;  %v3154_v28 = vrot.slane %v3153_v46, 2  ;;  %v4097_v38 = vpop.eup %4096  ;;  %v3131_v11 = vrot.slane %v3130_v25, 4  ;;  %v3144_v13 = vsel %vm2627_vm2, %v5905_v14, 0.0 }
 0x3d6   :  { %v3166_v23 = vrot.slane %v3165_v6, 4  ;;  %v3213_v59 = vmul.f32 %v4093_v45, %v5765_v63  ;;  %4112 = vrcp.f32 %v3038_v15  ;;  %v3052_v22 = vadd.f32 %v3051_v18, %v3050_v24 }
 0x3d7   :  { %v3155_v19 = vadd.f32 %v3154_v28, %v3153_v46  ;;  %v5931_v48 = vpop.eup %4098  ;;  %v3065_v9 = vrot.slane %v3064_v40, 1  ;;  %v3217_v43 = vmul.f32 %v4097_v38, %v5813_v8  ;;  %v3085_v5 = vadd.f32 %v3084_v55, %v5817_v56 }
 0x3d8   :  { %v3167_v58 = vadd.f32 %v3166_v23, %v3165_v6  ;;  %v3098_v26 = vrot.slane %v3097_v3, 2  ;;  %v3132_v60 = vadd.f32 %v3131_v11, %v3130_v25  ;;  %v3145_v47 = vrot.slane %v3144_v13, 4 }
 0x3d9   :  { %v4101_v51 = vpop.eup %4100  ;;  %3338 = vperm.xlu0 %4002, %v3213_v59   ;;  %v3156_v33 = vrot.slane %v3155_v19, 1  ;;  %v3158_v42 = vsel %vm2627_vm2, %v5931_v48, 0.0  ;;  %4114 = vrcp.f32 %v3052_v22  ;;  %v3066_v8 = vadd.f32 %v3065_v9, %v3064_v40 }
 0x3da   :  { %v4103_v7 = vpop.eup %4102  ;;  %v3187_v2 = vmul.f32 %v4101_v51, %v5851_v4  ;;  %v3168_v37 = vrot.slane %v3167_v58, 2  ;;  %v3119_v30 = vrot.slane %v3118_v54, 2  ;;  %v3086_v4 = vrot.slane %v3085_v5, 1 }
 0x3db   :  { %v4105_v63 = vpop.eup %4104  ;;  %v3157_v49 = vadd.f32 %v3156_v33, %v3155_v19  ;;  %v3223_v56 = vmul.f32 %v4103_v7, %v5859_v29  ;;  %v3099_v17 = vadd.f32 %v3098_v26, %v3097_v3  ;;  %v3146_v57 = vadd.f32 %v3145_v47, %v3144_v13 }
 0x3dc   :  { %v5938_v41 = vpop.eup %4106  ;;  %3273 = vperm.xlu1 %4003, %v3187_v2   ;;  %v3169_v1 = vadd.f32 %v3168_v37, %v3167_v58  ;;  %v3189_v52 = vmul.f32 %v4105_v63, %v5417_v20  ;;  %v3159_v39 = vrot.slane %v3158_v42, 4  ;;  %v3120_v45 = vadd.f32 %v3119_v30, %v3118_v54 }
 0x3dd   :  { %3348 = vperm.xlu0 %4002, %v3217_v43   ;;  %4116 = vrcp.f32 %v3157_v49  ;;  %v4109_v12 = vpop.eup %4108  ;;  %v3109_v62 = vsel %vm2627_vm2, %v5938_v41, 0.0  ;;  %v3133_v25 = vrot.slane %v3132_v60, 2  ;;  %v3087_v46 = vadd.f32 %v3086_v4, %v3085_v5 }
 0x3de   :  { %v3170_v34 = vrot.slane %v3169_v1, 1  ;;  %v4111_v16 = vpop.eup %4110  ;;  %v3227_v29 = vmul.f32 %v4109_v12, %v5886_v31  ;;  %4118 = vrcp.f32 %v3066_v8  ;;  %v3100_v3 = vrot.slane %v3099_v17, 1 }
 0x3df   :  { %v3193_v20 = vmul.f32 %v4111_v16, %v5475_v53  ;;  %v3110_v15 = vrot.slane %v3109_v62, 4  ;;  %v3121_v18 = vrot.slane %v3120_v45, 1  ;;  %v3134_v40 = vadd.f32 %v3133_v25, %v3132_v60 }
 0x3e0   :  { %3278 = vperm.xlu1 %4003, %v3189_v52   ;;  %v3171_v24 = vadd.f32 %v3170_v34, %v3169_v1  ;;  %v4113_v0 = vpop.eup %4112  ;;  %v3160_v6 = vadd.f32 %v3159_v39, %v3158_v42  ;;  %v3101_v28 = vadd.f32 %v3100_v3, %v3099_v17  ;;  %v3147_v55 = vrot.slane %v3146_v57, 2 }
 0x3e1   :  { %3363 = vperm.xlu0 %4002, %v3223_v56   ;;  %v3197_v54 = vmul.f32 %v4113_v0, %v5534_v10  ;;  %v3122_v11 = vadd.f32 %v3121_v18, %v3120_v45  ;;  %v3135_v13 = vrot.slane %v3134_v40, 1  ;;  %v3111_v53 = vadd.f32 %v3110_v15, %v3109_v62  ;;  %v4139_v45 = vld [vmem:[%s6146_s1 + $0x18] sm:$0xff]  ;;  %v4140_v0 = vld [vmem:[%s6146_s1 + $0x20] sm:$0xff] }
 0x3e2   :  { %4120 = vrcp.f32 %v3171_v24  ;;  %v3148_v59 = vadd.f32 %v3147_v55, %v3146_v57  ;;  %v3161_v19 = vrot.slane %v3160_v6, 2  ;;  %vm3684_vm2 = vcmask 1041409  }
 0x3e3   :  { %4122 = vrcp.f32 %v3087_v46  ;;  %v4115_v38 = vpop.eup %4114  ;;  %v3136_v51 = vadd.f32 %v3135_v13, %v3134_v40  ;;  %v3112_v5 = vrot.slane %v3111_v53, 2  ;;  %vm3686_vm6 = vcmask 1042434  }
 0x3e4   :  { %3288 = vperm.xlu1 %4003, %v3193_v20   ;;  %4124 = vrcp.f32 %v3101_v28  ;;  %v3201_v58 = vmul.f32 %v4115_v38, %v5616_v36  ;;  %v3149_v43 = vrot.slane %v3148_v59, 1  ;;  %v3162_v33 = vadd.f32 %v3161_v19, %v3160_v6  ;;  %v4141_v38 = vld [vmem:[%s6146_s1 + $0x28] sm:$0xff] }
 0x3e5   :  { %3373 = vperm.xlu0 %4002, %v3227_v29   ;;  %4126 = vrcp.f32 %v3122_v11  ;;  %v3113_v36 = vadd.f32 %v3112_v5, %v3111_v53  ;;  %v4142_v53 = vld [vmem:[%s6146_s1 + $0x30] sm:$0xff]  ;;  %vm3688_vm7 = vcmask 1043459   ;;  %vm3690_vm8 = vcmask 1044484  }
 0x3e6   :  { %4128 = vrcp.f32 %v3136_v51  ;;  %v3150_v7 = vadd.f32 %v3149_v43, %v3148_v59  ;;  %v3163_v2 = vrot.slane %v3162_v33, 1  ;;  %vm3692_vm9 = vcmask 1045509  }
 0x3e7   :  { %v4117_v31 = vpop.eup %4116  ;;  %v3114_v47 = vrot.slane %v3113_v36, 1  ;;  %v3239_v16 = vpop.permute.xlu0 %3238  ;;  %vm3694_vm10 = vcmask 1046534   ;;  %vm3696_vm11 = vcmask 1047559  }
 0x3e8   :  { %3298 = vperm.xlu1 %4003, %v3197_v54   ;;  %v3231_v23 = vmul.f32 %v4117_v31, %v5908_v32  ;;  %v4119_v22 = vpop.eup %4118  ;;  %4130 = vrcp.f32 %v3150_v7  ;;  %v3164_v60 = vadd.f32 %v3163_v2, %v3162_v33  ;;  %v4143_v2 = vld [vmem:[%s6146_s1 + $0x48] sm:$0xff] }
 0x3e9   :  { %v3205_v32 = vmul.f32 %v4119_v22, %v5661_v21  ;;  %v3115_v21 = vadd.f32 %v3114_v47, %v3113_v36 }
 0x3ea   :  { %3383 = vperm.xlu0 %4002, %v3231_v23   ;;  %4132 = vrcp.f32 %v3164_v60 }
 0x3eb   :  { %4134 = vrcp.f32 %v3115_v21 }
 0x3ec   :  { %v4121_v9 = vpop.eup %4120  ;;  %3308 = vperm.xlu1 %4003, %v3201_v58  }
 0x3ed   :  { %v3235_v10 = vmul.f32 %v4121_v9, %v5922_v35  ;;  %v4123_v26 = vpop.eup %4122 }
 0x3ee   :  { %v3211_v37 = vmul.f32 %v4123_v26, %v5758_v44  ;;  %v4125_v63 = vpop.eup %4124  ;;  %v3244_v12 = vpop.permute.xlu1 %3243 }
 0x3ef   :  { %3393 = vperm.xlu0 %4002, %v3235_v10   ;;  %v4127_v35 = vpop.eup %4126  ;;  %v3215_v42 = vmul.f32 %v4125_v63, %v5809_v61 }
 0x3f0   :  { %3318 = vperm.xlu1 %4003, %v3205_v32   ;;  %v3221_v49 = vmul.f32 %v4127_v35, %v5881_v27  ;;  %v4129_v8 = vpop.eup %4128 }
 0x3f1   :  { %v3225_v1 = vmul.f32 %v4129_v8, %v5897_v50  ;;  %v4136_v50 = vld [vmem:[%s6146_s1 + $0x8] sm:$0xff] }
 0x3f2   :  { %v4131_v30 = vpop.eup %4130  ;;  %v3397_v62 = vmul.f32 %v4136_v50, %v3244_v12 }
 0x3f3   :  { %v3229_v44 = vmul.f32 %v4131_v30, %v5905_v14  ;;  %v4137_v14 = vld [vmem:[%s6146_s1] sm:$0xff] }
 0x3f4   :  { %3333 = vperm.xlu1 %4003, %v3211_v37   ;;  %v4133_v56 = vpop.eup %4132  ;;  %v3435_v29 = vsel %vm154_vm0, %v3397_v62, 0.0 }
 0x3f5   :  { %v3233_v4 = vmul.f32 %v4133_v56, %v5931_v48  ;;  %v4135_v17 = vpop.eup %4134  ;;  %v3396_v48 = vmul.f32 %v4137_v14, %v3239_v16  ;;  %v3436_v18 = vrot.slane %v3435_v29, 4  ;;  %v4144_v56 = vld [vmem:[%s6146_s1 + $0x58] sm:$0xff] }
 0x3f6   :  { %v3219_v61 = vmul.f32 %v4135_v17, %v5938_v41  ;;  %v4138_v41 = vld [vmem:[%s6146_s1 + $0x10] sm:$0xff] }
 0x3f7   :  { %v3428_v46 = vsel %vm154_vm0, %v3396_v48, 0.0  ;;  %v3437_v13 = vadd.f32 %v3436_v18, %v3435_v29 }
 0x3f8   :  { %3343 = vperm.xlu1 %4003, %v3215_v42   ;;  %v3429_v28 = vrot.slane %v3428_v46, 4 }
 0x3f9   :  { %v3249_v27 = vpop.permute.xlu1 %3248  ;;  %v3438_v43 = vrot.slane %v3437_v13, 2 }
 0x3fa   :  { %v3398_v57 = vmul.f32 %v4138_v41, %v3249_v27  ;;  %v3430_v19 = vadd.f32 %v3429_v28, %v3428_v46  ;;  %v4147_v28 = vld [vmem:[%s6146_s1 + $0x78] sm:$0xff] }
 0x3fb   :  { %v3439_v60 = vadd.f32 %v3438_v43, %v3437_v13 }
 0x3fc   :  { %3358 = vperm.xlu1 %4003, %v3221_v49   ;;  %v3442_v3 = vsel %vm154_vm0, %v3398_v57, 0.0  ;;  %v3431_v32 = vrot.slane %v3430_v19, 2 }
 0x3fd   :  { %v3443_v55 = vrot.slane %v3442_v3, 4 }
 0x3fe   :  { %v3432_v42 = vadd.f32 %v3431_v32, %v3430_v19 }
 0x3ff   :  { %v3444_v58 = vadd.f32 %v3443_v55, %v3442_v3 }
 0x400   :  { %3368 = vperm.xlu1 %4003, %v3225_v1   ;;  %v3433_v12 = vrot.slane %v3432_v42, 1 }
 0x401   :  { %v3445_v26 = vrot.slane %v3444_v58, 2 }
 0x402   :  { %v3434_v29 = vadd.f32 %v3433_v12, %v3432_v42 }
 0x403   :  { %v3254_v52 = vpop.permute.xlu1 %3253  ;;  %v3446_v21 = vadd.f32 %v3445_v26, %v3444_v58 }
 0x404   :  { %3378 = vperm.xlu1 %4003, %v3229_v44   ;;  %v3399_v25 = vmul.f32 %v4139_v45, %v3254_v52  ;;  %v3440_v44 = vrot.slane %v3439_v60, 1  ;;  %v4146_v45 = vld [vmem:[%s6146_s1 + $0x38] sm:$0xff] }
 0x405   :  { %v3447_v27 = vrot.slane %v3446_v21, 1 }
 0x406   :  { %v3449_v40 = vsel %vm154_vm0, %v3399_v25, 0.0  ;;  %v3441_v48 = vadd.f32 %v3440_v44, %v3439_v60 }
 0x407   :  { %v3259_v34 = vpop.permute.xlu1 %3258  ;;  %v3450_v31 = vrot.slane %v3449_v40, 4  ;;  %v3448_v46 = vadd.f32 %v3447_v27, %v3446_v21 }
 0x408   :  { %3388 = vperm.xlu1 %4003, %v3233_v4   ;;  %v3400_v20 = vmul.f32 %v4140_v0, %v3259_v34  ;;  %v4145_v34 = vld [vmem:[%s6146_s1 + $0x68] sm:$0xff] }
 0x409   :  { %v3451_v51 = vadd.f32 %v3450_v31, %v3449_v40 }
 0x40a   :  { %v3456_v23 = vsel %vm154_vm0, %v3400_v20, 0.0 }
 0x40b   :  { %v3457_v22 = vrot.slane %v3456_v23, 4  ;;  %v3452_v37 = vrot.slane %v3451_v51, 2 }
 0x40c   :  { %3353 = vperm.xlu1 %4003, %v3219_v61  }
 0x40d   :  { %v3458_v7 = vadd.f32 %v3457_v22, %v3456_v23  ;;  %v3453_v1 = vadd.f32 %v3452_v37, %v3451_v51  ;;  %v4149_v37 = vld [vmem:[%s6146_s1 + $0x50] sm:$0xff] }
 0x40e   :  { %v3264_v39 = vpop.permute.xlu1 %3263 }
 0x40f   :  { %v3401_v54 = vmul.f32 %v4141_v38, %v3264_v39  ;;  %v3459_v49 = vrot.slane %v3458_v7, 2  ;;  %v3454_v50 = vrot.slane %v3453_v1, 1 }
 0x411   :  { %v3463_v9 = vsel %vm154_vm0, %v3401_v54, 0.0  ;;  %v3460_v52 = vadd.f32 %v3459_v49, %v3458_v7  ;;  %v3455_v20 = vadd.f32 %v3454_v50, %v3453_v1  ;;  %v4152_v50 = vld [vmem:[%s6146_s1 + $0x60] sm:$0xff] }
 0x412   :  { %v3464_v5 = vrot.slane %v3463_v9, 4 }
 0x413   :  { %v3461_v3 = vrot.slane %v3460_v52, 1 }
 0x414   :  { %v3465_v47 = vadd.f32 %v3464_v5, %v3463_v9 }
 0x415   :  { %v3462_v58 = vadd.f32 %v3461_v3, %v3460_v52 }
 0x416   :  { %v3466_v17 = vrot.slane %v3465_v47, 2 }
 0x418   :  { %v3467_v39 = vadd.f32 %v3466_v17, %v3465_v47  ;;  %v4150_v47 = vld [vmem:[%s6146_s1 + $0x88] sm:$0xff] }
 0x41a   :  { %v3269_v6 = vpop.permute.xlu1 %3268  ;;  %v3468_v31 = vrot.slane %v3467_v39, 1 }
 0x41b   :  { %v3402_v59 = vmul.f32 %v4142_v53, %v3269_v6  ;;  %v3685_v6 = vsel %vm3684_vm2, %v3441_v48, %v3434_v29  ;;  %v4148_v53 = vld [vmem:[%s6146_s1 + $0x40] sm:$0xff] }
 0x41c   :  { %v3687_v19 = vsel %vm3686_vm6, %v3448_v46, %v3685_v6  ;;  %v3469_v7 = vadd.f32 %v3468_v31, %v3467_v39  ;;  %v4153_v6 = vld [vmem:[%s6146_s1 + $0x70] sm:$0xff] }
 0x41d   :  { %v3470_v33 = vsel %vm154_vm0, %v3402_v59, 0.0  ;;  %v3689_v9 = vsel %vm3688_vm7, %v3455_v20, %v3687_v19 }
 0x41e   :  { %v3471_v63 = vrot.slane %v3470_v33, 4  ;;  %v3691_v60 = vsel %vm3690_vm8, %v3462_v58, %v3689_v9 }
 0x420   :  { %v3284_v24 = vpop.permute.xlu0 %3283  ;;  %v3472_v30 = vadd.f32 %v3471_v63, %v3470_v33 }
 0x421   :  { %v3405_v36 = vmul.f32 %v4143_v2, %v3284_v24 }
 0x422   :  { %v3473_v62 = vrot.slane %v3472_v30, 2 }
 0x423   :  { %v3491_v8 = vsel %vm154_vm0, %v3405_v36, 0.0 }
 0x424   :  { %v3492_v61 = vrot.slane %v3491_v8, 4 }
 0x426   :  { %v3493_v24 = vadd.f32 %v3492_v61, %v3491_v8 }
 0x428   :  { %v3494_v23 = vrot.slane %v3493_v24, 2 }
 0x42a   :  { %v3495_v2 = vadd.f32 %v3494_v23, %v3493_v24 }
 0x42e   :  { %v3294_v15 = vpop.permute.xlu0 %3293 }
 0x42f   :  { %v3407_v4 = vmul.f32 %v4144_v56, %v3294_v15  ;;  %v3474_v15 = vadd.f32 %v3473_v62, %v3472_v30 }
 0x431   :  { %v3505_v41 = vsel %vm154_vm0, %v3407_v4, 0.0  ;;  %v3475_v51 = vrot.slane %v3474_v15, 1  ;;  %v4151_v4 = vld [vmem:[%s6146_s1 + $0x90] sm:$0xff] }
 0x432   :  { %v3506_v18 = vrot.slane %v3505_v41, 4 }
 0x433   :  { %v3476_v8 = vadd.f32 %v3475_v51, %v3474_v15 }
 0x43c   :  { %v3304_v11 = vpop.permute.xlu0 %3303 }
 0x43d   :  { %v3409_v16 = vmul.f32 %v4145_v34, %v3304_v11  ;;  %v3496_v34 = vrot.slane %v3495_v2, 1 }
 0x43f   :  { %v3519_v0 = vsel %vm154_vm0, %v3409_v16, 0.0 }
 0x440   :  { %v3520_v11 = vrot.slane %v3519_v0, 4 }
 0x442   :  { %v3521_v36 = vadd.f32 %v3520_v11, %v3519_v0 }
 0x444   :  { %v3522_v16 = vrot.slane %v3521_v36, 2 }
 0x44c   :  { %v3314_v10 = vpop.permute.xlu0 %3313 }
 0x44d   :  { %v3411_v55 = vmul.f32 %v4147_v28, %v3314_v10  ;;  %v3507_v10 = vadd.f32 %v3506_v18, %v3505_v41  ;;  %v3523_v18 = vadd.f32 %v3522_v16, %v3521_v36 }
 0x44f   :  { %v3533_v33 = vsel %vm154_vm0, %v3411_v55, 0.0  ;;  %v3508_v1 = vrot.slane %v3507_v10, 2 }
 0x450   :  { %v5989_v35 = vpop.permute.xlu0 %3323  ;;  %v3534_v30 = vrot.slane %v3533_v33, 4 }
 0x451   :  { %v3413_v42 = vmul.f32 %v4150_v47, %v5989_v35  ;;  %v3693_v35 = vsel %vm3692_vm9, %v3469_v7, %v3691_v60  ;;  %v3509_v24 = vadd.f32 %v3508_v1, %v3507_v10 }
 0x453   :  { %v3547_v48 = vsel %vm154_vm0, %v3413_v42, 0.0  ;;  %v3510_v58 = vrot.slane %v3509_v24, 1 }
 0x454   :  { %v3329_v14 = vpop.permute.xlu0 %3328 }
 0x455   :  { %v3414_v17 = vmul.f32 %v4151_v4, %v3329_v14  ;;  %v3695_v14 = vsel %vm3694_vm10, %v3476_v8, %v3693_v35  ;;  %v3511_v1 = vadd.f32 %v3510_v58, %v3509_v24 }
 0x457   :  { %v3554_v46 = vsel %vm154_vm0, %v3414_v17, 0.0 }
 0x458   :  { %v6008_v13 = vpop.permute.xlu0 %3338  ;;  %v3555_v11 = vrot.slane %v3554_v46, 4 }
 0x45a   :  { %v3556_v42 = vadd.f32 %v3555_v11, %v3554_v46 }
 0x45b   :  { %v3274_v57 = vpop.permute.xlu1 %3273 }
 0x45c   :  { %v3403_v25 = vmul.f32 %v4146_v45, %v3274_v57  ;;  %v6025_v44 = vpop.permute.xlu0 %3348  ;;  %v3535_v45 = vadd.f32 %v3534_v30, %v3533_v33 }
 0x45e   :  { %v3477_v40 = vsel %vm154_vm0, %v3403_v25, 0.0  ;;  %v3536_v23 = vrot.slane %v3535_v45, 2 }
 0x45f   :  { %v3478_v38 = vrot.slane %v3477_v40, 4  ;;  %v3279_v54 = vpop.permute.xlu1 %3278 }
 0x460   :  { %v3404_v59 = vmul.f32 %v4148_v53, %v3279_v54  ;;  %v3364_v25 = vpop.permute.xlu0 %3363  ;;  %v3537_v47 = vadd.f32 %v3536_v23, %v3535_v45  ;;  %v4162_v23 = vld [vmem:[%s6146_s1 + $0xb0] sm:$0xff] }
 0x461   :  { %v3479_v22 = vadd.f32 %v3478_v38, %v3477_v40  ;;  %v3548_v40 = vrot.slane %v3547_v48, 4  ;;  %v3497_v38 = vadd.f32 %v3496_v34, %v3495_v2  ;;  %v4156_v2 = vld [vmem:[%s6146_s1 + $0xa0] sm:$0xff]  ;;  %v3418_v11 = vmul.f32 %v4162_v23, %v6025_v44 }
 0x462   :  { %v3484_v43 = vsel %vm154_vm0, %v3404_v59, 0.0  ;;  %v3416_v36 = vmul.f32 %v4156_v2, %v6008_v13  ;;  %v4157_v13 = vld [vmem:[%s6146_s1 + $0xd8] sm:$0xff] }
 0x463   :  { %v3480_v5 = vrot.slane %v3479_v22, 2  ;;  %v3485_v32 = vrot.slane %v3484_v43, 4  ;;  %v3289_v26 = vpop.permute.xlu1 %3288  ;;  %v3549_v33 = vadd.f32 %v3548_v40, %v3547_v48  ;;  %v4160_v40 = vld [vmem:[%s6146_s1 + $0xe8] sm:$0xff] }
 0x464   :  { %v3406_v63 = vmul.f32 %v4149_v37, %v3289_v26  ;;  %v3374_v59 = vpop.permute.xlu0 %3373  ;;  %v4155_v26 = vld [vmem:[%s6146_s1 + $0x80] sm:$0xff]  ;;  %v3568_v34 = vsel %vm154_vm0, %v3416_v36, 0.0  ;;  %v3582_v36 = vsel %vm154_vm0, %v3418_v11, 0.0  ;;  %v4166_v11 = vld [vmem:[%s6146_s1 + $0xf0] sm:$0xff] }
 0x465   :  { %v3481_v21 = vadd.f32 %v3480_v5, %v3479_v22  ;;  %v3486_v49 = vadd.f32 %v3485_v32, %v3484_v43  ;;  %v3524_v43 = vrot.slane %v3523_v18, 1  ;;  %v4154_v5 = vld [vmem:[%s6146_s1 + $0xc8] sm:$0xff] }
 0x466   :  { %v3498_v56 = vsel %vm154_vm0, %v3406_v63, 0.0  ;;  %v3421_v32 = vmul.f32 %v4154_v5, %v3364_v25 }
 0x467   :  { %v3482_v61 = vrot.slane %v3481_v21, 1  ;;  %v3487_v12 = vrot.slane %v3486_v49, 2  ;;  %v3499_v27 = vrot.slane %v3498_v56, 4  ;;  %v3299_v52 = vpop.permute.xlu1 %3298  ;;  %v3525_v48 = vadd.f32 %v3524_v43, %v3523_v18 }
 0x468   :  { %v3408_v62 = vmul.f32 %v4152_v50, %v3299_v52  ;;  %v4158_v52 = vld [vmem:[%s6146_s1 + $0x98] sm:$0xff] }
 0x469   :  { %v3483_v41 = vadd.f32 %v3482_v61, %v3481_v21  ;;  %v3488_v57 = vadd.f32 %v3487_v12, %v3486_v49  ;;  %v3500_v39 = vadd.f32 %v3499_v27, %v3498_v56  ;;  %v3384_v49 = vpop.permute.xlu0 %3383  ;;  %v3550_v61 = vrot.slane %v3549_v33, 2 }
 0x46a   :  { %v3512_v29 = vsel %vm154_vm0, %v3408_v62, 0.0  ;;  %v3603_v12 = vsel %vm154_vm0, %v3421_v32, 0.0  ;;  %v3423_v27 = vmul.f32 %v4157_v13, %v3374_v59 }
 0x46b   :  { %v3489_v3 = vrot.slane %v3488_v57, 1  ;;  %v3501_v0 = vrot.slane %v3500_v39, 2  ;;  %v3513_v20 = vrot.slane %v3512_v29, 4  ;;  %v3309_v15 = vpop.permute.xlu1 %3308  ;;  %v3697_v55 = vsel %vm3696_vm11, %v3483_v41, %v3695_v14 }
 0x46c   :  { %v3410_v28 = vmul.f32 %v4153_v6, %v3309_v15  ;;  %3723 = vst.msk [vmem:[#allocation12] sm:$0xff] %vm154_vm0, %v3697_v55  ;;  %v3538_v41 = vrot.slane %v3537_v47, 1  ;;  %v3604_v24 = vrot.slane %v3603_v12, 4  ;;  %v4159_v15 = vld [vmem:[%s6146_s1 + $0xa8] sm:$0xff]  ;;  %v3425_v6 = vmul.f32 %v4160_v40, %v3384_v49 }
 0x46d   :  { %v3502_v54 = vadd.f32 %v3501_v0, %v3500_v39  ;;  %v3514_v31 = vadd.f32 %v3513_v20, %v3512_v29  ;;  %v3490_v53 = vadd.f32 %v3489_v3, %v3488_v57  ;;  %v3557_v57 = vrot.slane %v3556_v42, 2 }
 0x46e   :  { %v3526_v19 = vsel %vm154_vm0, %v3410_v28, 0.0  ;;  %v3394_v14 = vpop.permute.xlu0 %3393  ;;  %v3551_v3 = vadd.f32 %v3550_v61, %v3549_v33  ;;  %v3569_v0 = vrot.slane %v3568_v34, 4  ;;  %v3617_v20 = vsel %vm154_vm0, %v3423_v27, 0.0  ;;  %v4163_v33 = vld [vmem:[%s6146_s1 + $0xc0] sm:$0xff] }
 0x46f   :  { %v3503_v22 = vrot.slane %v3502_v54, 1  ;;  %v3515_v9 = vrot.slane %v3514_v31, 2  ;;  %v3527_v51 = vrot.slane %v3526_v19, 4  ;;  %v3319_v10 = vpop.permute.xlu1 %3318  ;;  %v3698_v21 = vsel %vm3684_vm2, %v3497_v38, %v3490_v53  ;;  %v4161_v38 = vld [vmem:[%s6146_s1 + $0xf8] sm:$0xff] }
 0x470   :  { %v3412_v7 = vmul.f32 %v4155_v26, %v3319_v10  ;;  %v3605_v58 = vadd.f32 %v3604_v24, %v3603_v12  ;;  %v3552_v10 = vrot.slane %v3551_v3, 1  ;;  %v3618_v43 = vrot.slane %v3617_v20, 4  ;;  %v4165_v24 = vld [vmem:[%s6146_s1 + $0xe0] sm:$0xff] }
 0x471   :  { %v3504_v37 = vadd.f32 %v3503_v22, %v3502_v54  ;;  %v3516_v63 = vadd.f32 %v3515_v9, %v3514_v31  ;;  %v3528_v60 = vadd.f32 %v3527_v51, %v3526_v19  ;;  %v3427_v54 = vmul.f32 %v4161_v38, %v3394_v14 }
 0x472   :  { %v3540_v8 = vsel %vm154_vm0, %v3412_v7, 0.0  ;;  %v3539_v31 = vadd.f32 %v3538_v41, %v3537_v47  ;;  %v3558_v19 = vadd.f32 %v3557_v57, %v3556_v42  ;;  %v3570_v44 = vadd.f32 %v3569_v0, %v3568_v34 }
 0x473   :  { %v3699_v30 = vsel %vm3686_vm6, %v3504_v37, %v3698_v21  ;;  %v3517_v56 = vrot.slane %v3516_v63, 1  ;;  %v3529_v4 = vrot.slane %v3528_v60, 2  ;;  %v3334_v17 = vpop.permute.xlu1 %3333  ;;  %v3541_v62 = vrot.slane %v3540_v8, 4 }
 0x474   :  { %v3415_v35 = vmul.f32 %v4158_v52, %v3334_v17  ;;  %v3700_v39 = vsel %vm3688_vm7, %v3511_v1, %v3699_v30  ;;  %v3631_v26 = vsel %vm154_vm0, %v3425_v6, 0.0  ;;  %v3645_v2 = vsel %vm154_vm0, %v3427_v54, 0.0 }
 0x475   :  { %v3518_v16 = vadd.f32 %v3517_v56, %v3516_v63  ;;  %v3530_v50 = vadd.f32 %v3529_v4, %v3528_v60  ;;  %v3542_v55 = vadd.f32 %v3541_v62, %v3540_v8  ;;  %v3559_v47 = vrot.slane %v3558_v19, 1  ;;  %v4164_v56 = vld [vmem:[%s6146_s1 + $0xd0] sm:$0xff] }
 0x476   :  { %v3561_v29 = vsel %vm154_vm0, %v3415_v35, 0.0  ;;  %v3606_v42 = vrot.slane %v3605_v58, 2  ;;  %v3619_v8 = vadd.f32 %v3618_v43, %v3617_v20  ;;  %v3632_v1 = vrot.slane %v3631_v26, 4 }
 0x477   :  { %v3701_v45 = vsel %vm3690_vm8, %v3518_v16, %v3700_v39  ;;  %v3531_v25 = vrot.slane %v3530_v50, 1  ;;  %v3344_v46 = vpop.permute.xlu1 %3343  ;;  %v3562_v59 = vrot.slane %v3561_v29, 4  ;;  %v3543_v7 = vrot.slane %v3542_v55, 2 }
 0x478   :  { %v3417_v18 = vmul.f32 %v4159_v15, %v3344_v46  ;;  %v3702_v53 = vsel %vm3692_vm9, %v3525_v48, %v3701_v45  ;;  %v3646_v30 = vrot.slane %v3645_v2, 4  ;;  %v3553_v17 = vadd.f32 %v3552_v10, %v3551_v3 }
 0x479   :  { %v3532_v28 = vadd.f32 %v3531_v25, %v3530_v50  ;;  %v3563_v37 = vadd.f32 %v3562_v59, %v3561_v29  ;;  %v3583_v61 = vrot.slane %v3582_v36, 4  ;;  %v3544_v12 = vadd.f32 %v3543_v7, %v3542_v55 }
 0x47a   :  { %v3575_v9 = vsel %vm154_vm0, %v3417_v18, 0.0  ;;  %v3571_v27 = vrot.slane %v3570_v44, 2  ;;  %v6099_v16 = vadd.f32 %v3559_v47, %v3558_v19  ;;  %v3607_v50 = vadd.f32 %v3606_v42, %v3605_v58 }
 0x47b   :  { %v3703_v22 = vsel %vm3694_vm10, %v3532_v28, %v3702_v53  ;;  %v3359_v51 = vpop.permute.xlu1 %3358  ;;  %v3576_v63 = vrot.slane %v3575_v9, 4  ;;  %v3564_v52 = vrot.slane %v3563_v37, 2  ;;  %v3620_v57 = vrot.slane %v3619_v8, 2 }
 0x47c   :  { %v3420_v5 = vmul.f32 %v4163_v33, %v3359_v51  ;;  %v3704_v32 = vsel %vm3696_vm11, %v3539_v31, %v3703_v22  ;;  %v3633_v39 = vadd.f32 %v3632_v1, %v3631_v26  ;;  %v3647_v14 = vadd.f32 %v3646_v30, %v3645_v2 }
 0x47d   :  { %3724 = vst.msk [vmem:[#allocation12 + $0x8] sm:$0xff] %vm154_vm0, %v3704_v32  ;;  %v3577_v35 = vadd.f32 %v3576_v63, %v3575_v9  ;;  %v3584_v25 = vadd.f32 %v3583_v61, %v3582_v36  ;;  %v3545_v29 = vrot.slane %v3544_v12, 1  ;;  %v3572_v0 = vadd.f32 %v3571_v27, %v3570_v44 }
 0x47e   :  { %v3596_v60 = vsel %vm154_vm0, %v3420_v5, 0.0  ;;  %v3565_v20 = vadd.f32 %v3564_v52, %v3563_v37  ;;  %v3608_v40 = vrot.slane %v3607_v50, 1  ;;  %v3621_v54 = vadd.f32 %v3620_v57, %v3619_v8  ;;  %v4167_v37 = vld [vmem:[%s6146_s1 + $0xb8] sm:$0xff]  ;;  %s4321_s1 = smov [#allocation12]  }
 0x47f   :  { %v3597_v21 = vrot.slane %v3596_v60, 4  ;;  %v3369_v49 = vpop.permute.xlu1 %3368  ;;  %v3578_v15 = vrot.slane %v3577_v35, 2  ;;  %v3634_v31 = vrot.slane %v3633_v39, 2  ;;  %v3648_v23 = vrot.slane %v3647_v14, 2  ;;  %s3764_s29 = sshll.u32 %s4321_s1, 4  ;;  %s3765_s29 = int_to_ptr.vmem [resolvable:$true] %s3764_s29 }
 0x480   :  { %v3422_v4 = vmul.f32 %v4164_v56, %v3369_v49  ;;  %v3585_v59 = vrot.slane %v3584_v25, 2  ;;  %v3546_v19 = vadd.f32 %v3545_v29, %v3544_v12  ;;  %v3566_v9 = vrot.slane %v3565_v20, 1  ;;  %s4278_s30 = scalar_lea.vmem %s3765_s29, 512  ;;  %p4283_p13 = scmp.lt.s32.totalorder %s3765_s29, %s3765_s29 }
 0x481   :  { %v3598_v13 = vadd.f32 %v3597_v21, %v3596_v60  ;;  %v3579_v51 = vadd.f32 %v3578_v15, %v3577_v35  ;;  %v3609_v33 = vadd.f32 %v3608_v40, %v3607_v50  ;;  %v3622_v7 = vrot.slane %v3621_v54, 1  ;;  %p4279_p12 = scmp.ne.s32.totalorder %s3765_s29, %s4278_s30  ;;  %p4284_p0 = scmp.lt.s32.totalorder %s4278_s30, %s4278_s30 }
 0x482   :  { %v3610_v34 = vsel %vm154_vm0, %v3422_v4, 0.0  ;;  %v3635_v2 = vadd.f32 %v3634_v31, %v3633_v39  ;;  %v3649_v36 = vadd.f32 %v3648_v23, %v3647_v14  ;;  %v3705_v60 = vsel %vm3684_vm2, %v3553_v17, %v3546_v19 }
 0x483   :  { %v3599_v62 = vrot.slane %v3598_v13, 2  ;;  %v3611_v48 = vrot.slane %v3610_v34, 4  ;;  %v3379_v41 = vpop.permute.xlu1 %3378  ;;  %v3567_v49 = vadd.f32 %v3566_v9, %v3565_v20  ;;  %v3580_v8 = vrot.slane %v3579_v51, 1  ;;  %p4285_p1 = por %p4284_p0, %p4283_p13 }
 0x484   :  { %v3424_v45 = vmul.f32 %v4165_v24, %v3379_v41  ;;  %v3586_v27 = vadd.f32 %v3585_v59, %v3584_v25  ;;  %v3623_v52 = vadd.f32 %v3622_v7, %v3621_v54  ;;  %v3636_v35 = vrot.slane %v3635_v2, 1 }
 0x485   :  { %v3600_v46 = vadd.f32 %v3599_v62, %v3598_v13  ;;  %v3612_v3 = vadd.f32 %v3611_v48, %v3610_v34  ;;  %v3573_v13 = vrot.slane %v3572_v0, 1  ;;  %v3706_v17 = vsel %vm3686_vm6, %v6099_v16, %v3705_v60  ;;  %p4286_p2 = pnand %p4285_p1, %p4279_p12 }
 0x486   :  { %v3624_v18 = vsel %vm154_vm0, %v3424_v45, 0.0  ;;  %v3650_v48 = vrot.slane %v3649_v36, 1  ;;  %v3707_v41 = vsel %vm3688_vm7, %v3567_v49, %v3706_v17  ;;  %v3581_v39 = vadd.f32 %v3580_v8, %v3579_v51 }
 0x487   :  { %v3601_v6 = vrot.slane %v3600_v46, 1  ;;  %v3613_v28 = vrot.slane %v3612_v3, 2  ;;  %v3625_v55 = vrot.slane %v3624_v18, 4  ;;  %v3389_v38 = vpop.permute.xlu1 %3388  ;;  %v3574_v29 = vadd.f32 %v3573_v13, %v3572_v0 }
 0x488   :  { %v3426_v53 = vmul.f32 %v4166_v11, %v3389_v38  ;;  %v3587_v25 = vrot.slane %v3586_v27, 1  ;;  %v3651_v15 = vadd.f32 %v3650_v48, %v3649_v36 }
 0x489   :  { %v3614_v58 = vadd.f32 %v3613_v28, %v3612_v3  ;;  %v3626_v22 = vadd.f32 %v3625_v55, %v3624_v18  ;;  %v3602_v10 = vadd.f32 %v3601_v6, %v3600_v46  ;;  %v3637_v46 = vadd.f32 %v3636_v35, %v3635_v2 }
 0x48a   :  { %v3638_v43 = vsel %vm154_vm0, %v3426_v53, 0.0  ;;  %v3708_v16 = vsel %vm3690_vm8, %v3574_v29, %v3707_v41  ;;  %v3588_v55 = vadd.f32 %v3587_v25, %v3586_v27 }
 0x48b   :  { %v3615_v5 = vrot.slane %v3614_v58, 1  ;;  %v3627_v32 = vrot.slane %v3626_v22, 2  ;;  %v3639_v44 = vrot.slane %v3638_v43, 4  ;;  %v3354_v26 = vpop.permute.xlu1 %3353  ;;  %v3712_v1 = vsel %vm3684_vm2, %v3609_v33, %v3602_v10 }
 0x48c   :  { %v3419_v63 = vmul.f32 %v4167_v37, %v3354_v26  ;;  %v3709_v40 = vsel %vm3692_vm9, %v3581_v39, %v3708_v16 }
 0x48d   :  { %v3616_v47 = vadd.f32 %v3615_v5, %v3614_v58  ;;  %v3628_v42 = vadd.f32 %v3627_v32, %v3626_v22  ;;  %v3640_v21 = vadd.f32 %v3639_v44, %v3638_v43  ;;  %v3710_v54 = vsel %vm3694_vm10, %v3588_v55, %v3709_v40 }
 0x48e   :  { %v3589_v30 = vsel %vm154_vm0, %v3419_v63, 0.0 }
 0x48f   :  { %v3713_v56 = vsel %vm3686_vm6, %v3616_v47, %v3712_v1  ;;  %v3629_v4 = vrot.slane %v3628_v42, 1  ;;  %v3641_v61 = vrot.slane %v3640_v21, 2  ;;  %v3590_v12 = vrot.slane %v3589_v30, 4 }
 0x490   :  { %v3714_v57 = vsel %vm3688_vm7, %v3623_v52, %v3713_v56 }
 0x491   :  { %v3630_v34 = vadd.f32 %v3629_v4, %v3628_v42  ;;  %v3642_v50 = vadd.f32 %v3641_v61, %v3640_v21  ;;  %v3591_v62 = vadd.f32 %v3590_v12, %v3589_v30 }
 0x493   :  { %v3715_v14 = vsel %vm3690_vm8, %v3630_v34, %v3714_v57  ;;  %v3643_v24 = vrot.slane %v3642_v50, 1  ;;  %v3592_v45 = vrot.slane %v3591_v62, 2 }
 0x494   :  { %v3716_v18 = vsel %vm3692_vm9, %v3637_v46, %v3715_v14 }
 0x495   :  { %v3644_v3 = vadd.f32 %v3643_v24, %v3642_v50  ;;  %v3593_v20 = vadd.f32 %v3592_v45, %v3591_v62 }
 0x497   :  { %v3717_v6 = vsel %vm3694_vm10, %v3644_v3, %v3716_v18  ;;  %v3594_v28 = vrot.slane %v3593_v20, 1 }
 0x498   :  { %v3718_v38 = vsel %vm3696_vm11, %v3651_v15, %v3717_v6 }
 0x499   :  { %v3595_v0 = vadd.f32 %v3594_v28, %v3593_v20  ;;  %3726 = vst.msk [vmem:[#allocation12 + $0x18] sm:$0xff] %vm154_vm0, %v3718_v38 }
 0x49b   :  { %v3711_v31 = vsel %vm3696_vm11, %v3595_v0, %v3710_v54 }
 0x49c   :  { %3725 = vst.msk [vmem:[#allocation12 + $0x10] sm:$0xff] %vm154_vm0, %v3711_v31 }
 0x49d   :  { %4289 = shalt.err (!%p4286_p2)
}
 0x49e   :  { %s4290_s13 = scalar_lea.hbm %s6156_s11, 512 }
 0x49f   :  { %p4291_p3 = scmp.ne.s32.totalorder %s6156_s11, %s4290_s13  ;;  %p4294_p4 = scmp.lt.u32.totalorder %s4290_s13, %s6156_s11 }
 0x4a1   :  { %p4296_p5 = pnand %p4294_p4, %p4291_p3 }
 0x4a3   :  { %4299 = shalt.err (!%p4296_p5)
}
 0x4a4   :  { %3770 = dma.vmem_to_hbm [thread:$0]  %s3765_s29, 512, %s6156_s11, [#allocation5], %s4313_s5, %s4313_s5, %s4314_s18  }
 0x4a5   :  { %4306 = dma.done.wait [#allocation5], 512  }
 0x4a6   :  { %4307 = vsyncadd [#allocation5], 4294966784 }
 0x4a7   :  { %3778 = vsyncpa [#allocation4], 1 }
 0x4a8   :  { %3779 = vsyncpa [#allocation7], 1 }
 0x4a9   :  { %3780 = vsyncpa [#allocation10], 1 }
 0x4aa   :  { %3781 = vsyncpa [#allocation5], 1 }

</bundles_post_ra>
